<compile_context>
chip_gen: v7x
topology: tpu7x:2x2x1
jax: 0.10.0
libtpu: 0.0.40
codegen_flags: <defaults>
</compile_context>

<pallas_src>
import functools

import jax
import jax.numpy as jnp
from jax.experimental import pallas as pl
from jax.experimental.pallas import tpu as pltpu

EPS = 1e-5                        # PyTorch nn.LayerNorm default eps
_INV_SQRT2 = 0.7071067811865476


# ----------------------------- in-kernel helpers -----------------------------
def _layernorm(x, g, b):
    mu = jnp.mean(x, axis=-1, keepdims=True)
    xc = x - mu
    var = jnp.mean(xc * xc, axis=-1, keepdims=True)
    return xc * jax.lax.rsqrt(var + EPS) * g + b


def _gelu_exact(x):
    # nn.GELU() default = exact erf formulation
    return 0.5 * x * (1.0 + jax.lax.erf(x * _INV_SQRT2))


# ------------------------------ fused ViT kernel ------------------------------
def fused_vit_kernel(
    p_ref, pos_ref,                                          # (B*N, patch_dim), (B*N, D)
    pe_ln1_g, pe_ln1_b, pe_w, pe_b, pe_ln2_g, pe_ln2_b,
    a_ln_g, a_ln_b, w_qkv, w_o, b_o,                         # stacked over depth
    f_ln_g, f_ln_b, ff_w1, ff_b1, ff_w2, ff_b2,              # stacked over depth
    fin_g, fin_b,
    o_ref,                                                   # (B*N, D)
    *, depth, heads, dim_head, batch, seq):
    bf16 = jnp.bfloat16
    inner = heads * dim_head

    # ---- patch embedding: LN -> Linear -> LN -> + pos_embedding ----
    x = p_ref[...]                                           # (B*N, patch_dim) f32
    x = _layernorm(x, pe_ln1_g[...], pe_ln1_b[...])
    x = jnp.dot(x.astype(bf16), pe_w[...],
                preferred_element_type=jnp.float32) + pe_b[...]
    x = _layernorm(x, pe_ln2_g[...], pe_ln2_b[...])
    x = x + pos_ref[...]                                     # (B*N, D)
    # dropout / emb_dropout are p=0.0 -> identity in this forward

    # ---- transformer layers: activation stays resident across the depth loop ----
    for l in range(depth):
        # ----- attention block -----
        xn = _layernorm(x, a_ln_g[l], a_ln_b[l]).astype(bf16)
        qkv = jnp.dot(xn, w_qkv[l],
                      preferred_element_type=jnp.float32)    # (B*N, 3*inner) f32
        wo_l = w_o[l]                                        # (inner, D) bf16
        proj = b_o[l]                                        # (1, D) f32, broadcasts
        for h in range(heads):                               # static unroll over heads
            sl = slice(h * dim_head, (h + 1) * dim_head)
            q = qkv[:, sl].reshape(batch, seq, dim_head).astype(bf16)
            k = qkv[:, inner + h * dim_head:
                       inner + (h + 1) * dim_head].reshape(batch, seq, dim_head).astype(bf16)
            v = qkv[:, 2 * inner + h * dim_head:
                       2 * inner + (h + 1) * dim_head].reshape(batch, seq, dim_head).astype(bf16)
            # scale already folded into the Q columns of w_qkv at init
            dots = jax.lax.dot_general(
                q, k, (((2,), (2,)), ((0,), (0,))),
                preferred_element_type=jnp.float32)          # (B, N, N) = q @ k^T
            dots = dots - jnp.max(dots, axis=-1, keepdims=True)
            e = jnp.exp(dots)
            attn = e * pl.reciprocal(jnp.sum(e, axis=-1, keepdims=True),
                                     approx=True)            # EUP vrcp, ~free
            out_h = jax.lax.dot_general(
                attn.astype(bf16), v, (((2,), (1,)), ((0,), (0,))),
                preferred_element_type=jnp.float32)          # (B, N, dim_head)
            # Fold the head-concat into the output projection: accumulate the
            # per-head slice of W_o directly (no concatenate, no scratch).
            proj = proj + jnp.dot(
                out_h.reshape(batch * seq, dim_head).astype(bf16), wo_l[sl, :],
                preferred_element_type=jnp.float32)
        x = x + proj                                         # residual

        # ----- feed-forward block -----
        hn = _layernorm(x, f_ln_g[l], f_ln_b[l]).astype(bf16)
        h1 = jnp.dot(hn, ff_w1[l],
                     preferred_element_type=jnp.float32) + ff_b1[l]
        h1 = _gelu_exact(h1).astype(bf16)
        h2 = jnp.dot(h1, ff_w2[l],
                     preferred_element_type=jnp.float32) + ff_b2[l]
        x = x + h2                                           # residual

    # ---- final LayerNorm; single store ----
    o_ref[...] = _layernorm(x, fin_g[...], fin_b[...])


# ------------------------------ pallas wrapper --------------------------------
def vit_pallas(patches_flat, pos_tiled, params, *, heads, dim_head, depth,
               batch, seq):
    BN, _ = patches_flat.shape
    D = params["pe_w"].shape[1]
    kernel = functools.partial(fused_vit_kernel, depth=depth, heads=heads,
                               dim_head=dim_head, batch=batch, seq=seq)
    args = [
        patches_flat, pos_tiled,
        params["pe_ln1_g"], params["pe_ln1_b"], params["pe_w"], params["pe_b"],
        params["pe_ln2_g"], params["pe_ln2_b"],
        params["a_ln_g"], params["a_ln_b"], params["w_qkv"], params["w_o"],
        params["b_o"],
        params["f_ln_g"], params["f_ln_b"], params["ff_w1"], params["ff_b1"],
        params["ff_w2"], params["ff_b2"],
        params["fin_g"], params["fin_b"],
    ]
    # Single invocation (no grid): every array is a full-size VMEM-resident
    # ref; no per-step grid overhead, no double-buffering of weights.
    return pl.pallas_call(
        kernel,
        out_shape=jax.ShapeDtypeStruct((BN, D), jnp.float32),
        compiler_params=pltpu.CompilerParams(
            vmem_limit_bytes=32 * 1024 * 1024),
    )(*args)


# ------------------------------ model plumbing --------------------------------
def init_params(key, *, channels, image, patch, dim, depth, heads, dim_head,
                mlp_dim):
    patch_dim = channels * patch * patch
    num_patches = (image // patch) ** 2
    inner = heads * dim_head
    scale = dim_head ** -0.5
    ks = jax.random.split(key, 10)

    def rnd(k, shape, s=0.02):
        return (s * jax.random.normal(k, shape)).astype(jnp.float32)

    bf16 = jnp.bfloat16
    # Fold the attention scale into the Q columns (scale*(q k^T) == (scale*q) k^T).
    w_qkv = rnd(ks[3], (depth, dim, 3 * inner))
    w_qkv = w_qkv.at[:, :, :inner].multiply(scale)
    return {
        # patch embedding
        "pe_ln1_g": jnp.ones((1, patch_dim), jnp.float32),
        "pe_ln1_b": jnp.zeros((1, patch_dim), jnp.float32),
        "pe_w": rnd(ks[0], (patch_dim, dim)).astype(bf16),
        "pe_b": rnd(ks[1], (1, dim)),
        "pe_ln2_g": jnp.ones((1, dim), jnp.float32),
        "pe_ln2_b": jnp.zeros((1, dim), jnp.float32),
        "pos": jax.random.normal(ks[2], (num_patches, dim)).astype(jnp.float32),
        # transformer layers, stacked over depth (VMEM resident in the kernel)
        "a_ln_g": jnp.ones((depth, 1, dim), jnp.float32),
        "a_ln_b": jnp.zeros((depth, 1, dim), jnp.float32),
        "w_qkv": w_qkv.astype(bf16),          # to_qkv has no bias
        "w_o": rnd(ks[4], (depth, inner, dim)).astype(bf16),
        "b_o": rnd(ks[5], (depth, 1, dim)),
        "f_ln_g": jnp.ones((depth, 1, dim), jnp.float32),
        "f_ln_b": jnp.zeros((depth, 1, dim), jnp.float32),
        "ff_w1": rnd(ks[6], (depth, dim, mlp_dim)).astype(bf16),
        "ff_b1": rnd(ks[7], (depth, 1, mlp_dim)),
        "ff_w2": rnd(ks[8], (depth, mlp_dim, dim)).astype(bf16),
        "ff_b2": rnd(ks[9], (depth, 1, dim)),
        # final norm
        "fin_g": jnp.ones((1, dim), jnp.float32),
        "fin_b": jnp.zeros((1, dim), jnp.float32),
    }


def vit_forward(img, params, *, patch, heads, dim_head, depth):
    # TODO(synk): patchify / un-patchify (einops Rearrange) is layout-only and
    # is left to XLA outside the kernel rather than folded into the index_map.
    B, C, H, W = img.shape
    h, w = H // patch, W // patch
    N = h * w
    # 'b c (h p1) (w p2) -> b (h w) (p1 p2 c)', flattened to (B*N, patch_dim)
    x = img.reshape(B, C, h, patch, w, patch)
    x = x.transpose(0, 2, 4, 3, 5, 1).reshape(B * N, patch * patch * C)

    pos = jnp.tile(params["pos"], (B, 1))                    # (B*N, D)
    x = vit_pallas(x, pos, params, heads=heads, dim_head=dim_head,
                   depth=depth, batch=B, seq=N)              # (B*N, D)

    # 'b (h w) (p1 p2 c) -> b c (h p1) (w p2)'  (requires dim == C*patch*patch)
    x = x.reshape(B, h, w, patch, patch, C)
    x = x.transpose(0, 5, 1, 3, 2, 4).reshape(B, C, H, W)
    return x


# ------------------------------------ main ------------------------------------
if __name__ == "__main__":
    B, C, IMG, P = 2, 4, 16, 4
    DIM, DEPTH, HEADS, DIM_HEAD, MLP = 64, 2, 4, 16, 128
    # reversed_re in the PyTorch module only works when dim == channels*p*p
    assert DIM == C * P * P

    key = jax.random.PRNGKey(0)
    k_img, k_par = jax.random.split(key)
    img = jax.random.normal(k_img, (B, C, IMG, IMG), dtype=jnp.float32)
    params = init_params(k_par, channels=C, image=IMG, patch=P, dim=DIM,
                         depth=DEPTH, heads=HEADS, dim_head=DIM_HEAD,
                         mlp_dim=MLP)

    fwd = jax.jit(functools.partial(vit_forward, patch=P, heads=HEADS,
                                    dim_head=DIM_HEAD, depth=DEPTH))
    out = fwd(img, params)
    out = jax.block_until_ready(out)
    assert out.shape == (B, C, IMG, IMG) and out.dtype == jnp.float32
    assert bool(jnp.isfinite(out).all())
    print("KERNEL_OK")
</pallas_src>

<mosaic_0001>
module attributes {stable_mosaic.version = 11 : i64} {
  func.func @fused_vit_kernel(%arg0: memref<32x64xf32, #tpu.memory_space<vmem>>, %arg1: memref<32x64xf32, #tpu.memory_space<vmem>>, %arg2: memref<1x64xf32, #tpu.memory_space<vmem>>, %arg3: memref<1x64xf32, #tpu.memory_space<vmem>>, %arg4: memref<64x64xbf16, #tpu.memory_space<vmem>>, %arg5: memref<1x64xf32, #tpu.memory_space<vmem>>, %arg6: memref<1x64xf32, #tpu.memory_space<vmem>>, %arg7: memref<1x64xf32, #tpu.memory_space<vmem>>, %arg8: memref<2x1x64xf32, #tpu.memory_space<vmem>>, %arg9: memref<2x1x64xf32, #tpu.memory_space<vmem>>, %arg10: memref<2x64x192xbf16, #tpu.memory_space<vmem>>, %arg11: memref<2x64x64xbf16, #tpu.memory_space<vmem>>, %arg12: memref<2x1x64xf32, #tpu.memory_space<vmem>>, %arg13: memref<2x1x64xf32, #tpu.memory_space<vmem>>, %arg14: memref<2x1x64xf32, #tpu.memory_space<vmem>>, %arg15: memref<2x64x128xbf16, #tpu.memory_space<vmem>>, %arg16: memref<2x1x128xf32, #tpu.memory_space<vmem>>, %arg17: memref<2x128x64xbf16, #tpu.memory_space<vmem>>, %arg18: memref<2x1x64xf32, #tpu.memory_space<vmem>>, %arg19: memref<1x64xf32, #tpu.memory_space<vmem>>, %arg20: memref<1x64xf32, #tpu.memory_space<vmem>>, %arg21: memref<32x64xf32, #tpu.memory_space<vmem>>) attributes {dimension_semantics = [], scalar_prefetch = 0 : i64, scratch_operands = 0 : i64, tpu.core_type = #tpu.core_type<tc>} {
    %c0 = arith.constant 0 : index
    %c0_0 = arith.constant 0 : index
    %0 = vector.load %arg0[%c0, %c0_0] : memref<32x64xf32, #tpu.memory_space<vmem>>, vector<32x64xf32>
    %c0_1 = arith.constant 0 : index
    %c0_2 = arith.constant 0 : index
    %1 = vector.load %arg2[%c0_1, %c0_2] : memref<1x64xf32, #tpu.memory_space<vmem>>, vector<1x64xf32>
    %c0_3 = arith.constant 0 : index
    %c0_4 = arith.constant 0 : index
    %2 = vector.load %arg3[%c0_3, %c0_4] : memref<1x64xf32, #tpu.memory_space<vmem>>, vector<1x64xf32>
    %cst = arith.constant dense<0.000000e+00> : vector<32xf32>
    %3 = vector.multi_reduction <add>, %0, %cst [1] : vector<32x64xf32> to vector<32xf32>
    %4 = vector.shape_cast %3 : vector<32xf32> to vector<32x1xf32>
    %cst_5 = arith.constant 6.400000e+01 : f32
    %5 = vector.broadcast %cst_5 : f32 to vector<32x1xf32>
    %6 = arith.divf %4, %5 : vector<32x1xf32>
    %7 = vector.broadcast %6 : vector<32x1xf32> to vector<32x64xf32>
    %8 = arith.subf %0, %7 : vector<32x64xf32>
    %9 = arith.mulf %8, %8 : vector<32x64xf32>
    %cst_6 = arith.constant dense<0.000000e+00> : vector<32xf32>
    %10 = vector.multi_reduction <add>, %9, %cst_6 [1] : vector<32x64xf32> to vector<32xf32>
    %11 = vector.shape_cast %10 : vector<32xf32> to vector<32x1xf32>
    %cst_7 = arith.constant 6.400000e+01 : f32
    %12 = vector.broadcast %cst_7 : f32 to vector<32x1xf32>
    %13 = arith.divf %11, %12 : vector<32x1xf32>
    %cst_8 = arith.constant 9.99999974E-6 : f32
    %14 = vector.broadcast %cst_8 : f32 to vector<32x1xf32>
    %15 = arith.addf %13, %14 : vector<32x1xf32>
    %16 = math.rsqrt %15 : vector<32x1xf32>
    %17 = vector.broadcast %16 : vector<32x1xf32> to vector<32x64xf32>
    %18 = arith.mulf %8, %17 : vector<32x64xf32>
    %19 = vector.broadcast %1 : vector<1x64xf32> to vector<32x64xf32>
    %20 = arith.mulf %18, %19 : vector<32x64xf32>
    %21 = vector.broadcast %2 : vector<1x64xf32> to vector<32x64xf32>
    %22 = arith.addf %20, %21 : vector<32x64xf32>
    %23 = arith.truncf %22 : vector<32x64xf32> to vector<32x64xbf16>
    %c0_9 = arith.constant 0 : index
    %c0_10 = arith.constant 0 : index
    %24 = vector.load %arg4[%c0_9, %c0_10] : memref<64x64xbf16, #tpu.memory_space<vmem>>, vector<64x64xbf16>
    %cst_11 = arith.constant dense<0.000000e+00> : vector<32x64xf32>
    %25 = tpu.matmul %23, %24, %cst_11 {dimension_numbers = #tpu.dot_dimension_numbers<[1], [0], [0], [1], [0, 0, 1, 1], [], []>} : vector<32x64xbf16>, vector<64x64xbf16>, vector<32x64xf32> -> vector<32x64xf32>
    %c0_12 = arith.constant 0 : index
    %c0_13 = arith.constant 0 : index
    %26 = vector.load %arg5[%c0_12, %c0_13] : memref<1x64xf32, #tpu.memory_space<vmem>>, vector<1x64xf32>
    %27 = vector.broadcast %26 : vector<1x64xf32> to vector<32x64xf32>
    %28 = arith.addf %25, %27 : vector<32x64xf32>
    %c0_14 = arith.constant 0 : index
    %c0_15 = arith.constant 0 : index
    %29 = vector.load %arg6[%c0_14, %c0_15] : memref<1x64xf32, #tpu.memory_space<vmem>>, vector<1x64xf32>
    %c0_16 = arith.constant 0 : index
    %c0_17 = arith.constant 0 : index
    %30 = vector.load %arg7[%c0_16, %c0_17] : memref<1x64xf32, #tpu.memory_space<vmem>>, vector<1x64xf32>
    %cst_18 = arith.constant dense<0.000000e+00> : vector<32xf32>
    %31 = vector.multi_reduction <add>, %28, %cst_18 [1] : vector<32x64xf32> to vector<32xf32>
    %32 = vector.shape_cast %31 : vector<32xf32> to vector<32x1xf32>
    %cst_19 = arith.constant 6.400000e+01 : f32
    %33 = vector.broadcast %cst_19 : f32 to vector<32x1xf32>
    %34 = arith.divf %32, %33 : vector<32x1xf32>
    %35 = vector.broadcast %34 : vector<32x1xf32> to vector<32x64xf32>
    %36 = arith.subf %28, %35 : vector<32x64xf32>
    %37 = arith.mulf %36, %36 : vector<32x64xf32>
    %cst_20 = arith.constant dense<0.000000e+00> : vector<32xf32>
    %38 = vector.multi_reduction <add>, %37, %cst_20 [1] : vector<32x64xf32> to vector<32xf32>
    %39 = vector.shape_cast %38 : vector<32xf32> to vector<32x1xf32>
    %cst_21 = arith.constant 6.400000e+01 : f32
    %40 = vector.broadcast %cst_21 : f32 to vector<32x1xf32>
    %41 = arith.divf %39, %40 : vector<32x1xf32>
    %cst_22 = arith.constant 9.99999974E-6 : f32
    %42 = vector.broadcast %cst_22 : f32 to vector<32x1xf32>
    %43 = arith.addf %41, %42 : vector<32x1xf32>
    %44 = math.rsqrt %43 : vector<32x1xf32>
    %45 = vector.broadcast %44 : vector<32x1xf32> to vector<32x64xf32>
    %46 = arith.mulf %36, %45 : vector<32x64xf32>
    %47 = vector.broadcast %29 : vector<1x64xf32> to vector<32x64xf32>
    %48 = arith.mulf %46, %47 : vector<32x64xf32>
    %49 = vector.broadcast %30 : vector<1x64xf32> to vector<32x64xf32>
    %50 = arith.addf %48, %49 : vector<32x64xf32>
    %c0_23 = arith.constant 0 : index
    %c0_24 = arith.constant 0 : index
    %51 = vector.load %arg1[%c0_23, %c0_24] : memref<32x64xf32, #tpu.memory_space<vmem>>, vector<32x64xf32>
    %52 = arith.addf %50, %51 : vector<32x64xf32>
    %c0_25 = arith.constant 0 : index
    %c0_26 = arith.constant 0 : index
    %c0_27 = arith.constant 0 : index
    %53 = vector.load %arg8[%c0_25, %c0_26, %c0_27] : memref<2x1x64xf32, #tpu.memory_space<vmem>>, vector<1x1x64xf32>
    %54 = vector.shape_cast %53 : vector<1x1x64xf32> to vector<1x64xf32>
    %c0_28 = arith.constant 0 : index
    %c0_29 = arith.constant 0 : index
    %c0_30 = arith.constant 0 : index
    %55 = vector.load %arg9[%c0_28, %c0_29, %c0_30] : memref<2x1x64xf32, #tpu.memory_space<vmem>>, vector<1x1x64xf32>
    %56 = vector.shape_cast %55 : vector<1x1x64xf32> to vector<1x64xf32>
    %cst_31 = arith.constant dense<0.000000e+00> : vector<32xf32>
    %57 = vector.multi_reduction <add>, %52, %cst_31 [1] : vector<32x64xf32> to vector<32xf32>
    %58 = vector.shape_cast %57 : vector<32xf32> to vector<32x1xf32>
    %cst_32 = arith.constant 6.400000e+01 : f32
    %59 = vector.broadcast %cst_32 : f32 to vector<32x1xf32>
    %60 = arith.divf %58, %59 : vector<32x1xf32>
    %61 = vector.broadcast %60 : vector<32x1xf32> to vector<32x64xf32>
    %62 = arith.subf %52, %61 : vector<32x64xf32>
    %63 = arith.mulf %62, %62 : vector<32x64xf32>
    %cst_33 = arith.constant dense<0.000000e+00> : vector<32xf32>
    %64 = vector.multi_reduction <add>, %63, %cst_33 [1] : vector<32x64xf32> to vector<32xf32>
    %65 = vector.shape_cast %64 : vector<32xf32> to vector<32x1xf32>
    %cst_34 = arith.constant 6.400000e+01 : f32
    %66 = vector.broadcast %cst_34 : f32 to vector<32x1xf32>
    %67 = arith.divf %65, %66 : vector<32x1xf32>
    %cst_35 = arith.constant 9.99999974E-6 : f32
    %68 = vector.broadcast %cst_35 : f32 to vector<32x1xf32>
    %69 = arith.addf %67, %68 : vector<32x1xf32>
    %70 = math.rsqrt %69 : vector<32x1xf32>
    %71 = vector.broadcast %70 : vector<32x1xf32> to vector<32x64xf32>
    %72 = arith.mulf %62, %71 : vector<32x64xf32>
    %73 = vector.broadcast %54 : vector<1x64xf32> to vector<32x64xf32>
    %74 = arith.mulf %72, %73 : vector<32x64xf32>
    %75 = vector.broadcast %56 : vector<1x64xf32> to vector<32x64xf32>
    %76 = arith.addf %74, %75 : vector<32x64xf32>
    %77 = arith.truncf %76 : vector<32x64xf32> to vector<32x64xbf16>
    %c0_36 = arith.constant 0 : index
    %c0_37 = arith.constant 0 : index
    %c0_38 = arith.constant 0 : index
    %78 = vector.load %arg10[%c0_36, %c0_37, %c0_38] : memref<2x64x192xbf16, #tpu.memory_space<vmem>>, vector<1x64x192xbf16>
    %79 = vector.shape_cast %78 : vector<1x64x192xbf16> to vector<64x192xbf16>
    %cst_39 = arith.constant dense<0.000000e+00> : vector<32x192xf32>
    %80 = tpu.matmul %77, %79, %cst_39 {dimension_numbers = #tpu.dot_dimension_numbers<[1], [0], [0], [1], [0, 0, 1, 1], [], []>} : vector<32x64xbf16>, vector<64x192xbf16>, vector<32x192xf32> -> vector<32x192xf32>
    %c0_40 = arith.constant 0 : index
    %c0_41 = arith.constant 0 : index
    %c0_42 = arith.constant 0 : index
    %81 = vector.load %arg11[%c0_40, %c0_41, %c0_42] : memref<2x64x64xbf16, #tpu.memory_space<vmem>>, vector<1x64x64xbf16>
    %82 = vector.shape_cast %81 : vector<1x64x64xbf16> to vector<64x64xbf16>
    %c0_43 = arith.constant 0 : index
    %c0_44 = arith.constant 0 : index
    %c0_45 = arith.constant 0 : index
    %83 = vector.load %arg12[%c0_43, %c0_44, %c0_45] : memref<2x1x64xf32, #tpu.memory_space<vmem>>, vector<1x1x64xf32>
    %84 = vector.shape_cast %83 : vector<1x1x64xf32> to vector<1x64xf32>
    %85 = vector.extract_strided_slice %80 {offsets = [0, 0], sizes = [32, 16], strides = [1, 1]} : vector<32x192xf32> to vector<32x16xf32>
    %86 = vector.shape_cast %85 : vector<32x16xf32> to vector<2x16x16xf32>
    %87 = arith.truncf %86 : vector<2x16x16xf32> to vector<2x16x16xbf16>
    %88 = vector.extract_strided_slice %80 {offsets = [0, 64], sizes = [32, 16], strides = [1, 1]} : vector<32x192xf32> to vector<32x16xf32>
    %89 = vector.shape_cast %88 : vector<32x16xf32> to vector<2x16x16xf32>
    %90 = arith.truncf %89 : vector<2x16x16xf32> to vector<2x16x16xbf16>
    %91 = vector.extract_strided_slice %80 {offsets = [0, 128], sizes = [32, 16], strides = [1, 1]} : vector<32x192xf32> to vector<32x16xf32>
    %92 = vector.shape_cast %91 : vector<32x16xf32> to vector<2x16x16xf32>
    %93 = arith.truncf %92 : vector<2x16x16xf32> to vector<2x16x16xbf16>
    %cst_46 = arith.constant dense<0.000000e+00> : vector<2x16x16xf32>
    %94 = tpu.matmul %87, %90, %cst_46 {dimension_numbers = #tpu.dot_dimension_numbers<[2], [2], [1], [1], [0, 0, 0, 1, 1, 1], [0], [0]>} : vector<2x16x16xbf16>, vector<2x16x16xbf16>, vector<2x16x16xf32> -> vector<2x16x16xf32>
    %cst_47 = arith.constant dense<0xFF800000> : vector<2x16xf32>
    %95 = vector.multi_reduction <maximumf>, %94, %cst_47 [2] : vector<2x16x16xf32> to vector<2x16xf32>
    %96 = vector.shape_cast %95 : vector<2x16xf32> to vector<2x16x1xf32>
    %97 = vector.broadcast %96 : vector<2x16x1xf32> to vector<2x16x16xf32>
    %98 = arith.subf %94, %97 : vector<2x16x16xf32>
    %99 = math.exp %98 : vector<2x16x16xf32>
    %cst_48 = arith.constant dense<0.000000e+00> : vector<2x16xf32>
    %100 = vector.multi_reduction <add>, %99, %cst_48 [2] : vector<2x16x16xf32> to vector<2x16xf32>
    %101 = vector.shape_cast %100 : vector<2x16xf32> to vector<2x16x1xf32>
    %102 = tpu.reciprocal %101 {approx = true} : vector<2x16x1xf32> -> vector<2x16x1xf32>
    %103 = vector.broadcast %102 : vector<2x16x1xf32> to vector<2x16x16xf32>
    %104 = arith.mulf %99, %103 : vector<2x16x16xf32>
    %105 = arith.truncf %104 : vector<2x16x16xf32> to vector<2x16x16xbf16>
    %cst_49 = arith.constant dense<0.000000e+00> : vector<2x16x16xf32>
    %106 = tpu.matmul %105, %93, %cst_49 {dimension_numbers = #tpu.dot_dimension_numbers<[2], [1], [1], [2], [0, 0, 0, 1, 1, 2], [0], [0]>} : vector<2x16x16xbf16>, vector<2x16x16xbf16>, vector<2x16x16xf32> -> vector<2x16x16xf32>
    %107 = vector.shape_cast %106 : vector<2x16x16xf32> to vector<32x16xf32>
    %108 = arith.truncf %107 : vector<32x16xf32> to vector<32x16xbf16>
    %109 = vector.extract_strided_slice %82 {offsets = [0, 0], sizes = [16, 64], strides = [1, 1]} : vector<64x64xbf16> to vector<16x64xbf16>
    %cst_50 = arith.constant dense<0.000000e+00> : vector<32x64xf32>
    %110 = tpu.matmul %108, %109, %cst_50 {dimension_numbers = #tpu.dot_dimension_numbers<[1], [0], [0], [1], [0, 0, 1, 1], [], []>} : vector<32x16xbf16>, vector<16x64xbf16>, vector<32x64xf32> -> vector<32x64xf32>
    %111 = vector.broadcast %84 : vector<1x64xf32> to vector<32x64xf32>
    %112 = arith.addf %111, %110 : vector<32x64xf32>
    %113 = vector.extract_strided_slice %80 {offsets = [0, 16], sizes = [32, 16], strides = [1, 1]} : vector<32x192xf32> to vector<32x16xf32>
    %114 = vector.shape_cast %113 : vector<32x16xf32> to vector<2x16x16xf32>
    %115 = arith.truncf %114 : vector<2x16x16xf32> to vector<2x16x16xbf16>
    %116 = vector.extract_strided_slice %80 {offsets = [0, 80], sizes = [32, 16], strides = [1, 1]} : vector<32x192xf32> to vector<32x16xf32>
    %117 = vector.shape_cast %116 : vector<32x16xf32> to vector<2x16x16xf32>
    %118 = arith.truncf %117 : vector<2x16x16xf32> to vector<2x16x16xbf16>
    %119 = vector.extract_strided_slice %80 {offsets = [0, 144], sizes = [32, 16], strides = [1, 1]} : vector<32x192xf32> to vector<32x16xf32>
    %120 = vector.shape_cast %119 : vector<32x16xf32> to vector<2x16x16xf32>
    %121 = arith.truncf %120 : vector<2x16x16xf32> to vector<2x16x16xbf16>
    %cst_51 = arith.constant dense<0.000000e+00> : vector<2x16x16xf32>
    %122 = tpu.matmul %115, %118, %cst_51 {dimension_numbers = #tpu.dot_dimension_numbers<[2], [2], [1], [1], [0, 0, 0, 1, 1, 1], [0], [0]>} : vector<2x16x16xbf16>, vector<2x16x16xbf16>, vector<2x16x16xf32> -> vector<2x16x16xf32>
    %cst_52 = arith.constant dense<0xFF800000> : vector<2x16xf32>
    %123 = vector.multi_reduction <maximumf>, %122, %cst_52 [2] : vector<2x16x16xf32> to vector<2x16xf32>
    %124 = vector.shape_cast %123 : vector<2x16xf32> to vector<2x16x1xf32>
    %125 = vector.broadcast %124 : vector<2x16x1xf32> to vector<2x16x16xf32>
    %126 = arith.subf %122, %125 : vector<2x16x16xf32>
    %127 = math.exp %126 : vector<2x16x16xf32>
    %cst_53 = arith.constant dense<0.000000e+00> : vector<2x16xf32>
    %128 = vector.multi_reduction <add>, %127, %cst_53 [2] : vector<2x16x16xf32> to vector<2x16xf32>
    %129 = vector.shape_cast %128 : vector<2x16xf32> to vector<2x16x1xf32>
    %130 = tpu.reciprocal %129 {approx = true} : vector<2x16x1xf32> -> vector<2x16x1xf32>
    %131 = vector.broadcast %130 : vector<2x16x1xf32> to vector<2x16x16xf32>
    %132 = arith.mulf %127, %131 : vector<2x16x16xf32>
    %133 = arith.truncf %132 : vector<2x16x16xf32> to vector<2x16x16xbf16>
    %cst_54 = arith.constant dense<0.000000e+00> : vector<2x16x16xf32>
    %134 = tpu.matmul %133, %121, %cst_54 {dimension_numbers = #tpu.dot_dimension_numbers<[2], [1], [1], [2], [0, 0, 0, 1, 1, 2], [0], [0]>} : vector<2x16x16xbf16>, vector<2x16x16xbf16>, vector<2x16x16xf32> -> vector<2x16x16xf32>
    %135 = vector.shape_cast %134 : vector<2x16x16xf32> to vector<32x16xf32>
    %136 = arith.truncf %135 : vector<32x16xf32> to vector<32x16xbf16>
    %137 = vector.extract_strided_slice %82 {offsets = [16, 0], sizes = [16, 64], strides = [1, 1]} : vector<64x64xbf16> to vector<16x64xbf16>
    %cst_55 = arith.constant dense<0.000000e+00> : vector<32x64xf32>
    %138 = tpu.matmul %136, %137, %cst_55 {dimension_numbers = #tpu.dot_dimension_numbers<[1], [0], [0], [1], [0, 0, 1, 1], [], []>} : vector<32x16xbf16>, vector<16x64xbf16>, vector<32x64xf32> -> vector<32x64xf32>
    %139 = arith.addf %112, %138 : vector<32x64xf32>
    %140 = vector.extract_strided_slice %80 {offsets = [0, 32], sizes = [32, 16], strides = [1, 1]} : vector<32x192xf32> to vector<32x16xf32>
    %141 = vector.shape_cast %140 : vector<32x16xf32> to vector<2x16x16xf32>
    %142 = arith.truncf %141 : vector<2x16x16xf32> to vector<2x16x16xbf16>
    %143 = vector.extract_strided_slice %80 {offsets = [0, 96], sizes = [32, 16], strides = [1, 1]} : vector<32x192xf32> to vector<32x16xf32>
    %144 = vector.shape_cast %143 : vector<32x16xf32> to vector<2x16x16xf32>
    %145 = arith.truncf %144 : vector<2x16x16xf32> to vector<2x16x16xbf16>
    %146 = vector.extract_strided_slice %80 {offsets = [0, 160], sizes = [32, 16], strides = [1, 1]} : vector<32x192xf32> to vector<32x16xf32>
    %147 = vector.shape_cast %146 : vector<32x16xf32> to vector<2x16x16xf32>
    %148 = arith.truncf %147 : vector<2x16x16xf32> to vector<2x16x16xbf16>
    %cst_56 = arith.constant dense<0.000000e+00> : vector<2x16x16xf32>
    %149 = tpu.matmul %142, %145, %cst_56 {dimension_numbers = #tpu.dot_dimension_numbers<[2], [2], [1], [1], [0, 0, 0, 1, 1, 1], [0], [0]>} : vector<2x16x16xbf16>, vector<2x16x16xbf16>, vector<2x16x16xf32> -> vector<2x16x16xf32>
    %cst_57 = arith.constant dense<0xFF800000> : vector<2x16xf32>
    %150 = vector.multi_reduction <maximumf>, %149, %cst_57 [2] : vector<2x16x16xf32> to vector<2x16xf32>
    %151 = vector.shape_cast %150 : vector<2x16xf32> to vector<2x16x1xf32>
    %152 = vector.broadcast %151 : vector<2x16x1xf32> to vector<2x16x16xf32>
    %153 = arith.subf %149, %152 : vector<2x16x16xf32>
    %154 = math.exp %153 : vector<2x16x16xf32>
    %cst_58 = arith.constant dense<0.000000e+00> : vector<2x16xf32>
    %155 = vector.multi_reduction <add>, %154, %cst_58 [2] : vector<2x16x16xf32> to vector<2x16xf32>
    %156 = vector.shape_cast %155 : vector<2x16xf32> to vector<2x16x1xf32>
    %157 = tpu.reciprocal %156 {approx = true} : vector<2x16x1xf32> -> vector<2x16x1xf32>
    %158 = vector.broadcast %157 : vector<2x16x1xf32> to vector<2x16x16xf32>
    %159 = arith.mulf %154, %158 : vector<2x16x16xf32>
    %160 = arith.truncf %159 : vector<2x16x16xf32> to vector<2x16x16xbf16>
    %cst_59 = arith.constant dense<0.000000e+00> : vector<2x16x16xf32>
    %161 = tpu.matmul %160, %148, %cst_59 {dimension_numbers = #tpu.dot_dimension_numbers<[2], [1], [1], [2], [0, 0, 0, 1, 1, 2], [0], [0]>} : vector<2x16x16xbf16>, vector<2x16x16xbf16>, vector<2x16x16xf32> -> vector<2x16x16xf32>
    %162 = vector.shape_cast %161 : vector<2x16x16xf32> to vector<32x16xf32>
    %163 = arith.truncf %162 : vector<32x16xf32> to vector<32x16xbf16>
    %164 = vector.extract_strided_slice %82 {offsets = [32, 0], sizes = [16, 64], strides = [1, 1]} : vector<64x64xbf16> to vector<16x64xbf16>
    %cst_60 = arith.constant dense<0.000000e+00> : vector<32x64xf32>
    %165 = tpu.matmul %163, %164, %cst_60 {dimension_numbers = #tpu.dot_dimension_numbers<[1], [0], [0], [1], [0, 0, 1, 1], [], []>} : vector<32x16xbf16>, vector<16x64xbf16>, vector<32x64xf32> -> vector<32x64xf32>
    %166 = arith.addf %139, %165 : vector<32x64xf32>
    %167 = vector.extract_strided_slice %80 {offsets = [0, 48], sizes = [32, 16], strides = [1, 1]} : vector<32x192xf32> to vector<32x16xf32>
    %168 = vector.shape_cast %167 : vector<32x16xf32> to vector<2x16x16xf32>
    %169 = arith.truncf %168 : vector<2x16x16xf32> to vector<2x16x16xbf16>
    %170 = vector.extract_strided_slice %80 {offsets = [0, 112], sizes = [32, 16], strides = [1, 1]} : vector<32x192xf32> to vector<32x16xf32>
    %171 = vector.shape_cast %170 : vector<32x16xf32> to vector<2x16x16xf32>
    %172 = arith.truncf %171 : vector<2x16x16xf32> to vector<2x16x16xbf16>
    %173 = vector.extract_strided_slice %80 {offsets = [0, 176], sizes = [32, 16], strides = [1, 1]} : vector<32x192xf32> to vector<32x16xf32>
    %174 = vector.shape_cast %173 : vector<32x16xf32> to vector<2x16x16xf32>
    %175 = arith.truncf %174 : vector<2x16x16xf32> to vector<2x16x16xbf16>
    %cst_61 = arith.constant dense<0.000000e+00> : vector<2x16x16xf32>
    %176 = tpu.matmul %169, %172, %cst_61 {dimension_numbers = #tpu.dot_dimension_numbers<[2], [2], [1], [1], [0, 0, 0, 1, 1, 1], [0], [0]>} : vector<2x16x16xbf16>, vector<2x16x16xbf16>, vector<2x16x16xf32> -> vector<2x16x16xf32>
    %cst_62 = arith.constant dense<0xFF800000> : vector<2x16xf32>
    %177 = vector.multi_reduction <maximumf>, %176, %cst_62 [2] : vector<2x16x16xf32> to vector<2x16xf32>
    %178 = vector.shape_cast %177 : vector<2x16xf32> to vector<2x16x1xf32>
    %179 = vector.broadcast %178 : vector<2x16x1xf32> to vector<2x16x16xf32>
    %180 = arith.subf %176, %179 : vector<2x16x16xf32>
    %181 = math.exp %180 : vector<2x16x16xf32>
    %cst_63 = arith.constant dense<0.000000e+00> : vector<2x16xf32>
    %182 = vector.multi_reduction <add>, %181, %cst_63 [2] : vector<2x16x16xf32> to vector<2x16xf32>
    %183 = vector.shape_cast %182 : vector<2x16xf32> to vector<2x16x1xf32>
    %184 = tpu.reciprocal %183 {approx = true} : vector<2x16x1xf32> -> vector<2x16x1xf32>
    %185 = vector.broadcast %184 : vector<2x16x1xf32> to vector<2x16x16xf32>
    %186 = arith.mulf %181, %185 : vector<2x16x16xf32>
    %187 = arith.truncf %186 : vector<2x16x16xf32> to vector<2x16x16xbf16>
    %cst_64 = arith.constant dense<0.000000e+00> : vector<2x16x16xf32>
    %188 = tpu.matmul %187, %175, %cst_64 {dimension_numbers = #tpu.dot_dimension_numbers<[2], [1], [1], [2], [0, 0, 0, 1, 1, 2], [0], [0]>} : vector<2x16x16xbf16>, vector<2x16x16xbf16>, vector<2x16x16xf32> -> vector<2x16x16xf32>
    %189 = vector.shape_cast %188 : vector<2x16x16xf32> to vector<32x16xf32>
    %190 = arith.truncf %189 : vector<32x16xf32> to vector<32x16xbf16>
    %191 = vector.extract_strided_slice %82 {offsets = [48, 0], sizes = [16, 64], strides = [1, 1]} : vector<64x64xbf16> to vector<16x64xbf16>
    %cst_65 = arith.constant dense<0.000000e+00> : vector<32x64xf32>
    %192 = tpu.matmul %190, %191, %cst_65 {dimension_numbers = #tpu.dot_dimension_numbers<[1], [0], [0], [1], [0, 0, 1, 1], [], []>} : vector<32x16xbf16>, vector<16x64xbf16>, vector<32x64xf32> -> vector<32x64xf32>
    %193 = arith.addf %166, %192 : vector<32x64xf32>
    %194 = arith.addf %52, %193 : vector<32x64xf32>
    %c0_66 = arith.constant 0 : index
    %c0_67 = arith.constant 0 : index
    %c0_68 = arith.constant 0 : index
    %195 = vector.load %arg13[%c0_66, %c0_67, %c0_68] : memref<2x1x64xf32, #tpu.memory_space<vmem>>, vector<1x1x64xf32>
    %196 = vector.shape_cast %195 : vector<1x1x64xf32> to vector<1x64xf32>
    %c0_69 = arith.constant 0 : index
    %c0_70 = arith.constant 0 : index
    %c0_71 = arith.constant 0 : index
    %197 = vector.load %arg14[%c0_69, %c0_70, %c0_71] : memref<2x1x64xf32, #tpu.memory_space<vmem>>, vector<1x1x64xf32>
    %198 = vector.shape_cast %197 : vector<1x1x64xf32> to vector<1x64xf32>
    %cst_72 = arith.constant dense<0.000000e+00> : vector<32xf32>
    %199 = vector.multi_reduction <add>, %194, %cst_72 [1] : vector<32x64xf32> to vector<32xf32>
    %200 = vector.shape_cast %199 : vector<32xf32> to vector<32x1xf32>
    %cst_73 = arith.constant 6.400000e+01 : f32
    %201 = vector.broadcast %cst_73 : f32 to vector<32x1xf32>
    %202 = arith.divf %200, %201 : vector<32x1xf32>
    %203 = vector.broadcast %202 : vector<32x1xf32> to vector<32x64xf32>
    %204 = arith.subf %194, %203 : vector<32x64xf32>
    %205 = arith.mulf %204, %204 : vector<32x64xf32>
    %cst_74 = arith.constant dense<0.000000e+00> : vector<32xf32>
    %206 = vector.multi_reduction <add>, %205, %cst_74 [1] : vector<32x64xf32> to vector<32xf32>
    %207 = vector.shape_cast %206 : vector<32xf32> to vector<32x1xf32>
    %cst_75 = arith.constant 6.400000e+01 : f32
    %208 = vector.broadcast %cst_75 : f32 to vector<32x1xf32>
    %209 = arith.divf %207, %208 : vector<32x1xf32>
    %cst_76 = arith.constant 9.99999974E-6 : f32
    %210 = vector.broadcast %cst_76 : f32 to vector<32x1xf32>
    %211 = arith.addf %209, %210 : vector<32x1xf32>
    %212 = math.rsqrt %211 : vector<32x1xf32>
    %213 = vector.broadcast %212 : vector<32x1xf32> to vector<32x64xf32>
    %214 = arith.mulf %204, %213 : vector<32x64xf32>
    %215 = vector.broadcast %196 : vector<1x64xf32> to vector<32x64xf32>
    %216 = arith.mulf %214, %215 : vector<32x64xf32>
    %217 = vector.broadcast %198 : vector<1x64xf32> to vector<32x64xf32>
    %218 = arith.addf %216, %217 : vector<32x64xf32>
    %219 = arith.truncf %218 : vector<32x64xf32> to vector<32x64xbf16>
    %c0_77 = arith.constant 0 : index
    %c0_78 = arith.constant 0 : index
    %c0_79 = arith.constant 0 : index
    %220 = vector.load %arg15[%c0_77, %c0_78, %c0_79] : memref<2x64x128xbf16, #tpu.memory_space<vmem>>, vector<1x64x128xbf16>
    %221 = vector.shape_cast %220 : vector<1x64x128xbf16> to vector<64x128xbf16>
    %cst_80 = arith.constant dense<0.000000e+00> : vector<32x128xf32>
    %222 = tpu.matmul %219, %221, %cst_80 {dimension_numbers = #tpu.dot_dimension_numbers<[1], [0], [0], [1], [0, 0, 1, 1], [], []>} : vector<32x64xbf16>, vector<64x128xbf16>, vector<32x128xf32> -> vector<32x128xf32>
    %c0_81 = arith.constant 0 : index
    %c0_82 = arith.constant 0 : index
    %c0_83 = arith.constant 0 : index
    %223 = vector.load %arg16[%c0_81, %c0_82, %c0_83] : memref<2x1x128xf32, #tpu.memory_space<vmem>>, vector<1x1x128xf32>
    %224 = vector.shape_cast %223 : vector<1x1x128xf32> to vector<1x128xf32>
    %225 = vector.broadcast %224 : vector<1x128xf32> to vector<32x128xf32>
    %226 = arith.addf %222, %225 : vector<32x128xf32>
    %cst_84 = arith.constant 5.000000e-01 : f32
    %227 = vector.broadcast %cst_84 : f32 to vector<32x128xf32>
    %228 = arith.mulf %227, %226 : vector<32x128xf32>
    %cst_85 = arith.constant 0.707106769 : f32
    %229 = vector.broadcast %cst_85 : f32 to vector<32x128xf32>
    %230 = arith.mulf %226, %229 : vector<32x128xf32>
    %231 = math.erf %230 : vector<32x128xf32>
    %cst_86 = arith.constant 1.000000e+00 : f32
    %232 = vector.broadcast %cst_86 : f32 to vector<32x128xf32>
    %233 = arith.addf %232, %231 : vector<32x128xf32>
    %234 = arith.mulf %228, %233 : vector<32x128xf32>
    %235 = arith.truncf %234 : vector<32x128xf32> to vector<32x128xbf16>
    %c0_87 = arith.constant 0 : index
    %c0_88 = arith.constant 0 : index
    %c0_89 = arith.constant 0 : index
    %236 = vector.load %arg17[%c0_87, %c0_88, %c0_89] : memref<2x128x64xbf16, #tpu.memory_space<vmem>>, vector<1x128x64xbf16>
    %237 = vector.shape_cast %236 : vector<1x128x64xbf16> to vector<128x64xbf16>
    %cst_90 = arith.constant dense<0.000000e+00> : vector<32x64xf32>
    %238 = tpu.matmul %235, %237, %cst_90 {dimension_numbers = #tpu.dot_dimension_numbers<[1], [0], [0], [1], [0, 0, 1, 1], [], []>} : vector<32x128xbf16>, vector<128x64xbf16>, vector<32x64xf32> -> vector<32x64xf32>
    %c0_91 = arith.constant 0 : index
    %c0_92 = arith.constant 0 : index
    %c0_93 = arith.constant 0 : index
    %239 = vector.load %arg18[%c0_91, %c0_92, %c0_93] : memref<2x1x64xf32, #tpu.memory_space<vmem>>, vector<1x1x64xf32>
    %240 = vector.shape_cast %239 : vector<1x1x64xf32> to vector<1x64xf32>
    %241 = vector.broadcast %240 : vector<1x64xf32> to vector<32x64xf32>
    %242 = arith.addf %238, %241 : vector<32x64xf32>
    %243 = arith.addf %194, %242 : vector<32x64xf32>
    %c1 = arith.constant 1 : index
    %c0_94 = arith.constant 0 : index
    %c0_95 = arith.constant 0 : index
    %244 = vector.load %arg8[%c1, %c0_94, %c0_95] : memref<2x1x64xf32, #tpu.memory_space<vmem>>, vector<1x1x64xf32>
    %245 = vector.shape_cast %244 : vector<1x1x64xf32> to vector<1x64xf32>
    %c1_96 = arith.constant 1 : index
    %c0_97 = arith.constant 0 : index
    %c0_98 = arith.constant 0 : index
    %246 = vector.load %arg9[%c1_96, %c0_97, %c0_98] : memref<2x1x64xf32, #tpu.memory_space<vmem>>, vector<1x1x64xf32>
    %247 = vector.shape_cast %246 : vector<1x1x64xf32> to vector<1x64xf32>
    %cst_99 = arith.constant dense<0.000000e+00> : vector<32xf32>
    %248 = vector.multi_reduction <add>, %243, %cst_99 [1] : vector<32x64xf32> to vector<32xf32>
    %249 = vector.shape_cast %248 : vector<32xf32> to vector<32x1xf32>
    %cst_100 = arith.constant 6.400000e+01 : f32
    %250 = vector.broadcast %cst_100 : f32 to vector<32x1xf32>
    %251 = arith.divf %249, %250 : vector<32x1xf32>
    %252 = vector.broadcast %251 : vector<32x1xf32> to vector<32x64xf32>
    %253 = arith.subf %243, %252 : vector<32x64xf32>
    %254 = arith.mulf %253, %253 : vector<32x64xf32>
    %cst_101 = arith.constant dense<0.000000e+00> : vector<32xf32>
    %255 = vector.multi_reduction <add>, %254, %cst_101 [1] : vector<32x64xf32> to vector<32xf32>
    %256 = vector.shape_cast %255 : vector<32xf32> to vector<32x1xf32>
    %cst_102 = arith.constant 6.400000e+01 : f32
    %257 = vector.broadcast %cst_102 : f32 to vector<32x1xf32>
    %258 = arith.divf %256, %257 : vector<32x1xf32>
    %cst_103 = arith.constant 9.99999974E-6 : f32
    %259 = vector.broadcast %cst_103 : f32 to vector<32x1xf32>
    %260 = arith.addf %258, %259 : vector<32x1xf32>
    %261 = math.rsqrt %260 : vector<32x1xf32>
    %262 = vector.broadcast %261 : vector<32x1xf32> to vector<32x64xf32>
    %263 = arith.mulf %253, %262 : vector<32x64xf32>
    %264 = vector.broadcast %245 : vector<1x64xf32> to vector<32x64xf32>
    %265 = arith.mulf %263, %264 : vector<32x64xf32>
    %266 = vector.broadcast %247 : vector<1x64xf32> to vector<32x64xf32>
    %267 = arith.addf %265, %266 : vector<32x64xf32>
    %268 = arith.truncf %267 : vector<32x64xf32> to vector<32x64xbf16>
    %c1_104 = arith.constant 1 : index
    %c0_105 = arith.constant 0 : index
    %c0_106 = arith.constant 0 : index
    %269 = vector.load %arg10[%c1_104, %c0_105, %c0_106] : memref<2x64x192xbf16, #tpu.memory_space<vmem>>, vector<1x64x192xbf16>
    %270 = vector.shape_cast %269 : vector<1x64x192xbf16> to vector<64x192xbf16>
    %cst_107 = arith.constant dense<0.000000e+00> : vector<32x192xf32>
    %271 = tpu.matmul %268, %270, %cst_107 {dimension_numbers = #tpu.dot_dimension_numbers<[1], [0], [0], [1], [0, 0, 1, 1], [], []>} : vector<32x64xbf16>, vector<64x192xbf16>, vector<32x192xf32> -> vector<32x192xf32>
    %c1_108 = arith.constant 1 : index
    %c0_109 = arith.constant 0 : index
    %c0_110 = arith.constant 0 : index
    %272 = vector.load %arg11[%c1_108, %c0_109, %c0_110] : memref<2x64x64xbf16, #tpu.memory_space<vmem>>, vector<1x64x64xbf16>
    %273 = vector.shape_cast %272 : vector<1x64x64xbf16> to vector<64x64xbf16>
    %c1_111 = arith.constant 1 : index
    %c0_112 = arith.constant 0 : index
    %c0_113 = arith.constant 0 : index
    %274 = vector.load %arg12[%c1_111, %c0_112, %c0_113] : memref<2x1x64xf32, #tpu.memory_space<vmem>>, vector<1x1x64xf32>
    %275 = vector.shape_cast %274 : vector<1x1x64xf32> to vector<1x64xf32>
    %276 = vector.extract_strided_slice %271 {offsets = [0, 0], sizes = [32, 16], strides = [1, 1]} : vector<32x192xf32> to vector<32x16xf32>
    %277 = vector.shape_cast %276 : vector<32x16xf32> to vector<2x16x16xf32>
    %278 = arith.truncf %277 : vector<2x16x16xf32> to vector<2x16x16xbf16>
    %279 = vector.extract_strided_slice %271 {offsets = [0, 64], sizes = [32, 16], strides = [1, 1]} : vector<32x192xf32> to vector<32x16xf32>
    %280 = vector.shape_cast %279 : vector<32x16xf32> to vector<2x16x16xf32>
    %281 = arith.truncf %280 : vector<2x16x16xf32> to vector<2x16x16xbf16>
    %282 = vector.extract_strided_slice %271 {offsets = [0, 128], sizes = [32, 16], strides = [1, 1]} : vector<32x192xf32> to vector<32x16xf32>
    %283 = vector.shape_cast %282 : vector<32x16xf32> to vector<2x16x16xf32>
    %284 = arith.truncf %283 : vector<2x16x16xf32> to vector<2x16x16xbf16>
    %cst_114 = arith.constant dense<0.000000e+00> : vector<2x16x16xf32>
    %285 = tpu.matmul %278, %281, %cst_114 {dimension_numbers = #tpu.dot_dimension_numbers<[2], [2], [1], [1], [0, 0, 0, 1, 1, 1], [0], [0]>} : vector<2x16x16xbf16>, vector<2x16x16xbf16>, vector<2x16x16xf32> -> vector<2x16x16xf32>
    %cst_115 = arith.constant dense<0xFF800000> : vector<2x16xf32>
    %286 = vector.multi_reduction <maximumf>, %285, %cst_115 [2] : vector<2x16x16xf32> to vector<2x16xf32>
    %287 = vector.shape_cast %286 : vector<2x16xf32> to vector<2x16x1xf32>
    %288 = vector.broadcast %287 : vector<2x16x1xf32> to vector<2x16x16xf32>
    %289 = arith.subf %285, %288 : vector<2x16x16xf32>
    %290 = math.exp %289 : vector<2x16x16xf32>
    %cst_116 = arith.constant dense<0.000000e+00> : vector<2x16xf32>
    %291 = vector.multi_reduction <add>, %290, %cst_116 [2] : vector<2x16x16xf32> to vector<2x16xf32>
    %292 = vector.shape_cast %291 : vector<2x16xf32> to vector<2x16x1xf32>
    %293 = tpu.reciprocal %292 {approx = true} : vector<2x16x1xf32> -> vector<2x16x1xf32>
    %294 = vector.broadcast %293 : vector<2x16x1xf32> to vector<2x16x16xf32>
    %295 = arith.mulf %290, %294 : vector<2x16x16xf32>
    %296 = arith.truncf %295 : vector<2x16x16xf32> to vector<2x16x16xbf16>
    %cst_117 = arith.constant dense<0.000000e+00> : vector<2x16x16xf32>
    %297 = tpu.matmul %296, %284, %cst_117 {dimension_numbers = #tpu.dot_dimension_numbers<[2], [1], [1], [2], [0, 0, 0, 1, 1, 2], [0], [0]>} : vector<2x16x16xbf16>, vector<2x16x16xbf16>, vector<2x16x16xf32> -> vector<2x16x16xf32>
    %298 = vector.shape_cast %297 : vector<2x16x16xf32> to vector<32x16xf32>
    %299 = arith.truncf %298 : vector<32x16xf32> to vector<32x16xbf16>
    %300 = vector.extract_strided_slice %273 {offsets = [0, 0], sizes = [16, 64], strides = [1, 1]} : vector<64x64xbf16> to vector<16x64xbf16>
    %cst_118 = arith.constant dense<0.000000e+00> : vector<32x64xf32>
    %301 = tpu.matmul %299, %300, %cst_118 {dimension_numbers = #tpu.dot_dimension_numbers<[1], [0], [0], [1], [0, 0, 1, 1], [], []>} : vector<32x16xbf16>, vector<16x64xbf16>, vector<32x64xf32> -> vector<32x64xf32>
    %302 = vector.broadcast %275 : vector<1x64xf32> to vector<32x64xf32>
    %303 = arith.addf %302, %301 : vector<32x64xf32>
    %304 = vector.extract_strided_slice %271 {offsets = [0, 16], sizes = [32, 16], strides = [1, 1]} : vector<32x192xf32> to vector<32x16xf32>
    %305 = vector.shape_cast %304 : vector<32x16xf32> to vector<2x16x16xf32>
    %306 = arith.truncf %305 : vector<2x16x16xf32> to vector<2x16x16xbf16>
    %307 = vector.extract_strided_slice %271 {offsets = [0, 80], sizes = [32, 16], strides = [1, 1]} : vector<32x192xf32> to vector<32x16xf32>
    %308 = vector.shape_cast %307 : vector<32x16xf32> to vector<2x16x16xf32>
    %309 = arith.truncf %308 : vector<2x16x16xf32> to vector<2x16x16xbf16>
    %310 = vector.extract_strided_slice %271 {offsets = [0, 144], sizes = [32, 16], strides = [1, 1]} : vector<32x192xf32> to vector<32x16xf32>
    %311 = vector.shape_cast %310 : vector<32x16xf32> to vector<2x16x16xf32>
    %312 = arith.truncf %311 : vector<2x16x16xf32> to vector<2x16x16xbf16>
    %cst_119 = arith.constant dense<0.000000e+00> : vector<2x16x16xf32>
    %313 = tpu.matmul %306, %309, %cst_119 {dimension_numbers = #tpu.dot_dimension_numbers<[2], [2], [1], [1], [0, 0, 0, 1, 1, 1], [0], [0]>} : vector<2x16x16xbf16>, vector<2x16x16xbf16>, vector<2x16x16xf32> -> vector<2x16x16xf32>
    %cst_120 = arith.constant dense<0xFF800000> : vector<2x16xf32>
    %314 = vector.multi_reduction <maximumf>, %313, %cst_120 [2] : vector<2x16x16xf32> to vector<2x16xf32>
    %315 = vector.shape_cast %314 : vector<2x16xf32> to vector<2x16x1xf32>
    %316 = vector.broadcast %315 : vector<2x16x1xf32> to vector<2x16x16xf32>
    %317 = arith.subf %313, %316 : vector<2x16x16xf32>
    %318 = math.exp %317 : vector<2x16x16xf32>
    %cst_121 = arith.constant dense<0.000000e+00> : vector<2x16xf32>
    %319 = vector.multi_reduction <add>, %318, %cst_121 [2] : vector<2x16x16xf32> to vector<2x16xf32>
    %320 = vector.shape_cast %319 : vector<2x16xf32> to vector<2x16x1xf32>
    %321 = tpu.reciprocal %320 {approx = true} : vector<2x16x1xf32> -> vector<2x16x1xf32>
    %322 = vector.broadcast %321 : vector<2x16x1xf32> to vector<2x16x16xf32>
    %323 = arith.mulf %318, %322 : vector<2x16x16xf32>
    %324 = arith.truncf %323 : vector<2x16x16xf32> to vector<2x16x16xbf16>
    %cst_122 = arith.constant dense<0.000000e+00> : vector<2x16x16xf32>
    %325 = tpu.matmul %324, %312, %cst_122 {dimension_numbers = #tpu.dot_dimension_numbers<[2], [1], [1], [2], [0, 0, 0, 1, 1, 2], [0], [0]>} : vector<2x16x16xbf16>, vector<2x16x16xbf16>, vector<2x16x16xf32> -> vector<2x16x16xf32>
    %326 = vector.shape_cast %325 : vector<2x16x16xf32> to vector<32x16xf32>
    %327 = arith.truncf %326 : vector<32x16xf32> to vector<32x16xbf16>
    %328 = vector.extract_strided_slice %273 {offsets = [16, 0], sizes = [16, 64], strides = [1, 1]} : vector<64x64xbf16> to vector<16x64xbf16>
    %cst_123 = arith.constant dense<0.000000e+00> : vector<32x64xf32>
    %329 = tpu.matmul %327, %328, %cst_123 {dimension_numbers = #tpu.dot_dimension_numbers<[1], [0], [0], [1], [0, 0, 1, 1], [], []>} : vector<32x16xbf16>, vector<16x64xbf16>, vector<32x64xf32> -> vector<32x64xf32>
    %330 = arith.addf %303, %329 : vector<32x64xf32>
    %331 = vector.extract_strided_slice %271 {offsets = [0, 32], sizes = [32, 16], strides = [1, 1]} : vector<32x192xf32> to vector<32x16xf32>
    %332 = vector.shape_cast %331 : vector<32x16xf32> to vector<2x16x16xf32>
    %333 = arith.truncf %332 : vector<2x16x16xf32> to vector<2x16x16xbf16>
    %334 = vector.extract_strided_slice %271 {offsets = [0, 96], sizes = [32, 16], strides = [1, 1]} : vector<32x192xf32> to vector<32x16xf32>
    %335 = vector.shape_cast %334 : vector<32x16xf32> to vector<2x16x16xf32>
    %336 = arith.truncf %335 : vector<2x16x16xf32> to vector<2x16x16xbf16>
    %337 = vector.extract_strided_slice %271 {offsets = [0, 160], sizes = [32, 16], strides = [1, 1]} : vector<32x192xf32> to vector<32x16xf32>
    %338 = vector.shape_cast %337 : vector<32x16xf32> to vector<2x16x16xf32>
    %339 = arith.truncf %338 : vector<2x16x16xf32> to vector<2x16x16xbf16>
    %cst_124 = arith.constant dense<0.000000e+00> : vector<2x16x16xf32>
    %340 = tpu.matmul %333, %336, %cst_124 {dimension_numbers = #tpu.dot_dimension_numbers<[2], [2], [1], [1], [0, 0, 0, 1, 1, 1], [0], [0]>} : vector<2x16x16xbf16>, vector<2x16x16xbf16>, vector<2x16x16xf32> -> vector<2x16x16xf32>
    %cst_125 = arith.constant dense<0xFF800000> : vector<2x16xf32>
    %341 = vector.multi_reduction <maximumf>, %340, %cst_125 [2] : vector<2x16x16xf32> to vector<2x16xf32>
    %342 = vector.shape_cast %341 : vector<2x16xf32> to vector<2x16x1xf32>
    %343 = vector.broadcast %342 : vector<2x16x1xf32> to vector<2x16x16xf32>
    %344 = arith.subf %340, %343 : vector<2x16x16xf32>
    %345 = math.exp %344 : vector<2x16x16xf32>
    %cst_126 = arith.constant dense<0.000000e+00> : vector<2x16xf32>
    %346 = vector.multi_reduction <add>, %345, %cst_126 [2] : vector<2x16x16xf32> to vector<2x16xf32>
    %347 = vector.shape_cast %346 : vector<2x16xf32> to vector<2x16x1xf32>
    %348 = tpu.reciprocal %347 {approx = true} : vector<2x16x1xf32> -> vector<2x16x1xf32>
    %349 = vector.broadcast %348 : vector<2x16x1xf32> to vector<2x16x16xf32>
    %350 = arith.mulf %345, %349 : vector<2x16x16xf32>
    %351 = arith.truncf %350 : vector<2x16x16xf32> to vector<2x16x16xbf16>
    %cst_127 = arith.constant dense<0.000000e+00> : vector<2x16x16xf32>
    %352 = tpu.matmul %351, %339, %cst_127 {dimension_numbers = #tpu.dot_dimension_numbers<[2], [1], [1], [2], [0, 0, 0, 1, 1, 2], [0], [0]>} : vector<2x16x16xbf16>, vector<2x16x16xbf16>, vector<2x16x16xf32> -> vector<2x16x16xf32>
    %353 = vector.shape_cast %352 : vector<2x16x16xf32> to vector<32x16xf32>
    %354 = arith.truncf %353 : vector<32x16xf32> to vector<32x16xbf16>
    %355 = vector.extract_strided_slice %273 {offsets = [32, 0], sizes = [16, 64], strides = [1, 1]} : vector<64x64xbf16> to vector<16x64xbf16>
    %cst_128 = arith.constant dense<0.000000e+00> : vector<32x64xf32>
    %356 = tpu.matmul %354, %355, %cst_128 {dimension_numbers = #tpu.dot_dimension_numbers<[1], [0], [0], [1], [0, 0, 1, 1], [], []>} : vector<32x16xbf16>, vector<16x64xbf16>, vector<32x64xf32> -> vector<32x64xf32>
    %357 = arith.addf %330, %356 : vector<32x64xf32>
    %358 = vector.extract_strided_slice %271 {offsets = [0, 48], sizes = [32, 16], strides = [1, 1]} : vector<32x192xf32> to vector<32x16xf32>
    %359 = vector.shape_cast %358 : vector<32x16xf32> to vector<2x16x16xf32>
    %360 = arith.truncf %359 : vector<2x16x16xf32> to vector<2x16x16xbf16>
    %361 = vector.extract_strided_slice %271 {offsets = [0, 112], sizes = [32, 16], strides = [1, 1]} : vector<32x192xf32> to vector<32x16xf32>
    %362 = vector.shape_cast %361 : vector<32x16xf32> to vector<2x16x16xf32>
    %363 = arith.truncf %362 : vector<2x16x16xf32> to vector<2x16x16xbf16>
    %364 = vector.extract_strided_slice %271 {offsets = [0, 176], sizes = [32, 16], strides = [1, 1]} : vector<32x192xf32> to vector<32x16xf32>
    %365 = vector.shape_cast %364 : vector<32x16xf32> to vector<2x16x16xf32>
    %366 = arith.truncf %365 : vector<2x16x16xf32> to vector<2x16x16xbf16>
    %cst_129 = arith.constant dense<0.000000e+00> : vector<2x16x16xf32>
    %367 = tpu.matmul %360, %363, %cst_129 {dimension_numbers = #tpu.dot_dimension_numbers<[2], [2], [1], [1], [0, 0, 0, 1, 1, 1], [0], [0]>} : vector<2x16x16xbf16>, vector<2x16x16xbf16>, vector<2x16x16xf32> -> vector<2x16x16xf32>
    %cst_130 = arith.constant dense<0xFF800000> : vector<2x16xf32>
    %368 = vector.multi_reduction <maximumf>, %367, %cst_130 [2] : vector<2x16x16xf32> to vector<2x16xf32>
    %369 = vector.shape_cast %368 : vector<2x16xf32> to vector<2x16x1xf32>
    %370 = vector.broadcast %369 : vector<2x16x1xf32> to vector<2x16x16xf32>
    %371 = arith.subf %367, %370 : vector<2x16x16xf32>
    %372 = math.exp %371 : vector<2x16x16xf32>
    %cst_131 = arith.constant dense<0.000000e+00> : vector<2x16xf32>
    %373 = vector.multi_reduction <add>, %372, %cst_131 [2] : vector<2x16x16xf32> to vector<2x16xf32>
    %374 = vector.shape_cast %373 : vector<2x16xf32> to vector<2x16x1xf32>
    %375 = tpu.reciprocal %374 {approx = true} : vector<2x16x1xf32> -> vector<2x16x1xf32>
    %376 = vector.broadcast %375 : vector<2x16x1xf32> to vector<2x16x16xf32>
    %377 = arith.mulf %372, %376 : vector<2x16x16xf32>
    %378 = arith.truncf %377 : vector<2x16x16xf32> to vector<2x16x16xbf16>
    %cst_132 = arith.constant dense<0.000000e+00> : vector<2x16x16xf32>
    %379 = tpu.matmul %378, %366, %cst_132 {dimension_numbers = #tpu.dot_dimension_numbers<[2], [1], [1], [2], [0, 0, 0, 1, 1, 2], [0], [0]>} : vector<2x16x16xbf16>, vector<2x16x16xbf16>, vector<2x16x16xf32> -> vector<2x16x16xf32>
    %380 = vector.shape_cast %379 : vector<2x16x16xf32> to vector<32x16xf32>
    %381 = arith.truncf %380 : vector<32x16xf32> to vector<32x16xbf16>
    %382 = vector.extract_strided_slice %273 {offsets = [48, 0], sizes = [16, 64], strides = [1, 1]} : vector<64x64xbf16> to vector<16x64xbf16>
    %cst_133 = arith.constant dense<0.000000e+00> : vector<32x64xf32>
    %383 = tpu.matmul %381, %382, %cst_133 {dimension_numbers = #tpu.dot_dimension_numbers<[1], [0], [0], [1], [0, 0, 1, 1], [], []>} : vector<32x16xbf16>, vector<16x64xbf16>, vector<32x64xf32> -> vector<32x64xf32>
    %384 = arith.addf %357, %383 : vector<32x64xf32>
    %385 = arith.addf %243, %384 : vector<32x64xf32>
    %c1_134 = arith.constant 1 : index
    %c0_135 = arith.constant 0 : index
    %c0_136 = arith.constant 0 : index
    %386 = vector.load %arg13[%c1_134, %c0_135, %c0_136] : memref<2x1x64xf32, #tpu.memory_space<vmem>>, vector<1x1x64xf32>
    %387 = vector.shape_cast %386 : vector<1x1x64xf32> to vector<1x64xf32>
    %c1_137 = arith.constant 1 : index
    %c0_138 = arith.constant 0 : index
    %c0_139 = arith.constant 0 : index
    %388 = vector.load %arg14[%c1_137, %c0_138, %c0_139] : memref<2x1x64xf32, #tpu.memory_space<vmem>>, vector<1x1x64xf32>
    %389 = vector.shape_cast %388 : vector<1x1x64xf32> to vector<1x64xf32>
    %cst_140 = arith.constant dense<0.000000e+00> : vector<32xf32>
    %390 = vector.multi_reduction <add>, %385, %cst_140 [1] : vector<32x64xf32> to vector<32xf32>
    %391 = vector.shape_cast %390 : vector<32xf32> to vector<32x1xf32>
    %cst_141 = arith.constant 6.400000e+01 : f32
    %392 = vector.broadcast %cst_141 : f32 to vector<32x1xf32>
    %393 = arith.divf %391, %392 : vector<32x1xf32>
    %394 = vector.broadcast %393 : vector<32x1xf32> to vector<32x64xf32>
    %395 = arith.subf %385, %394 : vector<32x64xf32>
    %396 = arith.mulf %395, %395 : vector<32x64xf32>
    %cst_142 = arith.constant dense<0.000000e+00> : vector<32xf32>
    %397 = vector.multi_reduction <add>, %396, %cst_142 [1] : vector<32x64xf32> to vector<32xf32>
    %398 = vector.shape_cast %397 : vector<32xf32> to vector<32x1xf32>
    %cst_143 = arith.constant 6.400000e+01 : f32
    %399 = vector.broadcast %cst_143 : f32 to vector<32x1xf32>
    %400 = arith.divf %398, %399 : vector<32x1xf32>
    %cst_144 = arith.constant 9.99999974E-6 : f32
    %401 = vector.broadcast %cst_144 : f32 to vector<32x1xf32>
    %402 = arith.addf %400, %401 : vector<32x1xf32>
    %403 = math.rsqrt %402 : vector<32x1xf32>
    %404 = vector.broadcast %403 : vector<32x1xf32> to vector<32x64xf32>
    %405 = arith.mulf %395, %404 : vector<32x64xf32>
    %406 = vector.broadcast %387 : vector<1x64xf32> to vector<32x64xf32>
    %407 = arith.mulf %405, %406 : vector<32x64xf32>
    %408 = vector.broadcast %389 : vector<1x64xf32> to vector<32x64xf32>
    %409 = arith.addf %407, %408 : vector<32x64xf32>
    %410 = arith.truncf %409 : vector<32x64xf32> to vector<32x64xbf16>
    %c1_145 = arith.constant 1 : index
    %c0_146 = arith.constant 0 : index
    %c0_147 = arith.constant 0 : index
    %411 = vector.load %arg15[%c1_145, %c0_146, %c0_147] : memref<2x64x128xbf16, #tpu.memory_space<vmem>>, vector<1x64x128xbf16>
    %412 = vector.shape_cast %411 : vector<1x64x128xbf16> to vector<64x128xbf16>
    %cst_148 = arith.constant dense<0.000000e+00> : vector<32x128xf32>
    %413 = tpu.matmul %410, %412, %cst_148 {dimension_numbers = #tpu.dot_dimension_numbers<[1], [0], [0], [1], [0, 0, 1, 1], [], []>} : vector<32x64xbf16>, vector<64x128xbf16>, vector<32x128xf32> -> vector<32x128xf32>
    %c1_149 = arith.constant 1 : index
    %c0_150 = arith.constant 0 : index
    %c0_151 = arith.constant 0 : index
    %414 = vector.load %arg16[%c1_149, %c0_150, %c0_151] : memref<2x1x128xf32, #tpu.memory_space<vmem>>, vector<1x1x128xf32>
    %415 = vector.shape_cast %414 : vector<1x1x128xf32> to vector<1x128xf32>
    %416 = vector.broadcast %415 : vector<1x128xf32> to vector<32x128xf32>
    %417 = arith.addf %413, %416 : vector<32x128xf32>
    %cst_152 = arith.constant 5.000000e-01 : f32
    %418 = vector.broadcast %cst_152 : f32 to vector<32x128xf32>
    %419 = arith.mulf %418, %417 : vector<32x128xf32>
    %cst_153 = arith.constant 0.707106769 : f32
    %420 = vector.broadcast %cst_153 : f32 to vector<32x128xf32>
    %421 = arith.mulf %417, %420 : vector<32x128xf32>
    %422 = math.erf %421 : vector<32x128xf32>
    %cst_154 = arith.constant 1.000000e+00 : f32
    %423 = vector.broadcast %cst_154 : f32 to vector<32x128xf32>
    %424 = arith.addf %423, %422 : vector<32x128xf32>
    %425 = arith.mulf %419, %424 : vector<32x128xf32>
    %426 = arith.truncf %425 : vector<32x128xf32> to vector<32x128xbf16>
    %c1_155 = arith.constant 1 : index
    %c0_156 = arith.constant 0 : index
    %c0_157 = arith.constant 0 : index
    %427 = vector.load %arg17[%c1_155, %c0_156, %c0_157] : memref<2x128x64xbf16, #tpu.memory_space<vmem>>, vector<1x128x64xbf16>
    %428 = vector.shape_cast %427 : vector<1x128x64xbf16> to vector<128x64xbf16>
    %cst_158 = arith.constant dense<0.000000e+00> : vector<32x64xf32>
    %429 = tpu.matmul %426, %428, %cst_158 {dimension_numbers = #tpu.dot_dimension_numbers<[1], [0], [0], [1], [0, 0, 1, 1], [], []>} : vector<32x128xbf16>, vector<128x64xbf16>, vector<32x64xf32> -> vector<32x64xf32>
    %c1_159 = arith.constant 1 : index
    %c0_160 = arith.constant 0 : index
    %c0_161 = arith.constant 0 : index
    %430 = vector.load %arg18[%c1_159, %c0_160, %c0_161] : memref<2x1x64xf32, #tpu.memory_space<vmem>>, vector<1x1x64xf32>
    %431 = vector.shape_cast %430 : vector<1x1x64xf32> to vector<1x64xf32>
    %432 = vector.broadcast %431 : vector<1x64xf32> to vector<32x64xf32>
    %433 = arith.addf %429, %432 : vector<32x64xf32>
    %434 = arith.addf %385, %433 : vector<32x64xf32>
    %c0_162 = arith.constant 0 : index
    %c0_163 = arith.constant 0 : index
    %435 = vector.load %arg19[%c0_162, %c0_163] : memref<1x64xf32, #tpu.memory_space<vmem>>, vector<1x64xf32>
    %c0_164 = arith.constant 0 : index
    %c0_165 = arith.constant 0 : index
    %436 = vector.load %arg20[%c0_164, %c0_165] : memref<1x64xf32, #tpu.memory_space<vmem>>, vector<1x64xf32>
    %cst_166 = arith.constant dense<0.000000e+00> : vector<32xf32>
    %437 = vector.multi_reduction <add>, %434, %cst_166 [1] : vector<32x64xf32> to vector<32xf32>
    %438 = vector.shape_cast %437 : vector<32xf32> to vector<32x1xf32>
    %cst_167 = arith.constant 6.400000e+01 : f32
    %439 = vector.broadcast %cst_167 : f32 to vector<32x1xf32>
    %440 = arith.divf %438, %439 : vector<32x1xf32>
    %441 = vector.broadcast %440 : vector<32x1xf32> to vector<32x64xf32>
    %442 = arith.subf %434, %441 : vector<32x64xf32>
    %443 = arith.mulf %442, %442 : vector<32x64xf32>
    %cst_168 = arith.constant dense<0.000000e+00> : vector<32xf32>
    %444 = vector.multi_reduction <add>, %443, %cst_168 [1] : vector<32x64xf32> to vector<32xf32>
    %445 = vector.shape_cast %444 : vector<32xf32> to vector<32x1xf32>
    %cst_169 = arith.constant 6.400000e+01 : f32
    %446 = vector.broadcast %cst_169 : f32 to vector<32x1xf32>
    %447 = arith.divf %445, %446 : vector<32x1xf32>
    %cst_170 = arith.constant 9.99999974E-6 : f32
    %448 = vector.broadcast %cst_170 : f32 to vector<32x1xf32>
    %449 = arith.addf %447, %448 : vector<32x1xf32>
    %450 = math.rsqrt %449 : vector<32x1xf32>
    %451 = vector.broadcast %450 : vector<32x1xf32> to vector<32x64xf32>
    %452 = arith.mulf %442, %451 : vector<32x64xf32>
    %453 = vector.broadcast %435 : vector<1x64xf32> to vector<32x64xf32>
    %454 = arith.mulf %452, %453 : vector<32x64xf32>
    %455 = vector.broadcast %436 : vector<1x64xf32> to vector<32x64xf32>
    %456 = arith.addf %454, %455 : vector<32x64xf32>
    %c0_171 = arith.constant 0 : index
    %c0_172 = arith.constant 0 : index
    %457 = vector.load %arg21[%c0_171, %c0_172] : memref<32x64xf32, #tpu.memory_space<vmem>>, vector<32x64xf32>
    tpu.vector_store %arg21[%c0_171, %c0_172], %456 {strides = array<i32>} : memref<32x64xf32, #tpu.memory_space<vmem>>, vector<32x64xf32>,
    return
  }
}

</mosaic_0001>

<bundles_post_ra>
// kernel: vit_forward.1
= control target key start
LH: loop header
LB: loop body
LE: loop exit
PB: predicated region body
PF: predicated region fallthrough
CT: control target
= control target key end

     0   :  { %vm75_vm0 = vcmask 523264   ;;  %vm4849_vm1 = vmmov 0   ;;  %vm526_vm2 = vcmask 130048   ;;  %s4851_s23 = smov 112   ;;  %s4853_s25 = smov 32   ;;  %s5709_s0 = inlined_call_operand.vmem [shape: f32[32,64], index: 0, kind: input, shape index: {}]   ;;  %s5710_s4 = inlined_call_operand.vmem [shape: bf16[64,64], index: 4, kind: input, shape index: {}]   ;;  %s5711_s2 = inlined_call_operand.vmem [shape: f32[1,64], index: 2, kind: input, shape index: {}]   ;;  %s5712_s3 = inlined_call_operand.vmem [shape: f32[1,64], index: 3, kind: input, shape index: {}]   ;;  %s5713_s5 = inlined_call_operand.vmem [shape: f32[1,64], index: 5, kind: input, shape index: {}]   ;;  %s5714_s6 = inlined_call_operand.vmem [shape: f32[1,64], index: 6, kind: input, shape index: {}]   ;;  %s5715_s7 = inlined_call_operand.vmem [shape: f32[1,64], index: 7, kind: input, shape index: {}]   ;;  %s5716_s1 = inlined_call_operand.vmem [shape: f32[32,64], index: 1, kind: input, shape index: {}]   ;;  %s5717_s10 = inlined_call_operand.vmem [shape: bf16[2,64,192], index: 10, kind: input, shape index: {}]   ;;  %s5718_s8 = inlined_call_operand.vmem [shape: f32[2,1,64], index: 8, kind: input, shape index: {}]   ;;  %s5719_s9 = inlined_call_operand.vmem [shape: f32[2,1,64], index: 9, kind: input, shape index: {}]   ;;  %s5720_s11 = inlined_call_operand.vmem [shape: bf16[2,64,64], index: 11, kind: input, shape index: {}]   ;;  %s5721_s12 = inlined_call_operand.vmem [shape: f32[2,1,64], index: 12, kind: input, shape index: {}]   ;;  %s5722_s15 = inlined_call_operand.vmem [shape: bf16[2,64,128], index: 15, kind: input, shape index: {}]   ;;  %s5723_s17 = inlined_call_operand.vmem [shape: bf16[2,128,64], index: 17, kind: input, shape index: {}]   ;;  %s5724_s13 = inlined_call_operand.vmem [shape: f32[2,1,64], index: 13, kind: input, shape index: {}]   ;;  %s5725_s14 = inlined_call_operand.vmem [shape: f32[2,1,64], index: 14, kind: input, shape index: {}]   ;;  %s5726_s16 = inlined_call_operand.vmem [shape: f32[2,1,128], index: 16, kind: input, shape index: {}]   ;;  %s5727_s18 = inlined_call_operand.vmem [shape: f32[2,1,64], index: 18, kind: input, shape index: {}]   ;;  %s5728_s19 = inlined_call_operand.vmem [shape: f32[1,64], index: 19, kind: input, shape index: {}]   ;;  %s5729_s20 = inlined_call_operand.vmem [shape: f32[1,64], index: 20, kind: input, shape index: {}]   ;;  %s5730_s21 = inlined_call_operand.vmem [shape: f32[32,64], index: 21, kind: output, shape index: {}]  }
   0x1   :  { %5733 = sst [smem:[#allocation2_spill]] %s5709_s0 }
   0x2   :  { %5734 = sst [smem:[#allocation3_spill]] %s5710_s4  ;;  %s5739_s26 = sld [smem:[#allocation2_spill]] }
   0x3   :  { %5735 = sst [smem:[#allocation4_spill]] %s5711_s2  ;;  %s5740_s22 = sld [smem:[#allocation3_spill]] }
   0x4   :  { %5736 = sst [smem:[#allocation5_spill]] %s5712_s3  ;;  %s5741_s28 = sld [smem:[#allocation4_spill]] }
   0x5   :  { %5737 = sst [smem:[#allocation6_spill]] %s5713_s5  ;;  %s5742_s5 = sld [smem:[#allocation5_spill]] }
   0x6   :  { %5738 = sst [smem:[#allocation7_spill]] %s5714_s6  ;;  %s4852_s4 = smov 48  }
   0x7   :  { %s5744_s24 = sld [smem:[#allocation7_spill]] }
   0x8   :  { %v69_v0 = vld [vmem:[%s5739_s26] sm:$0xff]  ;;  %v71_v1 = vld [vmem:[%s5739_s26 + $0x10] sm:$0xff]  ;;  %v70_v2 = vld [vmem:[%s5739_s26 + $0x8] sm:$0xff] }
   0x9   :  { %v76_v3 = vsel %vm75_vm0, %v69_v0, 0.0  ;;  %v82_v4 = vsel %vm75_vm0, %v71_v1, 0.0  ;;  %v72_v5 = vld [vmem:[%s5739_s26 + $0x18] sm:$0xff]  ;;  %v79_v6 = vsel %vm75_vm0, %v70_v2, 0.0  ;;  %v4587_v28 = vld [vmem:[%s5740_s22] sm:$0xff]   ;;  %v4588_v29 = vld [vmem:[%s5740_s22 + $0x8] sm:$0xff]  }
   0xa   :  { %77 = vadd.xlane.f32.xlu0 %v76_v3  ;;  %83 = vadd.xlane.f32.xlu1 %v82_v4  ;;  %v85_v7 = vsel %vm75_vm0, %v72_v5, 0.0  ;;  %v4589_v30 = vld [vmem:[%s5740_s22 + $0x10] sm:$0xff]   ;;  %v4590_v31 = vld [vmem:[%s5740_s22 + $0x18] sm:$0xff]   ;;  %v3925_v46 = vld [vmem:[%s5741_s28] ss:$0 sm:$0xff]  ;;  %s5743_s22 = sld [smem:[#allocation6_spill]] }
   0xb   :  { %4229 = vmatprep.subr.bf16.mxu1 %v4587_v28  ;;  %v3926_v51 = vld [vmem:[%s5742_s5] ss:$0 sm:$0xff]  ;;  %s4854_s26 = smov 96   ;;  %s4855_s28 = smov 16  }
   0xc   :  { %4230 = vmatpush3.bf16.msra.mxu1 %v4587_v28 }
   0xd   :  { %4231 = vmatprep.subr.bf16.mxu1 %v4588_v29 }
   0xe   :  { %80 = vadd.xlane.f32.xlu0 %v79_v6  ;;  %86 = vadd.xlane.f32.xlu1 %v85_v7 }
  0x10   :  { %4232 = vmatpush3.bf16.msra.mxu1 %v4588_v29 }
  0x11   :  { %4233 = vmatprep.subr.bf16.mxu1 %v4589_v30 }
  0x14   :  { %4234 = vmatpush3.bf16.msra.mxu1 %v4589_v30 }
  0x15   :  { %4235 = vmatprep.subr.bf16.mxu1 %v4590_v31 }
  0x18   :  { %4236 = vmatpush3.bf16.msra.mxu1 %v4590_v31 }
  0x97   :  { %v78_v8 = vpop.xlane.xlu0 %77  ;;  %v84_v9 = vpop.xlane.xlu1 %83 }
  0x98   :  { %v89_v10 = vmul.f32 0.015625, %v78_v8  ;;  %v91_v11 = vmul.f32 0.015625, %v84_v9 }
  0x9a   :  { %v93_v12 = vsub.f32 %v69_v0, %v89_v10  ;;  %v95_v13 = vsub.f32 %v71_v1, %v91_v11  ;;  %v3927_v0 = vld [vmem:[%s5743_s22] ss:$0 sm:$0xff]  ;;  %s4850_s22 = smov 64  }
  0x9b   :  { %v81_v14 = vpop.xlane.xlu0 %80  ;;  %v87_v15 = vpop.xlane.xlu1 %86 }
  0x9c   :  { %v90_v16 = vmul.f32 0.015625, %v81_v14  ;;  %v92_v17 = vmul.f32 0.015625, %v87_v15  ;;  %v97_v18 = vmul.f32 %v93_v12, %v93_v12  ;;  %v99_v19 = vmul.f32 %v95_v13, %v95_v13 }
  0x9e   :  { %v94_v20 = vsub.f32 %v70_v2, %v90_v16  ;;  %v96_v21 = vsub.f32 %v72_v5, %v92_v17  ;;  %v101_v22 = vsel %vm75_vm0, %v97_v18, 0.0  ;;  %v107_v23 = vsel %vm75_vm0, %v99_v19, 0.0 }
  0x9f   :  { %102 = vadd.xlane.f32.xlu0 %v101_v22 }
  0xa0   :  { %v98_v24 = vmul.f32 %v94_v20, %v94_v20  ;;  %v100_v25 = vmul.f32 %v96_v21, %v96_v21 }
  0xa2   :  { %v104_v26 = vsel %vm75_vm0, %v98_v24, 0.0  ;;  %v110_v27 = vsel %vm75_vm0, %v100_v25, 0.0 }
  0xa3   :  { %108 = vadd.xlane.f32.xlu0 %v107_v23  ;;  %105 = vadd.xlane.f32.xlu1 %v104_v26 }
  0xa7   :  { %111 = vadd.xlane.f32.xlu1 %v110_v27 }
 0x12c   :  { %v103_v32 = vpop.xlane.xlu0 %102 }
 0x12d   :  { %v113_v33 = vmul.f32 0.015625, %v103_v32 }
 0x12f   :  { %v117_v34 = vadd.f32 1e-05, %v113_v33 }
 0x130   :  { %v106_v35 = vpop.xlane.xlu1 %105  ;;  %v109_v36 = vpop.xlane.xlu0 %108 }
 0x131   :  { %4647 = vrsqrt.f32 %v117_v34  ;;  %v114_v37 = vmul.f32 0.015625, %v106_v35  ;;  %v115_v38 = vmul.f32 0.015625, %v109_v36 }
 0x133   :  { %v118_v39 = vadd.f32 1e-05, %v114_v37  ;;  %v119_v40 = vadd.f32 1e-05, %v115_v38 }
 0x134   :  { %v112_v41 = vpop.xlane.xlu1 %111 }
 0x135   :  { %4649 = vrsqrt.f32 %v118_v39  ;;  %v116_v42 = vmul.f32 0.015625, %v112_v41 }
 0x136   :  { %4651 = vrsqrt.f32 %v119_v40 }
 0x137   :  { %v120_v43 = vadd.f32 1e-05, %v116_v42 }
 0x139   :  { %4653 = vrsqrt.f32 %v120_v43 }
 0x13b   :  { %v4648_v44 = vpop.eup %4647 }
 0x13c   :  { %v125_v45 = vmul.f32 %v4648_v44, %v93_v12 }
 0x13e   :  { %v135_v50 = vmul.f32 %v3925_v46, %v125_v45 }
 0x13f   :  { %v4650_v47 = vpop.eup %4649 }
 0x140   :  { %v4652_v48 = vpop.eup %4651  ;;  %v126_v49 = vmul.f32 %v4650_v47, %v94_v20  ;;  %v145_v55 = vadd.f32 %v3926_v51, %v135_v50 }
 0x141   :  { %v127_v52 = vmul.f32 %v4652_v48, %v95_v13 }
 0x142   :  { %v136_v53 = vmul.f32 %v3925_v46, %v126_v49  ;;  %v3935_v49 = vld [vmem:[%s5715_s7] ss:$0 sm:$0xff]  ;;  %s4856_s7 = smov 80  }
 0x143   :  { %v4654_v54 = vpop.eup %4653  ;;  %v137_v58 = vmul.f32 %v3925_v46, %v127_v52 }
 0x144   :  { %v146_v56 = vadd.f32 %v3926_v51, %v136_v53  ;;  %v128_v57 = vmul.f32 %v4654_v54, %v96_v21  ;;  %v319_v53 = vld [vmem:[%s5716_s1] sm:$0xff] }
 0x145   :  { %v147_v61 = vadd.f32 %v3926_v51, %v137_v58  ;;  %v320_v58 = vld [vmem:[%s5716_s1 + $0x8] sm:$0xff] }
 0x146   :  { %v149_v59 = vpack.c.bf16 %v146_v56, %v145_v55  ;;  %v138_v60 = vmul.f32 %v3925_v46, %v128_v57  ;;  %v3934_v46 = vld [vmem:[%s5744_s24] ss:$0 sm:$0xff] }
 0x148   :  { %4237 = vmatprep.mubr.msk.bf16.mxu1 %vm75_vm0, %v149_v59  ;;  %v148_v62 = vadd.f32 %v3926_v51, %v138_v60 }
 0x14a   :  { %v150_v63 = vpack.c.bf16 %v148_v62, %v147_v61 }
 0x14c   :  { %4238 = vmatmul.mubr.msk.bf16.vlgmr.msra.gmra.mrb[0].mxu1 %vm75_vm0, %v150_v63  ;;  %v321_v63 = vld [vmem:[%s5716_s1 + $0x10] sm:$0xff] }
 0x21f   :  { %v4239_v1 = vpop.f32.mrb[0].mxu1 }
 0x220   :  { %v230_v2 = vpop.f32.mrb[1].mxu1  ;;  %v239_v6 = vadd.f32 %v4239_v1, %v3927_v0 }
 0x221   :  { %v231_v3 = vadd.f32 %v3927_v0, %v230_v2  ;;  %v4240_v4 = vpop.f32.mrb[2].mxu1 }
 0x222   :  { %v233_v5 = vpop.f32.mrb[3].mxu1  ;;  %v242_v9 = vadd.f32 %v4240_v4, %v3927_v0  ;;  %v253_v11 = vsel %vm75_vm0, %v239_v6, 0.0  ;;  %v322_v4 = vld [vmem:[%s5716_s1 + $0x18] sm:$0xff] }
 0x223   :  { %v234_v7 = vadd.f32 %v3927_v0, %v233_v5  ;;  %v247_v8 = vsel %vm75_vm0, %v231_v3, 0.0 }
 0x224   :  { %248 = vadd.xlane.f32.xlu0 %v247_v8  ;;  %v256_v12 = vsel %vm75_vm0, %v242_v9, 0.0 }
 0x225   :  { %v250_v10 = vsel %vm75_vm0, %v234_v7, 0.0 }
 0x226   :  { %251 = vadd.xlane.f32.xlu1 %v250_v10 }
 0x228   :  { %254 = vadd.xlane.f32.xlu0 %v253_v11 }
 0x22a   :  { %257 = vadd.xlane.f32.xlu1 %v256_v12 }
 0x2b1   :  { %v249_v13 = vpop.xlane.xlu0 %248 }
 0x2b2   :  { %v259_v14 = vmul.f32 0.015625, %v249_v13 }
 0x2b3   :  { %v252_v15 = vpop.xlane.xlu1 %251 }
 0x2b4   :  { %v263_v16 = vsub.f32 %v231_v3, %v259_v14  ;;  %v260_v17 = vmul.f32 0.015625, %v252_v15 }
 0x2b5   :  { %v255_v18 = vpop.xlane.xlu0 %254 }
 0x2b6   :  { %v264_v19 = vsub.f32 %v234_v7, %v260_v17  ;;  %v261_v20 = vmul.f32 0.015625, %v255_v18  ;;  %v267_v21 = vmul.f32 %v263_v16, %v263_v16 }
 0x2b7   :  { %v258_v22 = vpop.xlane.xlu1 %257 }
 0x2b8   :  { %v265_v23 = vsub.f32 %v239_v6, %v261_v20  ;;  %v262_v24 = vmul.f32 0.015625, %v258_v22  ;;  %v271_v25 = vsel %vm75_vm0, %v267_v21, 0.0  ;;  %v268_v26 = vmul.f32 %v264_v19, %v264_v19 }
 0x2b9   :  { %272 = vadd.xlane.f32.xlu0 %v271_v25 }
 0x2ba   :  { %v266_v27 = vsub.f32 %v242_v9, %v262_v24  ;;  %v274_v28 = vsel %vm75_vm0, %v268_v26, 0.0  ;;  %v269_v29 = vmul.f32 %v265_v23, %v265_v23 }
 0x2bb   :  { %275 = vadd.xlane.f32.xlu1 %v274_v28 }
 0x2bc   :  { %v277_v30 = vsel %vm75_vm0, %v269_v29, 0.0  ;;  %v270_v31 = vmul.f32 %v266_v27, %v266_v27 }
 0x2bd   :  { %278 = vadd.xlane.f32.xlu0 %v277_v30 }
 0x2be   :  { %v280_v32 = vsel %vm75_vm0, %v270_v31, 0.0  ;;  %v4593_v31 = vld [vmem:[%s5717_s10 + $0x4] ss:$8 sps:$4 sm:$0xff]  }
 0x2bf   :  { %281 = vadd.xlane.f32.xlu1 %v280_v32  ;;  %v4591_v32 = vld [vmem:[%s5717_s10] ss:$8 sps:$4 sm:$0xff]   ;;  %457 = vmatprep.subr.bf16.mxu1 %v4593_v31 }
 0x2c0   :  { %458 = vmatpush1.bf16.msra.mxu1 %v4591_v32 }
 0x346   :  { %v273_v33 = vpop.xlane.xlu0 %272 }
 0x347   :  { %v283_v34 = vmul.f32 0.015625, %v273_v33  ;;  %v4596_v33 = vld [vmem:[%s5717_s10 + $0x14] ss:$8 sps:$4 sm:$0xff]  }
 0x348   :  { %v276_v35 = vpop.xlane.xlu1 %275  ;;  %459 = vmatprep.subr.bf16.mxu1 %v4596_v33 }
 0x349   :  { %v287_v36 = vadd.f32 1e-05, %v283_v34  ;;  %v284_v37 = vmul.f32 0.015625, %v276_v35  ;;  %v4594_v34 = vld [vmem:[%s5717_s10 + $0x10] ss:$8 sps:$4 sm:$0xff]  }
 0x34a   :  { %v279_v38 = vpop.xlane.xlu0 %278  ;;  %460 = vmatpush1.bf16.msra.mxu1 %v4594_v34  ;;  %v4599_v35 = vld [vmem:[%s5717_s10 + $0x24] ss:$8 sps:$4 sm:$0xff]  }
 0x34b   :  { %4655 = vrsqrt.f32 %v287_v36  ;;  %v288_v39 = vadd.f32 1e-05, %v284_v37  ;;  %v285_v40 = vmul.f32 0.015625, %v279_v38  ;;  %v4597_v36 = vld [vmem:[%s5717_s10 + $0x20] ss:$8 sps:$4 sm:$0xff]   ;;  %461 = vmatprep.subr.bf16.mxu1 %v4599_v35 }
 0x34c   :  { %v282_v41 = vpop.xlane.xlu1 %281  ;;  %v4600_v37 = vld [vmem:[%s5717_s10 + $0x30] ss:$8 sps:$4 sm:$0xff]   ;;  %v4602_v38 = vld [vmem:[%s5717_s10 + $0x34] ss:$8 sps:$4 sm:$0xff]  }
 0x34d   :  { %4657 = vrsqrt.f32 %v288_v39  ;;  %v289_v42 = vadd.f32 1e-05, %v285_v40  ;;  %v286_v43 = vmul.f32 0.015625, %v282_v41  ;;  %v4847_v39 = vmov 0  }
 0x34e   :  { %462 = vmatpush1.bf16.msra.mxu1 %v4597_v36  ;;  %489 = vmatprep.mubr.bf16.mxu1 %v4847_v39 }
 0x34f   :  { %4659 = vrsqrt.f32 %v289_v42  ;;  %v290_v44 = vadd.f32 1e-05, %v286_v43  ;;  %463 = vmatprep.subr.bf16.mxu1 %v4602_v38 }
 0x351   :  { %4661 = vrsqrt.f32 %v290_v44 }
 0x352   :  { %464 = vmatpush1.bf16.msra.mxu1 %v4600_v37 }
 0x355   :  { %v4656_v45 = vpop.eup %4655 }
 0x356   :  { %v295_v47 = vmul.f32 %v4656_v45, %v263_v16 }
 0x357   :  { %v4658_v48 = vpop.eup %4657 }
 0x358   :  { %v305_v50 = vmul.f32 %v3934_v46, %v295_v47  ;;  %v296_v51 = vmul.f32 %v4658_v48, %v264_v19 }
 0x359   :  { %v4660_v52 = vpop.eup %4659 }
 0x35a   :  { %v315_v54 = vadd.f32 %v3935_v49, %v305_v50  ;;  %v306_v55 = vmul.f32 %v3934_v46, %v296_v51  ;;  %v297_v56 = vmul.f32 %v4660_v52, %v265_v23 }
 0x35b   :  { %v4662_v57 = vpop.eup %4661 }
 0x35c   :  { %v5030_v59 = vadd.f32 %v319_v53, %v315_v54  ;;  %v316_v60 = vadd.f32 %v3935_v49, %v306_v55  ;;  %v307_v61 = vmul.f32 %v3934_v46, %v297_v56  ;;  %v298_v62 = vmul.f32 %v4662_v57, %v266_v27  ;;  %v3936_v53 = vld [vmem:[%s5718_s8] ss:$0 sm:$0xff] }
 0x35e   :  { %v329_v0 = vsel %vm75_vm0, %v5030_v59, 0.0  ;;  %v5037_v1 = vadd.f32 %v320_v58, %v316_v60  ;;  %v317_v2 = vadd.f32 %v3935_v49, %v307_v61  ;;  %v308_v3 = vmul.f32 %v3934_v46, %v298_v62  ;;  %v3937_v60 = vld [vmem:[%s5719_s9] ss:$0 sm:$0xff] }
 0x35f   :  { %330 = vadd.xlane.f32.xlu0 %v329_v0 }
 0x360   :  { %v332_v5 = vsel %vm75_vm0, %v5037_v1, 0.0  ;;  %v5044_v6 = vadd.f32 %v321_v63, %v317_v2  ;;  %v318_v7 = vadd.f32 %v3935_v49, %v308_v3 }
 0x361   :  { %333 = vadd.xlane.f32.xlu1 %v332_v5 }
 0x362   :  { %v335_v8 = vsel %vm75_vm0, %v5044_v6, 0.0  ;;  %v5048_v9 = vadd.f32 %v322_v4, %v318_v7 }
 0x363   :  { %336 = vadd.xlane.f32.xlu0 %v335_v8 }
 0x364   :  { %v338_v10 = vsel %vm75_vm0, %v5048_v9, 0.0 }
 0x365   :  { %339 = vadd.xlane.f32.xlu1 %v338_v10 }
 0x3ec   :  { %v331_v11 = vpop.xlane.xlu0 %330 }
 0x3ed   :  { %v341_v12 = vmul.f32 0.015625, %v331_v11 }
 0x3ee   :  { %v334_v13 = vpop.xlane.xlu1 %333 }
 0x3ef   :  { %v345_v14 = vsub.f32 %v5030_v59, %v341_v12  ;;  %v342_v15 = vmul.f32 0.015625, %v334_v13  ;;  %v4848_v12 = vmov 0.0  }
 0x3f0   :  { %v337_v16 = vpop.xlane.xlu0 %336  ;;  %4253 = vmatprep.subr.bf16.mxu1 %v4848_v12  ;;  %4241 = vmatprep.subr.bf16.mxu0 %v4848_v12 }
 0x3f1   :  { %v346_v17 = vsub.f32 %v5037_v1, %v342_v15  ;;  %v343_v18 = vmul.f32 0.015625, %v337_v16  ;;  %v349_v19 = vmul.f32 %v345_v14, %v345_v14  ;;  %4243 = vmatprep.mubr.msk.bf16.mxu0 %vm4849_vm1, %v4848_v12 }
 0x3f2   :  { %v340_v20 = vpop.xlane.xlu1 %339 }
 0x3f3   :  { %v5055_v21 = vsub.f32 %v5044_v6, %v343_v18  ;;  %v344_v22 = vmul.f32 0.015625, %v340_v20  ;;  %v353_v23 = vsel %vm75_vm0, %v349_v19, 0.0  ;;  %v350_v24 = vmul.f32 %v346_v17, %v346_v17 }
 0x3f4   :  { %354 = vadd.xlane.f32.xlu0 %v353_v23 }
 0x3f5   :  { %v348_v25 = vsub.f32 %v5048_v9, %v344_v22  ;;  %v356_v26 = vsel %vm75_vm0, %v350_v24, 0.0  ;;  %v351_v27 = vmul.f32 %v5055_v21, %v5055_v21 }
 0x3f6   :  { %357 = vadd.xlane.f32.xlu1 %v356_v26 }
 0x3f7   :  { %v359_v28 = vsel %vm75_vm0, %v351_v27, 0.0  ;;  %v352_v29 = vmul.f32 %v348_v25, %v348_v25 }
 0x3f8   :  { %360 = vadd.xlane.f32.xlu0 %v359_v28 }
 0x3f9   :  { %v362_v30 = vsel %vm75_vm0, %v352_v29, 0.0 }
 0x3fa   :  { %363 = vadd.xlane.f32.xlu1 %v362_v30 }
 0x481   :  { %v355_v40 = vpop.xlane.xlu0 %354 }
 0x482   :  { %v365_v41 = vmul.f32 0.015625, %v355_v40 }
 0x483   :  { %v358_v42 = vpop.xlane.xlu1 %357 }
 0x484   :  { %v369_v43 = vadd.f32 1e-05, %v365_v41  ;;  %v366_v44 = vmul.f32 0.015625, %v358_v42 }
 0x485   :  { %v361_v45 = vpop.xlane.xlu0 %360 }
 0x486   :  { %4663 = vrsqrt.f32 %v369_v43  ;;  %v370_v46 = vadd.f32 1e-05, %v366_v44  ;;  %v367_v47 = vmul.f32 0.015625, %v361_v45 }
 0x487   :  { %v364_v48 = vpop.xlane.xlu1 %363 }
 0x488   :  { %4665 = vrsqrt.f32 %v370_v46  ;;  %v371_v49 = vadd.f32 1e-05, %v367_v47  ;;  %v368_v50 = vmul.f32 0.015625, %v364_v48 }
 0x48a   :  { %4667 = vrsqrt.f32 %v371_v49  ;;  %v372_v51 = vadd.f32 1e-05, %v368_v50 }
 0x48c   :  { %4669 = vrsqrt.f32 %v372_v51 }
 0x490   :  { %v4664_v52 = vpop.eup %4663 }
 0x491   :  { %v377_v54 = vmul.f32 %v4664_v52, %v345_v14 }
 0x492   :  { %v4666_v55 = vpop.eup %4665 }
 0x493   :  { %v387_v56 = vmul.f32 %v3936_v53, %v377_v54  ;;  %v378_v57 = vmul.f32 %v4666_v55, %v346_v17 }
 0x494   :  { %v4668_v58 = vpop.eup %4667 }
 0x495   :  { %v388_v61 = vmul.f32 %v3936_v53, %v378_v57  ;;  %v397_v63 = vadd.f32 %v3937_v60, %v387_v56  ;;  %v379_v2 = vmul.f32 %v4668_v58, %v5055_v21 }
 0x496   :  { %v4670_v62 = vpop.eup %4669 }
 0x497   :  { %v398_v0 = vadd.f32 %v3937_v60, %v388_v61  ;;  %v380_v3 = vmul.f32 %v4670_v62, %v348_v25  ;;  %v389_v7 = vmul.f32 %v3936_v53, %v379_v2 }
 0x499   :  { %v401_v4 = vpack.c.bf16 %v398_v0, %v397_v63  ;;  %v390_v5 = vmul.f32 %v3936_v53, %v380_v3  ;;  %v399_v10 = vadd.f32 %v3937_v60, %v389_v7 }
 0x49b   :  { %3946 = vmatmul.mubr.msk.bf16.vlgmr.msra.gmra.mrb[4].mxu1 %vm75_vm0, %v401_v4  ;;  %v400_v8 = vadd.f32 %v3937_v60, %v390_v5 }
 0x49c   :  { %499 = vmatprep.mubr.bf16.mxu1 %v4847_v39 }
 0x49d   :  { %v402_v11 = vpack.c.bf16 %v400_v8, %v399_v10 }
 0x4a3   :  { %3947 = vmatmul.mubr.msk.bf16.gmra.mrb[8].mxu1 %vm75_vm0, %v402_v11 }
 0x4a4   :  { %4255 = vmatprep.mubr.msk.bf16.mxu1 %vm4849_vm1, %v4848_v12 }
 0x56e   :  { %v491_v13 = vpop.f32.mrb[4].mxu1 }
 0x56f   :  { %v493_v14 = vpop.f32.mrb[5].mxu1 }
 0x570   :  { %v495_v15 = vpop.f32.mrb[6].mxu1 }
 0x571   :  { %v5105_v16 = vpack.c.bf16 %v495_v15, %v491_v13  ;;  %v497_v17 = vpop.f32.mrb[7].mxu1 }
 0x572   :  { %v5107_v18 = vpack.c.bf16 %v497_v17, %v493_v14 }
 0x573   :  { %524 = vrot.lane.b32.xlu0 %v5105_v16, %s4850_s22 }
 0x574   :  { %4254 = vmatpush3.bf16.msra.mxu1 %v5107_v18 }
 0x576   :  { %v501_v19 = vpop.f32.mrb[8].mxu1 }
 0x577   :  { %v503_v20 = vpop.f32.mrb[9].mxu1 }
 0x578   :  { %v505_v21 = vpop.f32.mrb[10].mxu1 }
 0x579   :  { %v5112_v22 = vpack.c.bf16 %v505_v21, %v501_v19  ;;  %v507_v23 = vpop.f32.mrb[11].mxu1 }
 0x57a   :  { %v5114_v24 = vpack.c.bf16 %v507_v23, %v503_v20  ;;  %v4603_v23 = vld [vmem:[%s5720_s11] sm:$0xff]  }
 0x57b   :  { %575 = vrot.lane.b32.xlu1 %v5112_v22, %s4850_s22  ;;  %4265 = vmatprep.subr.bf16.mxu1 %v4603_v23 }
 0x5e5   :  { %v525_v25 = vpop.permute.xlu0 %524 }
 0x5e6   :  { %v531_v26 = vsel %vm526_vm2, %v525_v25, 0 }
 0x5e7   :  { %4242 = vmatpush3.bf16.xpose.msra.mxu0 %v531_v26 }
 0x5e8   :  { %4247 = vmatprep.subr.bf16.mxu0 %v4848_v12 }
 0x5ed   :  { %v576_v27 = vpop.permute.xlu1 %575 }
 0x5ee   :  { %v581_v28 = vsel %vm526_vm2, %v576_v27, 0  ;;  %4244 = vmatmul.mubr.msk.bf16.vlgmr.msra.gmra.mrb[0].mxu0 %vm526_vm2, %v5105_v16 }
 0x5ef   :  { %4248 = vmatpush3.bf16.xpose.msra.mxu0 %v581_v28  ;;  %4249 = vmatprep.mubr.msk.bf16.mxu0 %vm4849_vm1, %v4848_v12 }
 0x5f0   :  { %4259 = vmatprep.subr.bf16.mxu0 %v4848_v12 }
 0x5f6   :  { %4250 = vmatmul.mubr.msk.bf16.vlgmr.msra.gmra.mrb[4].mxu0 %vm526_vm2, %v5112_v22 }
 0x5f7   :  { %4260 = vmatpush3.bf16.msra.mxu0 %v5114_v24  ;;  %4261 = vmatprep.mubr.msk.bf16.mxu0 %vm4849_vm1, %v4848_v12 }
 0x5f8   :  { %4271 = vmatprep.subr.bf16.mxu0 %v4848_v12 }
 0x6c1   :  { %v567_v29 = vpop.f32.mrb[0].mxu0 }
 0x6c2   :  { %v4245_v30 = vpop.f32.mrb[1].mxu0  ;;  %v624_v31 = vsel %vm526_vm2, %v567_v29, -inf }
 0x6c3   :  { %625 = vmax.xlane.f32.xlu1 %v624_v31  ;;  %v570_v32 = vpop.f32.mrb[2].mxu0 }
 0x6c4   :  { %v4246_v33 = vpop.f32.mrb[3].mxu0  ;;  %v627_v34 = vsel %vm526_vm2, %v570_v32, -inf }
 0x6c5   :  { %628 = vmax.xlane.f32.xlu0 %v627_v34 }
 0x6c9   :  { %v617_v35 = vpop.f32.mrb[4].mxu0 }
 0x6ca   :  { %v4251_v36 = vpop.f32.mrb[5].mxu0  ;;  %v630_v37 = vsel %vm526_vm2, %v617_v35, -inf }
 0x6cb   :  { %631 = vmax.xlane.f32.xlu0 %v630_v37  ;;  %v620_v38 = vpop.f32.mrb[6].mxu0 }
 0x6cc   :  { %v4252_v40 = vpop.f32.mrb[7].mxu0  ;;  %v633_v41 = vsel %vm526_vm2, %v620_v38, -inf }
 0x6cd   :  { %634 = vmax.xlane.f32.xlu1 %v633_v41 }
 0x750   :  { %v626_v42 = vpop.xlane.xlu1 %625 }
 0x751   :  { %v636_v43 = vsub.f32 %v567_v29, %v626_v42 }
 0x752   :  { %v629_v44 = vpop.xlane.xlu0 %628 }
 0x753   :  { %v640_v45 = vmul.f32 1.442695, %v636_v43  ;;  %v637_v46 = vsub.f32 %v570_v32, %v629_v44 }
 0x755   :  { %4671 = vpow2.f32 %v640_v45  ;;  %v642_v47 = vmul.f32 1.442695, %v637_v46 }
 0x757   :  { %4673 = vpow2.f32 %v642_v47 }
 0x758   :  { %v632_v48 = vpop.xlane.xlu0 %631 }
 0x759   :  { %v638_v49 = vsub.f32 %v617_v35, %v632_v48 }
 0x75a   :  { %v635_v50 = vpop.xlane.xlu1 %634 }
 0x75b   :  { %v644_v51 = vmul.f32 1.442695, %v638_v49  ;;  %v639_v52 = vsub.f32 %v620_v38, %v635_v50 }
 0x75d   :  { %4675 = vpow2.f32 %v644_v51  ;;  %v646_v53 = vmul.f32 1.442695, %v639_v52 }
 0x75f   :  { %v4672_v54 = vpop.eup %4671  ;;  %4677 = vpow2.f32 %v646_v53 }
 0x760   :  { %v648_v55 = vsel %vm526_vm2, %v4672_v54, 0.0 }
 0x761   :  { %v4674_v56 = vpop.eup %4673  ;;  %649 = vadd.xlane.f32.xlu0 %v648_v55 }
 0x762   :  { %v651_v57 = vsel %vm526_vm2, %v4674_v56, 0.0 }
 0x763   :  { %652 = vadd.xlane.f32.xlu1 %v651_v57 }
 0x767   :  { %v4676_v58 = vpop.eup %4675 }
 0x768   :  { %v654_v60 = vsel %vm526_vm2, %v4676_v58, 0.0 }
 0x769   :  { %v4678_v61 = vpop.eup %4677  ;;  %655 = vadd.xlane.f32.xlu0 %v654_v60 }
 0x76a   :  { %v657_v62 = vsel %vm526_vm2, %v4678_v61, 0.0 }
 0x76b   :  { %658 = vadd.xlane.f32.xlu1 %v657_v62 }
 0x77c   :  { %831 = vrot.lane.b32.xlu1 %v5105_v16, %s4851_s23 }
 0x77f   :  { %833 = vrot.lane.b32.xlu0 %v5105_v16, %s4852_s4 }
 0x780   :  { %884 = vrot.lane.b32.xlu1 %v5112_v22, %s4852_s4 }
 0x784   :  { %882 = vrot.lane.b32.xlu1 %v5112_v22, %s4851_s23 }
 0x7ee   :  { %v650_v63 = vpop.xlane.xlu0 %649 }
 0x7ef   :  { %4679 = vrcp.f32 %v650_v63 }
 0x7f0   :  { %v653_v0 = vpop.xlane.xlu1 %652 }
 0x7f1   :  { %4681 = vrcp.f32 %v653_v0 }
 0x7f6   :  { %v656_v2 = vpop.xlane.xlu0 %655 }
 0x7f7   :  { %4683 = vrcp.f32 %v656_v2 }
 0x7f8   :  { %v659_v3 = vpop.xlane.xlu1 %658 }
 0x7f9   :  { %v4680_v4 = vpop.eup %4679  ;;  %4685 = vrcp.f32 %v659_v3 }
 0x7fa   :  { %v664_v7 = vmul.f32 %v4680_v4, %v4672_v54  ;;  %v834_v17 = vpop.permute.xlu0 %833 }
 0x7fb   :  { %v4682_v5 = vpop.eup %4681  ;;  %v839_v20 = vsel %vm526_vm2, %v834_v17, 0 }
 0x7fc   :  { %v665_v8 = vmul.f32 %v4682_v5, %v4674_v56  ;;  %v832_v21 = vpop.permute.xlu1 %831 }
 0x7fe   :  { %v668_v10 = vpack.c.bf16 %v665_v8, %v664_v7 }
 0x800   :  { %4256 = vmatmul.mubr.msk.bf16.vlgmr.msra.gmra.mrb[12].mxu1 %vm526_vm2, %v668_v10  ;;  %v885_v32 = vpop.permute.xlu1 %884 }
 0x801   :  { %v4684_v11 = vpop.eup %4683  ;;  %4266 = vmatpush3.bf16.msra.mxu1 %v4603_v23  ;;  %v890_v36 = vsel %vm526_vm2, %v885_v32, 0 }
 0x802   :  { %v666_v14 = vmul.f32 %v4684_v11, %v4676_v58  ;;  %4277 = vmatprep.subr.bf16.mxu1 %v4848_v12 }
 0x803   :  { %v4686_v13 = vpop.eup %4685 }
 0x804   :  { %v667_v15 = vmul.f32 %v4686_v13, %v4678_v61  ;;  %v883_v44 = vpop.permute.xlu1 %882 }
 0x806   :  { %v669_v19 = vpack.c.bf16 %v667_v15, %v666_v14 }
 0x808   :  { %4262 = vmatmul.mubr.msk.bf16.vlgmr.msra.gmra.mrb[8].mxu0 %vm526_vm2, %v669_v19 }
 0x809   :  { %4272 = vmatpush3.bf16.xpose.msra.mxu0 %v839_v20  ;;  %4273 = vmatprep.mubr.msk.bf16.mxu0 %vm4849_vm1, %v4848_v12 }
 0x80a   :  { %4283 = vmatprep.subr.bf16.mxu0 %v4848_v12 }
 0x810   :  { %4274 = vmatmul.mubr.msk.bf16.vlgmr.msra.gmra.mrb[12].mxu0 %vm526_vm2, %v832_v21 }
 0x811   :  { %4285 = vmatprep.mubr.msk.bf16.mxu0 %vm4849_vm1, %v4848_v12 }
 0x8d3   :  { %v707_v25 = vpop.f32.mrb[12].mxu1 }
 0x8d4   :  { %v4257_v26 = vpop.f32.mrb[13].mxu1 }
 0x8d5   :  { %v710_v27 = vpop.f32.mrb[14].mxu1 }
 0x8d6   :  { %v758_v28 = vpack.c.bf16 %v710_v27, %v707_v25  ;;  %v4258_v29 = vpop.f32.mrb[15].mxu1 }
 0x8d8   :  { %4267 = vmatprep.mubr.msk.bf16.mxu1 %vm526_vm2, %v758_v28 }
 0x8db   :  { %v751_v30 = vpop.f32.mrb[8].mxu0 }
 0x8dc   :  { %v4263_v31 = vpop.f32.mrb[9].mxu0 }
 0x8dd   :  { %v754_v33 = vpop.f32.mrb[10].mxu0 }
 0x8de   :  { %v759_v34 = vpack.c.bf16 %v754_v33, %v751_v30  ;;  %v4264_v35 = vpop.f32.mrb[11].mxu0 }
 0x8e0   :  { %4268 = vmatmul.mubr.msk.bf16.vlgmr.msra.gmra.mrb[16].mxu1 %vm526_vm2, %v759_v34 }
 0x8e1   :  { %4278 = vmatpush3.bf16.xpose.msra.mxu1 %v890_v36  ;;  %4279 = vmatprep.mubr.msk.bf16.mxu1 %vm4849_vm1, %v4848_v12 }
 0x8e2   :  { %4289 = vmatprep.subr.bf16.mxu1 %v4848_v12 }
 0x8e3   :  { %v875_v37 = vpop.f32.mrb[12].mxu0 }
 0x8e4   :  { %v4275_v38 = vpop.f32.mrb[13].mxu0  ;;  %v933_v40 = vsel %vm526_vm2, %v875_v37, -inf }
 0x8e5   :  { %934 = vmax.xlane.f32.xlu0 %v933_v40  ;;  %v878_v41 = vpop.f32.mrb[14].mxu0 }
 0x8e6   :  { %v4276_v42 = vpop.f32.mrb[15].mxu0  ;;  %v936_v43 = vsel %vm526_vm2, %v878_v41, -inf }
 0x8e7   :  { %937 = vmax.xlane.f32.xlu1 %v936_v43 }
 0x8e8   :  { %4280 = vmatmul.mubr.msk.bf16.vlgmr.msra.gmra.mrb[20].mxu1 %vm526_vm2, %v883_v44 }
 0x8e9   :  { %4291 = vmatprep.mubr.msk.bf16.mxu1 %vm4849_vm1, %v4848_v12 }
 0x8f8   :  { %1144 = vrot.lane.b32.xlu1 %v5105_v16, %s4853_s25 }
 0x8fc   :  { %1142 = vrot.lane.b32.xlu1 %v5105_v16, %s4854_s26 }
 0x900   :  { %1195 = vrot.lane.b32.xlu1 %v5112_v22, %s4853_s25 }
 0x972   :  { %v935_v45 = vpop.xlane.xlu0 %934 }
 0x973   :  { %v945_v46 = vsub.f32 %v875_v37, %v935_v45 }
 0x974   :  { %v938_v47 = vpop.xlane.xlu1 %937 }
 0x975   :  { %v949_v48 = vmul.f32 1.442695, %v945_v46  ;;  %v946_v49 = vsub.f32 %v878_v41, %v938_v47 }
 0x977   :  { %4687 = vpow2.f32 %v949_v48  ;;  %v951_v50 = vmul.f32 1.442695, %v946_v49 }
 0x978   :  { %v1145_v3 = vpop.permute.xlu1 %1144 }
 0x979   :  { %4689 = vpow2.f32 %v951_v50  ;;  %v1150_v11 = vsel %vm526_vm2, %v1145_v3, 0 }
 0x97c   :  { %v1143_v10 = vpop.permute.xlu1 %1142 }
 0x980   :  { %v1196_v13 = vpop.permute.xlu1 %1195 }
 0x981   :  { %v4688_v51 = vpop.eup %4687  ;;  %v1201_v14 = vsel %vm526_vm2, %v1196_v13, 0 }
 0x982   :  { %v957_v52 = vsel %vm526_vm2, %v4688_v51, 0.0 }
 0x983   :  { %v4690_v53 = vpop.eup %4689  ;;  %958 = vadd.xlane.f32.xlu0 %v957_v52 }
 0x984   :  { %v960_v54 = vsel %vm526_vm2, %v4690_v53, 0.0 }
 0x987   :  { %961 = vadd.xlane.f32.xlu0 %v960_v54 }
 0x99d   :  { %980 = vrot.lane.b32.xlu0 %v5107_v18, %s4851_s23 }
 0x9a1   :  { %1193 = vrot.lane.b32.xlu0 %v5112_v22, %s4854_s26 }
 0x9bb   :  { %v926_v55 = vpop.f32.mrb[20].mxu1 }
 0x9bc   :  { %v4281_v56 = vpop.f32.mrb[21].mxu1  ;;  %v939_v57 = vsel %vm526_vm2, %v926_v55, -inf }
 0x9bd   :  { %v929_v58 = vpop.f32.mrb[22].mxu1  ;;  %940 = vmax.xlane.f32.xlu1 %v939_v57  ;;  %v4604_v56 = vld [vmem:[%s5720_s11 + $0x8] sm:$0xff]  }
 0x9be   :  { %v4282_v60 = vpop.f32.mrb[23].mxu1  ;;  %v942_v61 = vsel %vm526_vm2, %v929_v58, -inf }
 0x9c0   :  { %943 = vmax.xlane.f32.xlu0 %v942_v61 }
 0x9ce   :  { %1028 = vrot.lane.b32.xlu1 %v5114_v24, %s4851_s23 }
 0xa10   :  { %v959_v62 = vpop.xlane.xlu0 %958 }
 0xa11   :  { %4691 = vrcp.f32 %v959_v62 }
 0xa14   :  { %v962_v63 = vpop.xlane.xlu0 %961 }
 0xa15   :  { %4693 = vrcp.f32 %v962_v63 }
 0xa18   :  { %v981_v0 = vpop.permute.xlu0 %980 }
 0xa19   :  { %4284 = vmatpush3.bf16.msra.mxu0 %v981_v0 }
 0xa1a   :  { %4301 = vmatprep.subr.bf16.mxu0 %v4848_v12 }
 0xa1b   :  { %v4692_v2 = vpop.eup %4691 }
 0xa1c   :  { %v973_v5 = vmul.f32 %v4692_v2, %v4688_v51  ;;  %v1194_v15 = vpop.permute.xlu0 %1193 }
 0xa1f   :  { %v4694_v4 = vpop.eup %4693 }
 0xa20   :  { %v974_v7 = vmul.f32 %v4694_v4, %v4690_v53 }
 0xa22   :  { %v977_v8 = vpack.c.bf16 %v974_v7, %v973_v5 }
 0xa24   :  { %4286 = vmatmul.mubr.msk.bf16.vlgmr.msra.gmra.mrb[16].mxu0 %vm526_vm2, %v977_v8 }
 0xa25   :  { %4302 = vmatpush3.bf16.xpose.msra.mxu0 %v1150_v11  ;;  %4303 = vmatprep.mubr.msk.bf16.mxu0 %vm4849_vm1, %v4848_v12 }
 0xa26   :  { %4307 = vmatprep.subr.bf16.mxu0 %v4848_v12 }
 0xa2c   :  { %4304 = vmatmul.mubr.msk.bf16.vlgmr.msra.gmra.mrb[20].mxu0 %vm526_vm2, %v1143_v10 }
 0xa2d   :  { %4308 = vmatpush3.bf16.xpose.msra.mxu0 %v1201_v14  ;;  %4309 = vmatprep.mubr.msk.bf16.mxu0 %vm4849_vm1, %v4848_v12 }
 0xa2e   :  { %4319 = vmatprep.subr.bf16.mxu0 %v4848_v12 }
 0xa34   :  { %4310 = vmatmul.mubr.msk.bf16.vlgmr.msra.gmra.mrb[24].mxu0 %vm526_vm2, %v1194_v15 }
 0xa35   :  { %4321 = vmatprep.mubr.msk.bf16.mxu0 %vm4849_vm1, %v4848_v12 }
 0xa4a   :  { %v941_v17 = vpop.xlane.xlu1 %940 }
 0xa4b   :  { %v947_v19 = vsub.f32 %v926_v55, %v941_v17 }
 0xa4d   :  { %v953_v20 = vmul.f32 1.442695, %v947_v19  ;;  %v944_v21 = vpop.xlane.xlu0 %943 }
 0xa4e   :  { %v948_v23 = vsub.f32 %v929_v58, %v944_v21  ;;  %v1029_v25 = vpop.permute.xlu1 %1028 }
 0xa4f   :  { %4695 = vpow2.f32 %v953_v20  ;;  %4290 = vmatpush3.bf16.msra.mxu1 %v1029_v25 }
 0xa50   :  { %v955_v26 = vmul.f32 1.442695, %v948_v23  ;;  %4295 = vmatprep.subr.bf16.mxu1 %v4604_v56 }
 0xa52   :  { %4697 = vpow2.f32 %v955_v26 }
 0xa59   :  { %v4696_v27 = vpop.eup %4695 }
 0xa5a   :  { %v963_v28 = vsel %vm526_vm2, %v4696_v27, 0.0 }
 0xa5b   :  { %964 = vadd.xlane.f32.xlu0 %v963_v28 }
 0xa5c   :  { %v4698_v29 = vpop.eup %4697 }
 0xa5d   :  { %v966_v30 = vsel %vm526_vm2, %v4698_v29, 0.0 }
 0xa5f   :  { %967 = vadd.xlane.f32.xlu0 %v966_v30 }
 0xae8   :  { %v965_v31 = vpop.xlane.xlu0 %964 }
 0xae9   :  { %4699 = vrcp.f32 %v965_v31 }
 0xaec   :  { %v968_v32 = vpop.xlane.xlu0 %967 }
 0xaed   :  { %4701 = vrcp.f32 %v968_v32 }
 0xaf3   :  { %v4700_v33 = vpop.eup %4699 }
 0xaf4   :  { %v975_v36 = vmul.f32 %v4700_v33, %v4696_v27 }
 0xaf7   :  { %v4702_v34 = vpop.eup %4701  ;;  %v1020_v35 = vpop.f32.mrb[16].mxu0 }
 0xaf8   :  { %v976_v37 = vmul.f32 %v4702_v34, %v4698_v29  ;;  %v4287_v38 = vpop.f32.mrb[17].mxu0 }
 0xaf9   :  { %v1023_v40 = vpop.f32.mrb[18].mxu0 }
 0xafa   :  { %v1075_v41 = vpack.c.bf16 %v1023_v40, %v1020_v35  ;;  %v4288_v42 = vpop.f32.mrb[19].mxu0  ;;  %v978_v43 = vpack.c.bf16 %v976_v37, %v975_v36 }
 0xafc   :  { %4292 = vmatmul.mubr.msk.bf16.vlgmr.msra.gmra.mrb[24].mxu1 %vm526_vm2, %v978_v43 }
 0xafd   :  { %4297 = vmatprep.mubr.msk.bf16.mxu1 %vm526_vm2, %v1075_v41  ;;  %4296 = vmatpush3.bf16.msra.mxu1 %v4604_v56 }
 0xafe   :  { %4313 = vmatprep.subr.bf16.mxu1 %v4848_v12 }
 0xaff   :  { %v1186_v44 = vpop.f32.mrb[20].mxu0 }
 0xb00   :  { %v4305_v45 = vpop.f32.mrb[21].mxu0  ;;  %v1244_v46 = vsel %vm526_vm2, %v1186_v44, -inf }
 0xb01   :  { %1245 = vmax.xlane.f32.xlu0 %v1244_v46  ;;  %v1189_v47 = vpop.f32.mrb[22].mxu0  ;;  %v4605_v46 = vld [vmem:[%s5720_s11 + $0x10] sm:$0xff]  }
 0xb02   :  { %v4306_v48 = vpop.f32.mrb[23].mxu0  ;;  %v1247_v49 = vsel %vm526_vm2, %v1189_v47, -inf }
 0xb05   :  { %1248 = vmax.xlane.f32.xlu0 %v1247_v49 }
 0xb07   :  { %v1237_v50 = vpop.f32.mrb[24].mxu0 }
 0xb08   :  { %v4311_v51 = vpop.f32.mrb[25].mxu0  ;;  %v1250_v52 = vsel %vm526_vm2, %v1237_v50, -inf }
 0xb09   :  { %1251 = vmax.xlane.f32.xlu0 %v1250_v52  ;;  %v1240_v53 = vpop.f32.mrb[26].mxu0 }
 0xb0a   :  { %v4312_v54 = vpop.f32.mrb[27].mxu0  ;;  %v1253_v55 = vsel %vm526_vm2, %v1240_v53, -inf }
 0xb0d   :  { %1254 = vmax.xlane.f32.xlu0 %v1253_v55 }
 0xb8e   :  { %v1246_v57 = vpop.xlane.xlu0 %1245 }
 0xb8f   :  { %v1256_v58 = vsub.f32 %v1186_v44, %v1246_v57 }
 0xb91   :  { %v1260_v60 = vmul.f32 1.442695, %v1256_v58 }
 0xb92   :  { %v1249_v61 = vpop.xlane.xlu0 %1248 }
 0xb93   :  { %4703 = vpow2.f32 %v1260_v60  ;;  %v1257_v62 = vsub.f32 %v1189_v47, %v1249_v61 }
 0xb95   :  { %v1262_v63 = vmul.f32 1.442695, %v1257_v62 }
 0xb96   :  { %v1252_v0 = vpop.xlane.xlu0 %1251 }
 0xb97   :  { %4705 = vpow2.f32 %v1262_v63  ;;  %v1258_v2 = vsub.f32 %v1237_v50, %v1252_v0 }
 0xb99   :  { %v1264_v3 = vmul.f32 1.442695, %v1258_v2 }
 0xb9a   :  { %v1255_v4 = vpop.xlane.xlu0 %1254 }
 0xb9b   :  { %4707 = vpow2.f32 %v1264_v3  ;;  %v1259_v5 = vsub.f32 %v1240_v53, %v1255_v4 }
 0xb9d   :  { %v4704_v7 = vpop.eup %4703  ;;  %v1266_v8 = vmul.f32 1.442695, %v1259_v5 }
 0xb9e   :  { %v1268_v10 = vsel %vm526_vm2, %v4704_v7, 0.0 }
 0xb9f   :  { %4709 = vpow2.f32 %v1266_v8  ;;  %1269 = vadd.xlane.f32.xlu1 %v1268_v10 }
 0xba1   :  { %v4706_v11 = vpop.eup %4705 }
 0xba2   :  { %v1271_v13 = vsel %vm526_vm2, %v4706_v11, 0.0 }
 0xba3   :  { %1272 = vadd.xlane.f32.xlu0 %v1271_v13 }
 0xba5   :  { %v4708_v14 = vpop.eup %4707 }
 0xba6   :  { %v1274_v15 = vsel %vm526_vm2, %v4708_v14, 0.0 }
 0xba7   :  { %1275 = vadd.xlane.f32.xlu0 %v1274_v15 }
 0xba9   :  { %v4710_v17 = vpop.eup %4709 }
 0xbaa   :  { %v1277_v19 = vsel %vm526_vm2, %v4710_v17, 0.0 }
 0xbab   :  { %1278 = vadd.xlane.f32.xlu0 %v1277_v19 }
 0xbb0   :  { %1337 = vrot.lane.b32.xlu1 %v5114_v24, %s4854_s26 }
 0xbc1   :  { %1290 = vrot.lane.b32.xlu0 %v5107_v18, %s4854_s26 }
 0xbc5   :  { %1453 = vrot.lane.b32.xlu0 %v5105_v16, %s4855_s28 }
 0xbc9   :  { %1504 = vrot.lane.b32.xlu0 %v5112_v22, %s4855_s28 }
 0xbcd   :  { %1451 = vrot.lane.b32.xlu0 %v5105_v16, %s4856_s7 }
 0xbcf   :  { %v1068_v20 = vpop.f32.mrb[24].mxu1 }
 0xbd0   :  { %v4293_v21 = vpop.f32.mrb[25].mxu1 }
 0xbd1   :  { %v1071_v23 = vpop.f32.mrb[26].mxu1  ;;  %1502 = vrot.lane.b32.xlu0 %v5112_v22, %s4856_s7 }
 0xbd2   :  { %v1076_v25 = vpack.c.bf16 %v1071_v23, %v1068_v20  ;;  %v4294_v26 = vpop.f32.mrb[27].mxu1 }
 0xbd4   :  { %4298 = vmatmul.mubr.msk.bf16.vlgmr.msra.gmra.mrb[16].mxu1 %vm526_vm2, %v1076_v25 }
 0xbd5   :  { %4315 = vmatprep.mubr.msk.bf16.mxu1 %vm4849_vm1, %v4848_v12 }
 0xc2c   :  { %v1270_v27 = vpop.xlane.xlu1 %1269 }
 0xc2d   :  { %4711 = vrcp.f32 %v1270_v27 }
 0xc30   :  { %v1338_v28 = vpop.permute.xlu1 %1337  ;;  %v1273_v29 = vpop.xlane.xlu0 %1272 }
 0xc31   :  { %4713 = vrcp.f32 %v1273_v29  ;;  %4320 = vmatpush3.bf16.msra.mxu0 %v1338_v28 }
 0xc32   :  { %4331 = vmatprep.subr.bf16.mxu0 %v4848_v12 }
 0xc34   :  { %v1276_v16 = vpop.xlane.xlu0 %1275 }
 0xc35   :  { %4715 = vrcp.f32 %v1276_v16 }
 0xc37   :  { %v4712_v31 = vpop.eup %4711 }
 0xc38   :  { %v1279_v30 = vpop.xlane.xlu0 %1278  ;;  %v1284_v32 = vmul.f32 %v4712_v31, %v4704_v7 }
 0xc39   :  { %4717 = vrcp.f32 %v1279_v30 }
 0xc3b   :  { %v4714_v22 = vpop.eup %4713 }
 0xc3c   :  { %v1285_v33 = vmul.f32 %v4714_v22, %v4706_v11  ;;  %v1291_v34 = vpop.permute.xlu0 %1290 }
 0xc3d   :  { %4314 = vmatpush3.bf16.msra.mxu1 %v1291_v34 }
 0xc3e   :  { %v1288_v35 = vpack.c.bf16 %v1285_v33, %v1284_v32  ;;  %4325 = vmatprep.subr.bf16.mxu1 %v4605_v46 }
 0xc3f   :  { %v4716_v36 = vpop.eup %4715 }
 0xc40   :  { %4316 = vmatmul.mubr.msk.bf16.vlgmr.msra.gmra.mrb[28].mxu1 %vm526_vm2, %v1288_v35  ;;  %v1454_v38 = vpop.permute.xlu0 %1453  ;;  %v1286_v40 = vmul.f32 %v4716_v36, %v4708_v14 }
 0xc41   :  { %v1459_v43 = vsel %vm526_vm2, %v1454_v38, 0  ;;  %4326 = vmatpush3.bf16.msra.mxu1 %v4605_v46 }
 0xc42   :  { %4337 = vmatprep.subr.bf16.mxu1 %v4848_v12 }
 0xc43   :  { %v4718_v37 = vpop.eup %4717 }
 0xc44   :  { %v1287_v41 = vmul.f32 %v4718_v37, %v4710_v17  ;;  %v1505_v44 = vpop.permute.xlu0 %1504 }
 0xc45   :  { %v1510_v57 = vsel %vm526_vm2, %v1505_v44, 0 }
 0xc46   :  { %v1289_v42 = vpack.c.bf16 %v1287_v41, %v1286_v40 }
 0xc48   :  { %4322 = vmatmul.mubr.msk.bf16.vlgmr.msra.gmra.mrb[28].mxu0 %vm526_vm2, %v1289_v42  ;;  %v1452_v45 = vpop.permute.xlu0 %1451 }
 0xc49   :  { %4332 = vmatpush3.bf16.xpose.msra.mxu0 %v1459_v43  ;;  %4333 = vmatprep.mubr.msk.bf16.mxu0 %vm4849_vm1, %v4848_v12 }
 0xc4a   :  { %4343 = vmatprep.subr.bf16.mxu0 %v4848_v12 }
 0xc4c   :  { %v1503_v2 = vpop.permute.xlu0 %1502 }
 0xc50   :  { %4334 = vmatmul.mubr.msk.bf16.vlgmr.msra.gmra.mrb[32].mxu0 %vm526_vm2, %v1452_v45 }
 0xc51   :  { %4345 = vmatprep.mubr.msk.bf16.mxu0 %vm4849_vm1, %v4848_v12 }
 0xd13   :  { %v1330_v47 = vpop.f32.mrb[28].mxu1 }
 0xd14   :  { %v4317_v48 = vpop.f32.mrb[29].mxu1 }
 0xd15   :  { %v1333_v49 = vpop.f32.mrb[30].mxu1 }
 0xd16   :  { %v1384_v50 = vpack.c.bf16 %v1333_v49, %v1330_v47  ;;  %v4318_v51 = vpop.f32.mrb[31].mxu1  ;;  %v4606_v49 = vld [vmem:[%s5720_s11 + $0x18] sm:$0xff]  }
 0xd18   :  { %4327 = vmatprep.mubr.msk.bf16.mxu1 %vm526_vm2, %v1384_v50 }
 0xd1b   :  { %v1377_v52 = vpop.f32.mrb[28].mxu0 }
 0xd1c   :  { %v4323_v53 = vpop.f32.mrb[29].mxu0 }
 0xd1d   :  { %v1380_v54 = vpop.f32.mrb[30].mxu0 }
 0xd1e   :  { %v1385_v55 = vpack.c.bf16 %v1380_v54, %v1377_v52  ;;  %v4324_v56 = vpop.f32.mrb[31].mxu0 }
 0xd20   :  { %4328 = vmatmul.mubr.msk.bf16.vlgmr.msra.gmra.mrb[16].mxu1 %vm526_vm2, %v1385_v55 }
 0xd21   :  { %4338 = vmatpush3.bf16.xpose.msra.mxu1 %v1510_v57  ;;  %4339 = vmatprep.mubr.msk.bf16.mxu1 %vm4849_vm1, %v4848_v12 }
 0xd22   :  { %4349 = vmatprep.subr.bf16.mxu1 %v4848_v12 }
 0xd23   :  { %v1495_v58 = vpop.f32.mrb[32].mxu0 }
 0xd24   :  { %v4335_v60 = vpop.f32.mrb[33].mxu0  ;;  %v1553_v61 = vsel %vm526_vm2, %v1495_v58, -inf }
 0xd25   :  { %1554 = vmax.xlane.f32.xlu0 %v1553_v61  ;;  %v1498_v62 = vpop.f32.mrb[34].mxu0  ;;  %v3955_v61 = vld [vmem:[%s5721_s12] ss:$0 sm:$0xff] }
 0xd26   :  { %v4336_v63 = vpop.f32.mrb[35].mxu0  ;;  %v1556_v0 = vsel %vm526_vm2, %v1498_v62, -inf }
 0xd27   :  { %1557 = vmax.xlane.f32.xlu1 %v1556_v0 }
 0xd28   :  { %4340 = vmatmul.mubr.msk.bf16.vlgmr.msra.gmra.mrb[32].mxu1 %vm526_vm2, %v1503_v2 }
 0xd29   :  { %4351 = vmatprep.mubr.msk.bf16.mxu1 %vm4849_vm1, %v4848_v12 }
 0xdb2   :  { %v1555_v3 = vpop.xlane.xlu0 %1554 }
 0xdb3   :  { %v1565_v4 = vsub.f32 %v1495_v58, %v1555_v3 }
 0xdb4   :  { %v1558_v10 = vpop.xlane.xlu1 %1557 }
 0xdb5   :  { %v1569_v5 = vmul.f32 1.442695, %v1565_v4  ;;  %v1566_v11 = vsub.f32 %v1498_v62, %v1558_v10 }
 0xdb7   :  { %4719 = vpow2.f32 %v1569_v5  ;;  %v1571_v13 = vmul.f32 1.442695, %v1566_v11 }
 0xdb9   :  { %4721 = vpow2.f32 %v1571_v13 }
 0xdc1   :  { %v4720_v7 = vpop.eup %4719 }
 0xdc2   :  { %v1577_v8 = vsel %vm526_vm2, %v4720_v7, 0.0 }
 0xdc3   :  { %1578 = vadd.xlane.f32.xlu1 %v1577_v8  ;;  %v4722_v23 = vpop.eup %4721 }
 0xdc4   :  { %v1580_v25 = vsel %vm526_vm2, %v4722_v23, 0.0 }
 0xdfb   :  { %v1546_v14 = vpop.f32.mrb[32].mxu1 }
 0xdfc   :  { %v4341_v15 = vpop.f32.mrb[33].mxu1  ;;  %v1559_v17 = vsel %vm526_vm2, %v1546_v14, -inf }
 0xdfd   :  { %v1549_v19 = vpop.f32.mrb[34].mxu1  ;;  %1560 = vmax.xlane.f32.xlu0 %v1559_v17 }
 0xdfe   :  { %v4342_v20 = vpop.f32.mrb[35].mxu1  ;;  %v1562_v21 = vsel %vm526_vm2, %v1549_v19, -inf }
 0xe01   :  { %1563 = vmax.xlane.f32.xlu0 %v1562_v21 }
 0xe05   :  { %1581 = vadd.xlane.f32.xlu0 %v1580_v25 }
 0xe50   :  { %v1579_v35 = vpop.xlane.xlu1 %1578 }
 0xe8a   :  { %v1561_v26 = vpop.xlane.xlu0 %1560 }
 0xe8b   :  { %v1567_v27 = vsub.f32 %v1546_v14, %v1561_v26 }
 0xe8d   :  { %v1573_v28 = vmul.f32 1.442695, %v1567_v27 }
 0xe8e   :  { %v1564_v29 = vpop.xlane.xlu0 %1563 }
 0xe8f   :  { %4723 = vpow2.f32 %v1573_v28  ;;  %v1568_v16 = vsub.f32 %v1549_v19, %v1564_v29 }
 0xe91   :  { %v1575_v30 = vmul.f32 1.442695, %v1568_v16 }
 0xe92   :  { %v1582_v34 = vpop.xlane.xlu0 %1581 }
 0xe93   :  { %4725 = vpow2.f32 %v1575_v30 }
 0xe94   :  { %4727 = vrcp.f32 %v1582_v34 }
 0xe95   :  { %4729 = vrcp.f32 %v1579_v35 }
 0xe99   :  { %v4724_v31 = vpop.eup %4723 }
 0xe9a   :  { %v1583_v22 = vsel %vm526_vm2, %v4724_v31, 0.0 }
 0xe9b   :  { %1584 = vadd.xlane.f32.xlu1 %v1583_v22 }
 0xe9d   :  { %v4726_v32 = vpop.eup %4725 }
 0xe9e   :  { %v1586_v33 = vsel %vm526_vm2, %v4726_v32, 0.0  ;;  %v4728_v36 = vpop.eup %4727 }
 0xe9f   :  { %1587 = vadd.xlane.f32.xlu0 %v1586_v33  ;;  %v4730_v38 = vpop.eup %4729  ;;  %v1594_v40 = vmul.f32 %v4728_v36, %v4722_v23  ;;  %v4607_v36 = vld [vmem:[%s5722_s15] sm:$0xff]  }
 0xea0   :  { %v1593_v41 = vmul.f32 %v4730_v38, %v4720_v7  ;;  %v4609_v38 = vld [vmem:[%s5722_s15 + $0x10] sm:$0xff]  }
 0xea2   :  { %v1597_v44 = vpack.c.bf16 %v1594_v40, %v1593_v41  ;;  %v4610_v40 = vld [vmem:[%s5722_s15 + $0x18] sm:$0xff]   ;;  %v4611_v41 = vld [vmem:[%s5723_s17] sm:$0xff]  }
 0xeac   :  { %1599 = vrot.lane.b32.xlu1 %v5107_v18, %s4856_s7 }
 0xeb5   :  { %1646 = vrot.lane.b32.xlu0 %v5114_v24, %s4856_s7 }
 0xf28   :  { %v1585_v37 = vpop.xlane.xlu1 %1584 }
 0xf29   :  { %4731 = vrcp.f32 %v1585_v37  ;;  %v4608_v37 = vld [vmem:[%s5722_s15 + $0x8] sm:$0xff]  }
 0xf2c   :  { %v1588_v42 = vpop.xlane.xlu0 %1587  ;;  %v1600_v43 = vpop.permute.xlu1 %1599 }
 0xf2d   :  { %4733 = vrcp.f32 %v1588_v42  ;;  %4344 = vmatpush3.bf16.msra.mxu0 %v1600_v43  ;;  %v4612_v42 = vld [vmem:[%s5723_s17 + $0x8] sm:$0xff]  }
 0xf2e   :  { %4361 = vmatprep.subr.bf16.mxu0 %v4607_v36 }
 0xf30   :  { %v1647_v45 = vpop.permute.xlu0 %1646  ;;  %4346 = vmatmul.mubr.msk.bf16.vlgmr.msra.gmra.mrb[36].mxu0 %vm526_vm2, %v1597_v44 }
 0xf31   :  { %4350 = vmatpush3.bf16.msra.mxu1 %v1647_v45  ;;  %4362 = vmatpush3.bf16.msra.mxu0 %v4607_v36 }
 0xf32   :  { %4355 = vmatprep.subr.bf16.mxu1 %v4606_v49  ;;  %4363 = vmatprep.subr.bf16.mxu0 %v4608_v37 }
 0xf33   :  { %v4732_v18 = vpop.eup %4731 }
 0xf34   :  { %v1595_v46 = vmul.f32 %v4732_v18, %v4724_v31 }
 0xf35   :  { %4364 = vmatpush3.bf16.msra.mxu0 %v4608_v37 }
 0xf36   :  { %4365 = vmatprep.subr.bf16.mxu0 %v4609_v38 }
 0xf37   :  { %v4734_v24 = vpop.eup %4733 }
 0xf38   :  { %v1596_v47 = vmul.f32 %v4734_v24, %v4726_v32 }
 0xf39   :  { %4366 = vmatpush3.bf16.msra.mxu0 %v4609_v38 }
 0xf3a   :  { %v1598_v48 = vpack.c.bf16 %v1596_v47, %v1595_v46  ;;  %4367 = vmatprep.subr.bf16.mxu0 %v4610_v40 }
 0xf3c   :  { %4352 = vmatmul.mubr.msk.bf16.vlgmr.msra.gmra.mrb[36].mxu1 %vm526_vm2, %v1598_v48 }
 0xf3d   :  { %4356 = vmatpush3.bf16.msra.mxu1 %v4606_v49  ;;  %4368 = vmatpush3.bf16.msra.mxu0 %v4610_v40 }
 0xf3e   :  { %4373 = vmatprep.subr.bf16.mxu1 %v4611_v41 }
0x1003   :  { %v1639_v50 = vpop.f32.mrb[36].mxu0 }
0x1004   :  { %v4347_v51 = vpop.f32.mrb[37].mxu0 }
0x1005   :  { %v1642_v52 = vpop.f32.mrb[38].mxu0 }
0x1006   :  { %v1693_v53 = vpack.c.bf16 %v1642_v52, %v1639_v50  ;;  %v4348_v54 = vpop.f32.mrb[39].mxu0 }
0x1007   :  { %v3977_v54 = vld [vmem:[%s5724_s13] ss:$0 sm:$0xff] }
0x1008   :  { %4357 = vmatprep.mubr.msk.bf16.mxu1 %vm526_vm2, %v1693_v53 }
0x100f   :  { %v1686_v55 = vpop.f32.mrb[36].mxu1 }
0x1010   :  { %v4353_v56 = vpop.f32.mrb[37].mxu1 }
0x1011   :  { %v1689_v57 = vpop.f32.mrb[38].mxu1 }
0x1012   :  { %v1694_v58 = vpack.c.bf16 %v1689_v57, %v1686_v55  ;;  %v4354_v60 = vpop.f32.mrb[39].mxu1 }
0x1014   :  { %4358 = vmatmul.mubr.msk.bf16.vlgmr.msra.gmra.mrb[16].mxu1 %vm526_vm2, %v1694_v58 }
0x1015   :  { %4374 = vmatpush3.bf16.msra.mxu1 %v4611_v41 }
0x1016   :  { %4375 = vmatprep.subr.bf16.mxu1 %v4612_v42 }
0x1019   :  { %4376 = vmatpush3.bf16.msra.mxu1 %v4612_v42 }
0x10e7   :  { %v4359_v62 = vpop.f32.mrb[16].mxu1 }
0x10e8   :  { %v1741_v63 = vpop.f32.mrb[17].mxu1  ;;  %v4545_v0 = vadd.f32 %v4359_v62, %v3955_v61 }
0x10e9   :  { %v4546_v2 = vadd.f32 %v3955_v61, %v1741_v63  ;;  %v4360_v3 = vpop.f32.mrb[18].mxu1 }
0x10ea   :  { %v1744_v4 = vpop.f32.mrb[19].mxu1  ;;  %v4547_v7 = vadd.f32 %v4360_v3, %v3955_v61  ;;  %v5282_v10 = vadd.f32 %v4545_v0, %v5044_v6 }
0x10eb   :  { %v5279_v5 = vadd.f32 %v4546_v2, %v5030_v59  ;;  %v4548_v8 = vadd.f32 %v3955_v61, %v1744_v4  ;;  %v3978_v61 = vld [vmem:[%s5725_s14] ss:$0 sm:$0xff] }
0x10ec   :  { %v5290_v14 = vadd.f32 %v4547_v7, %v5048_v9  ;;  %v1772_v59 = vsel %vm75_vm0, %v5282_v10, 0.0 }
0x10ed   :  { %v5285_v11 = vadd.f32 %v4548_v8, %v5037_v1  ;;  %v1766_v13 = vsel %vm75_vm0, %v5279_v5, 0.0 }
0x10ee   :  { %1767 = vadd.xlane.f32.xlu1 %v1766_v13  ;;  %v1775_v6 = vsel %vm75_vm0, %v5290_v14, 0.0 }
0x10ef   :  { %v1769_v15 = vsel %vm75_vm0, %v5285_v11, 0.0 }
0x10f0   :  { %1770 = vadd.xlane.f32.xlu0 %v1769_v15 }
0x10f2   :  { %1773 = vadd.xlane.f32.xlu1 %v1772_v59 }
0x10f4   :  { %1776 = vadd.xlane.f32.xlu0 %v1775_v6 }
0x117b   :  { %v1768_v1 = vpop.xlane.xlu1 %1767 }
0x117c   :  { %v1778_v17 = vmul.f32 0.015625, %v1768_v1  ;;  %v4613_v1 = vld [vmem:[%s5723_s17 + $0x10] sm:$0xff]  }
0x117d   :  { %v1771_v19 = vpop.xlane.xlu0 %1770  ;;  %4377 = vmatprep.subr.bf16.mxu1 %v4613_v1 }
0x117e   :  { %v1782_v20 = vsub.f32 %v5279_v5, %v1778_v17  ;;  %v1779_v21 = vmul.f32 0.015625, %v1771_v19  ;;  %4378 = vmatpush3.bf16.msra.mxu1 %v4613_v1  ;;  %v4614_v17 = vld [vmem:[%s5723_s17 + $0x18] sm:$0xff]   ;;  %v4615_v19 = vld [vmem:[%s5723_s17 + $0x20] sm:$0xff]  }
0x117f   :  { %v1774_v9 = vpop.xlane.xlu1 %1773  ;;  %4379 = vmatprep.subr.bf16.mxu1 %v4614_v17 }
0x1180   :  { %v1783_v23 = vsub.f32 %v5285_v11, %v1779_v21  ;;  %v1780_v25 = vmul.f32 0.015625, %v1774_v9  ;;  %v1786_v26 = vmul.f32 %v1782_v20, %v1782_v20  ;;  %v4617_v21 = vld [vmem:[%s5723_s17 + $0x30] sm:$0xff]   ;;  %v4618_v9 = vld [vmem:[%s5723_s17 + $0x38] sm:$0xff]  }
0x1181   :  { %v1777_v27 = vpop.xlane.xlu0 %1776 }
0x1182   :  { %v1784_v28 = vsub.f32 %v5282_v10, %v1780_v25  ;;  %v1781_v29 = vmul.f32 0.015625, %v1777_v27  ;;  %v1790_v16 = vsel %vm75_vm0, %v1786_v26, 0.0  ;;  %v1787_v30 = vmul.f32 %v1783_v23, %v1783_v23  ;;  %4380 = vmatpush3.bf16.msra.mxu1 %v4614_v17 }
0x1183   :  { %1791 = vadd.xlane.f32.xlu1 %v1790_v16  ;;  %4381 = vmatprep.subr.bf16.mxu1 %v4615_v19 }
0x1184   :  { %v1785_v31 = vsub.f32 %v5290_v14, %v1781_v29  ;;  %v1793_v22 = vsel %vm75_vm0, %v1787_v30, 0.0  ;;  %v1788_v32 = vmul.f32 %v1784_v28, %v1784_v28 }
0x1185   :  { %1794 = vadd.xlane.f32.xlu0 %v1793_v22 }
0x1186   :  { %v1796_v33 = vsel %vm75_vm0, %v1788_v32, 0.0  ;;  %v1789_v34 = vmul.f32 %v1785_v31, %v1785_v31  ;;  %4382 = vmatpush3.bf16.msra.mxu1 %v4615_v19 }
0x1187   :  { %1797 = vadd.xlane.f32.xlu1 %v1796_v33 }
0x1188   :  { %v1799_v35 = vsel %vm75_vm0, %v1789_v34, 0.0 }
0x1189   :  { %1800 = vadd.xlane.f32.xlu0 %v1799_v35 }
0x1210   :  { %v1792_v43 = vpop.xlane.xlu1 %1791 }
0x1211   :  { %v1802_v44 = vmul.f32 0.015625, %v1792_v43 }
0x1212   :  { %v1795_v45 = vpop.xlane.xlu0 %1794 }
0x1213   :  { %v1806_v18 = vadd.f32 1e-05, %v1802_v44  ;;  %v1803_v24 = vmul.f32 0.015625, %v1795_v45 }
0x1214   :  { %v1798_v46 = vpop.xlane.xlu1 %1797 }
0x1215   :  { %4735 = vrsqrt.f32 %v1806_v18  ;;  %v1807_v47 = vadd.f32 1e-05, %v1803_v24  ;;  %v1804_v48 = vmul.f32 0.015625, %v1798_v46 }
0x1216   :  { %v1801_v49 = vpop.xlane.xlu0 %1800 }
0x1217   :  { %4737 = vrsqrt.f32 %v1807_v47  ;;  %v1808_v50 = vadd.f32 1e-05, %v1804_v48  ;;  %v1805_v51 = vmul.f32 0.015625, %v1801_v49 }
0x1219   :  { %4739 = vrsqrt.f32 %v1808_v50  ;;  %v1809_v52 = vadd.f32 1e-05, %v1805_v51 }
0x121b   :  { %4741 = vrsqrt.f32 %v1809_v52  ;;  %v3986_v52 = vld [vmem:[%s5727_s18] ss:$0 sm:$0xff] }
0x121f   :  { %v4736_v53 = vpop.eup %4735 }
0x1220   :  { %v1814_v55 = vmul.f32 %v4736_v53, %v1782_v20  ;;  %v4616_v20 = vld [vmem:[%s5723_s17 + $0x28] sm:$0xff]  }
0x1221   :  { %v4738_v56 = vpop.eup %4737  ;;  %4383 = vmatprep.subr.bf16.mxu1 %v4616_v20 }
0x1222   :  { %v1815_v57 = vmul.f32 %v4738_v56, %v1783_v23  ;;  %v1824_v58 = vmul.f32 %v3977_v54, %v1814_v55  ;;  %4384 = vmatpush3.bf16.msra.mxu1 %v4616_v20  ;;  %v3979_v23 = vld [vmem:[%s5726_s16] ss:$0 sm:$0xff] }
0x1223   :  { %v4740_v60 = vpop.eup %4739  ;;  %4385 = vmatprep.subr.bf16.mxu1 %v4617_v21 }
0x1224   :  { %v1816_v62 = vmul.f32 %v4740_v60, %v1784_v28  ;;  %v1825_v63 = vmul.f32 %v3977_v54, %v1815_v57  ;;  %v1834_v4 = vadd.f32 %v3978_v61, %v1824_v58 }
0x1225   :  { %v4742_v0 = vpop.eup %4741 }
0x1226   :  { %v1826_v2 = vmul.f32 %v3977_v54, %v1816_v62  ;;  %v1817_v3 = vmul.f32 %v4742_v0, %v1785_v31  ;;  %v1835_v7 = vadd.f32 %v3978_v61, %v1825_v63  ;;  %4386 = vmatpush3.bf16.msra.mxu1 %v4617_v21 }
0x1227   :  { %4387 = vmatprep.subr.bf16.mxu1 %v4618_v9 }
0x1228   :  { %v1827_v8 = vmul.f32 %v3977_v54, %v1817_v3  ;;  %v1838_v13 = vpack.c.bf16 %v1835_v7, %v1834_v4  ;;  %v1836_v15 = vadd.f32 %v3978_v61, %v1826_v2 }
0x122a   :  { %4369 = vmatprep.mubr.msk.bf16.mxu0 %vm75_vm0, %v1838_v13  ;;  %v1837_v59 = vadd.f32 %v3978_v61, %v1827_v8  ;;  %4388 = vmatpush3.bf16.msra.mxu1 %v4618_v9 }
0x122b   :  { %4399 = vmatprep.subr.bf16.mxu1 %v4848_v12 }
0x122c   :  { %v1839_v6 = vpack.c.bf16 %v1837_v59, %v1836_v15 }
0x122e   :  { %4370 = vmatmul.mubr.msk.bf16.vlgmr.msra.gmra.mrb[40].mxu0 %vm75_vm0, %v1839_v6 }
0x122f   :  { %2245 = vmatprep.mubr.bf16.mxu0 %v4847_v39 }
0x1301   :  { %v4371_v25 = vpop.f32.mrb[40].mxu0 }
0x1302   :  { %v1928_v26 = vadd.f32 %v4371_v25, %v3979_v23  ;;  %v1919_v27 = vpop.f32.mrb[41].mxu0 }
0x1303   :  { %v1920_v28 = vadd.f32 %v3979_v23, %v1919_v27  ;;  %v4372_v29 = vpop.f32.mrb[42].mxu0 }
0x1304   :  { %v1940_v16 = vmul.f32 0.70710677, %v1928_v26  ;;  %v1931_v30 = vadd.f32 %v4372_v29, %v3979_v23  ;;  %v1922_v31 = vpop.f32.mrb[43].mxu0  ;;  %v1936_v42 = vmul.f32 0.5, %v1928_v26 }
0x1305   :  { %v1938_v22 = vmul.f32 0.70710677, %v1920_v28  ;;  %v1923_v32 = vadd.f32 %v3979_v23, %v1922_v31  ;;  %v1934_v45 = vmul.f32 0.5, %v1920_v28  ;;  %v4624_v31 = vld [vmem:[%s5717_s10 + $0x54] ss:$8 sps:$4 sm:$0xff]  }
0x1306   :  { %4743 = verf.f32 %v1940_v16  ;;  %v1941_v33 = vmul.f32 0.70710677, %v1931_v30  ;;  %v1937_v43 = vmul.f32 0.5, %v1931_v30  ;;  %v4621_v16 = vld [vmem:[%s5717_s10 + $0x44] ss:$8 sps:$4 sm:$0xff]  }
0x1307   :  { %4745 = verf.f32 %v1938_v22  ;;  %v1939_v34 = vmul.f32 0.70710677, %v1923_v32  ;;  %v1935_v18 = vmul.f32 0.5, %v1923_v32  ;;  %v4619_v30 = vld [vmem:[%s5717_s10 + $0x40] ss:$8 sps:$4 sm:$0xff]   ;;  %2213 = vmatprep.subr.bf16.mxu0 %v4621_v16 }
0x1308   :  { %4747 = verf.f32 %v1941_v33  ;;  %2214 = vmatpush1.bf16.msra.mxu0 %v4619_v30  ;;  %v4622_v22 = vld [vmem:[%s5717_s10 + $0x50] ss:$8 sps:$4 sm:$0xff]   ;;  %v4627_v32 = vld [vmem:[%s5717_s10 + $0x64] ss:$8 sps:$4 sm:$0xff]   ;;  %v4625_v33 = vld [vmem:[%s5717_s10 + $0x60] ss:$8 sps:$4 sm:$0xff]  }
0x1309   :  { %4749 = verf.f32 %v1939_v34  ;;  %2215 = vmatprep.subr.bf16.mxu0 %v4624_v31  ;;  %v4630_v34 = vld [vmem:[%s5717_s10 + $0x74] ss:$8 sps:$4 sm:$0xff]  }
0x130c   :  { %2216 = vmatpush1.bf16.msra.mxu0 %v4622_v22 }
0x130d   :  { %2217 = vmatprep.subr.bf16.mxu0 %v4627_v32 }
0x1310   :  { %v4744_v35 = vpop.eup %4743  ;;  %2218 = vmatpush1.bf16.msra.mxu0 %v4625_v33 }
0x1311   :  { %v4746_v36 = vpop.eup %4745  ;;  %v1948_v37 = vadd.f32 1.0, %v4744_v35  ;;  %v4628_v35 = vld [vmem:[%s5717_s10 + $0x70] ss:$8 sps:$4 sm:$0xff]   ;;  %2219 = vmatprep.subr.bf16.mxu0 %v4630_v34 }
0x1312   :  { %v4748_v38 = vpop.eup %4747  ;;  %v1946_v40 = vadd.f32 1.0, %v4746_v36 }
0x1313   :  { %v4750_v41 = vpop.eup %4749  ;;  %v1949_v44 = vadd.f32 1.0, %v4748_v38  ;;  %v1952_v46 = vmul.f32 %v1948_v37, %v1936_v42 }
0x1314   :  { %v1947_v24 = vadd.f32 1.0, %v4750_v41  ;;  %v1950_v48 = vmul.f32 %v1946_v40, %v1934_v45  ;;  %2220 = vmatpush1.bf16.msra.mxu0 %v4628_v35 }
0x1315   :  { %v1953_v47 = vmul.f32 %v1949_v44, %v1937_v43  ;;  %4393 = vmatprep.subr.bf16.mxu0 %v4848_v12 }
0x1316   :  { %v1951_v49 = vmul.f32 %v1947_v24, %v1935_v18 }
0x1317   :  { %v1955_v50 = vpack.c.bf16 %v1953_v47, %v1952_v46 }
0x1318   :  { %v1954_v51 = vpack.c.bf16 %v1951_v49, %v1950_v48  ;;  %v3997_v48 = vld [vmem:[%s5718_s8 + $0x1] ss:$0 sm:$0xff] }
0x131a   :  { %4389 = vmatprep.mubr.bf16.mxu1 %v1954_v51 }
0x131b   :  { %4390 = vmatmul.mubr.bf16.vlgmr.msra.gmra.mrb[40].mxu1 %v1955_v50 }
0x131c   :  { %4401 = vmatprep.mubr.msk.bf16.mxu1 %vm4849_vm1, %v4848_v12 }
0x13ee   :  { %v4391_v53 = vpop.f32.mrb[40].mxu1 }
0x13ef   :  { %v2061_v54 = vpop.f32.mrb[41].mxu1  ;;  %v2070_v55 = vadd.f32 %v4391_v53, %v3986_v52 }
0x13f0   :  { %v2062_v56 = vadd.f32 %v3986_v52, %v2061_v54  ;;  %v4392_v57 = vpop.f32.mrb[42].mxu1  ;;  %v3998_v54 = vld [vmem:[%s5719_s9 + $0x1] ss:$0 sm:$0xff] }
0x13f1   :  { %v2064_v58 = vpop.f32.mrb[43].mxu1  ;;  %v2073_v61 = vadd.f32 %v4392_v57, %v3986_v52  ;;  %v5364_v63 = vadd.f32 %v2070_v55, %v5282_v10 }
0x13f2   :  { %v5361_v60 = vadd.f32 %v2062_v56, %v5279_v5  ;;  %v2065_v62 = vadd.f32 %v3986_v52, %v2064_v58 }
0x13f3   :  { %v5372_v3 = vadd.f32 %v2073_v61, %v5290_v14  ;;  %v2090_v5 = vsel %vm75_vm0, %v5364_v63, 0.0 }
0x13f4   :  { %v5367_v0 = vadd.f32 %v2065_v62, %v5285_v11  ;;  %v2084_v2 = vsel %vm75_vm0, %v5361_v60, 0.0 }
0x13f5   :  { %2085 = vadd.xlane.f32.xlu1 %v2084_v2  ;;  %v2093_v10 = vsel %vm75_vm0, %v5372_v3, 0.0 }
0x13f6   :  { %v2087_v4 = vsel %vm75_vm0, %v5367_v0, 0.0 }
0x13f7   :  { %2088 = vadd.xlane.f32.xlu0 %v2087_v4 }
0x13f9   :  { %2091 = vadd.xlane.f32.xlu1 %v2090_v5 }
0x13fb   :  { %2094 = vadd.xlane.f32.xlu0 %v2093_v10 }
0x1482   :  { %v2086_v11 = vpop.xlane.xlu1 %2085 }
0x1483   :  { %v2096_v7 = vmul.f32 0.015625, %v2086_v11 }
0x1484   :  { %v2089_v8 = vpop.xlane.xlu0 %2088 }
0x1485   :  { %v2100_v13 = vsub.f32 %v5361_v60, %v2096_v7  ;;  %v2097_v15 = vmul.f32 0.015625, %v2089_v8 }
0x1486   :  { %v2092_v14 = vpop.xlane.xlu1 %2091 }
0x1487   :  { %v2101_v59 = vsub.f32 %v5367_v0, %v2097_v15  ;;  %v2098_v6 = vmul.f32 0.015625, %v2092_v14  ;;  %v2104_v1 = vmul.f32 %v2100_v13, %v2100_v13 }
0x1488   :  { %v2095_v17 = vpop.xlane.xlu0 %2094 }
0x1489   :  { %v2102_v19 = vsub.f32 %v5364_v63, %v2098_v6  ;;  %v2099_v20 = vmul.f32 0.015625, %v2095_v17  ;;  %v2108_v21 = vsel %vm75_vm0, %v2104_v1, 0.0  ;;  %v2105_v9 = vmul.f32 %v2101_v59, %v2101_v59 }
0x148a   :  { %2109 = vadd.xlane.f32.xlu1 %v2108_v21 }
0x148b   :  { %v2103_v23 = vsub.f32 %v5372_v3, %v2099_v20  ;;  %v2111_v25 = vsel %vm75_vm0, %v2105_v9, 0.0  ;;  %v2106_v26 = vmul.f32 %v2102_v19, %v2102_v19 }
0x148c   :  { %2112 = vadd.xlane.f32.xlu0 %v2111_v25 }
0x148d   :  { %v2114_v27 = vsel %vm75_vm0, %v2106_v26, 0.0  ;;  %v2107_v28 = vmul.f32 %v2103_v23, %v2103_v23 }
0x148e   :  { %2115 = vadd.xlane.f32.xlu1 %v2114_v27 }
0x148f   :  { %v2117_v29 = vsel %vm75_vm0, %v2107_v28, 0.0 }
0x1490   :  { %2118 = vadd.xlane.f32.xlu0 %v2117_v29 }
0x1517   :  { %v2110_v36 = vpop.xlane.xlu1 %2109 }
0x1518   :  { %v2120_v37 = vmul.f32 0.015625, %v2110_v36 }
0x1519   :  { %v2113_v38 = vpop.xlane.xlu0 %2112 }
0x151a   :  { %v2124_v40 = vadd.f32 1e-05, %v2120_v37  ;;  %v2121_v41 = vmul.f32 0.015625, %v2113_v38 }
0x151b   :  { %v2116_v42 = vpop.xlane.xlu1 %2115 }
0x151c   :  { %4751 = vrsqrt.f32 %v2124_v40  ;;  %v2125_v43 = vadd.f32 1e-05, %v2121_v41  ;;  %v2122_v44 = vmul.f32 0.015625, %v2116_v42 }
0x151d   :  { %v2119_v45 = vpop.xlane.xlu0 %2118 }
0x151e   :  { %4753 = vrsqrt.f32 %v2125_v43  ;;  %v2126_v18 = vadd.f32 1e-05, %v2122_v44  ;;  %v2123_v24 = vmul.f32 0.015625, %v2119_v45 }
0x1520   :  { %4755 = vrsqrt.f32 %v2126_v18  ;;  %v2127_v46 = vadd.f32 1e-05, %v2123_v24 }
0x1522   :  { %4757 = vrsqrt.f32 %v2127_v46 }
0x1526   :  { %v4752_v47 = vpop.eup %4751 }
0x1527   :  { %v2132_v49 = vmul.f32 %v4752_v47, %v2100_v13 }
0x1528   :  { %v4754_v50 = vpop.eup %4753 }
0x1529   :  { %v2142_v51 = vmul.f32 %v3997_v48, %v2132_v49  ;;  %v2133_v52 = vmul.f32 %v4754_v50, %v2101_v59 }
0x152a   :  { %v4756_v53 = vpop.eup %4755 }
0x152b   :  { %v2143_v55 = vmul.f32 %v3997_v48, %v2133_v52  ;;  %v2134_v57 = vmul.f32 %v4756_v53, %v2102_v19  ;;  %v2152_v61 = vadd.f32 %v3998_v54, %v2142_v51 }
0x152c   :  { %v4758_v56 = vpop.eup %4757 }
0x152d   :  { %v2135_v58 = vmul.f32 %v4758_v56, %v2103_v23  ;;  %v2153_v62 = vadd.f32 %v3998_v54, %v2143_v55  ;;  %v2144_v5 = vmul.f32 %v3997_v48, %v2134_v57 }
0x152f   :  { %v2156_v2 = vpack.c.bf16 %v2153_v62, %v2152_v61  ;;  %v2145_v4 = vmul.f32 %v3997_v48, %v2135_v58  ;;  %v2154_v11 = vadd.f32 %v3998_v54, %v2144_v5 }
0x1531   :  { %4015 = vmatmul.mubr.msk.bf16.vlgmr.msra.gmra.mrb[44].mxu0 %vm75_vm0, %v2156_v2  ;;  %v2155_v10 = vadd.f32 %v3998_v54, %v2145_v4 }
0x1532   :  { %2255 = vmatprep.mubr.bf16.mxu0 %v4847_v39 }
0x1533   :  { %v2157_v7 = vpack.c.bf16 %v2155_v10, %v2154_v11 }
0x1539   :  { %4016 = vmatmul.mubr.msk.bf16.gmra.mrb[48].mxu0 %vm75_vm0, %v2157_v7 }
0x153a   :  { %4395 = vmatprep.mubr.msk.bf16.mxu0 %vm4849_vm1, %v4848_v12 }
0x1604   :  { %v2247_v8 = vpop.f32.mrb[44].mxu0 }
0x1605   :  { %v2249_v13 = vpop.f32.mrb[45].mxu0 }
0x1606   :  { %v2251_v15 = vpop.f32.mrb[46].mxu0 }
0x1607   :  { %v5424_v14 = vpack.c.bf16 %v2251_v15, %v2247_v8  ;;  %v2253_v59 = vpop.f32.mrb[47].mxu0 }
0x1608   :  { %v5426_v6 = vpack.c.bf16 %v2253_v59, %v2249_v13 }
0x1609   :  { %2282 = vrot.lane.b32.xlu1 %v5424_v14, %s4850_s22 }
0x160c   :  { %v2257_v39 = vpop.f32.mrb[48].mxu0 }
0x160d   :  { %v2259_v1 = vpop.f32.mrb[49].mxu0 }
0x160e   :  { %v2261_v17 = vpop.f32.mrb[50].mxu0 }
0x160f   :  { %v5430_v19 = vpack.c.bf16 %v2261_v17, %v2257_v39  ;;  %v2263_v20 = vpop.f32.mrb[51].mxu0  ;;  %v4631_v17 = vld [vmem:[%s5720_s11 + $0x20] sm:$0xff]  }
0x1610   :  { %v5432_v21 = vpack.c.bf16 %v2263_v20, %v2259_v1 }
0x1611   :  { %2332 = vrot.lane.b32.xlu0 %v5430_v19, %s4850_s22 }
0x167b   :  { %v2283_v9 = vpop.permute.xlu1 %2282 }
0x167c   :  { %v2288_v23 = vsel %vm526_vm2, %v2283_v9, 0 }
0x167d   :  { %4394 = vmatpush3.bf16.xpose.msra.mxu0 %v2288_v23 }
0x167e   :  { %4405 = vmatprep.subr.bf16.mxu0 %v4848_v12 }
0x1683   :  { %v2333_v25 = vpop.permute.xlu0 %2332 }
0x1684   :  { %v2338_v26 = vsel %vm526_vm2, %v2333_v25, 0  ;;  %4396 = vmatmul.mubr.msk.bf16.vlgmr.msra.gmra.mrb[52].mxu0 %vm526_vm2, %v5424_v14 }
0x1685   :  { %4400 = vmatpush3.bf16.xpose.msra.mxu1 %v2338_v26  ;;  %4406 = vmatpush3.bf16.msra.mxu0 %v5426_v6 }
0x1686   :  { %4411 = vmatprep.subr.bf16.mxu1 %v4848_v12  ;;  %4407 = vmatprep.mubr.msk.bf16.mxu0 %vm4849_vm1, %v4848_v12 }
0x1687   :  { %4417 = vmatprep.subr.bf16.mxu0 %v4631_v17 }
0x168c   :  { %4402 = vmatmul.mubr.msk.bf16.vlgmr.msra.gmra.mrb[44].mxu1 %vm526_vm2, %v5430_v19 }
0x168d   :  { %4412 = vmatpush3.bf16.msra.mxu1 %v5432_v21  ;;  %4413 = vmatprep.mubr.msk.bf16.mxu1 %vm4849_vm1, %v4848_v12 }
0x168e   :  { %4423 = vmatprep.subr.bf16.mxu1 %v4848_v12 }
0x1757   :  { %v2324_v27 = vpop.f32.mrb[52].mxu0 }
0x1758   :  { %v4397_v28 = vpop.f32.mrb[53].mxu0  ;;  %v2381_v29 = vsel %vm526_vm2, %v2324_v27, -inf }
0x1759   :  { %2382 = vmax.xlane.f32.xlu1 %v2381_v29  ;;  %v2327_v16 = vpop.f32.mrb[54].mxu0 }
0x175a   :  { %v4398_v30 = vpop.f32.mrb[55].mxu0  ;;  %v2384_v31 = vsel %vm526_vm2, %v2327_v16, -inf }
0x175b   :  { %2385 = vmax.xlane.f32.xlu0 %v2384_v31 }
0x175f   :  { %v2374_v22 = vpop.f32.mrb[44].mxu1 }
0x1760   :  { %v4403_v32 = vpop.f32.mrb[45].mxu1  ;;  %v2387_v33 = vsel %vm526_vm2, %v2374_v22, -inf }
0x1761   :  { %v2377_v34 = vpop.f32.mrb[46].mxu1  ;;  %2388 = vmax.xlane.f32.xlu1 %v2387_v33 }
0x1762   :  { %v4404_v35 = vpop.f32.mrb[47].mxu1  ;;  %v2390_v36 = vsel %vm526_vm2, %v2377_v34, -inf }
0x1763   :  { %2391 = vmax.xlane.f32.xlu0 %v2390_v36 }
0x17e6   :  { %v2383_v37 = vpop.xlane.xlu1 %2382 }
0x17e7   :  { %v2393_v38 = vsub.f32 %v2324_v27, %v2383_v37 }
0x17e8   :  { %v2386_v40 = vpop.xlane.xlu0 %2385 }
0x17e9   :  { %v2397_v41 = vmul.f32 1.442695, %v2393_v38  ;;  %v2394_v42 = vsub.f32 %v2327_v16, %v2386_v40 }
0x17eb   :  { %4759 = vpow2.f32 %v2397_v41  ;;  %v2399_v43 = vmul.f32 1.442695, %v2394_v42 }
0x17ed   :  { %4761 = vpow2.f32 %v2399_v43 }
0x17ee   :  { %v2389_v44 = vpop.xlane.xlu1 %2388 }
0x17ef   :  { %v2395_v45 = vsub.f32 %v2374_v22, %v2389_v44 }
0x17f0   :  { %v2392_v18 = vpop.xlane.xlu0 %2391 }
0x17f1   :  { %v2401_v24 = vmul.f32 1.442695, %v2395_v45  ;;  %v2396_v46 = vsub.f32 %v2377_v34, %v2392_v18 }
0x17f3   :  { %4763 = vpow2.f32 %v2401_v24  ;;  %v2403_v47 = vmul.f32 1.442695, %v2396_v46 }
0x17f5   :  { %v4760_v48 = vpop.eup %4759  ;;  %4765 = vpow2.f32 %v2403_v47 }
0x17f6   :  { %v2405_v49 = vsel %vm526_vm2, %v4760_v48, 0.0 }
0x17f7   :  { %v4762_v50 = vpop.eup %4761  ;;  %2406 = vadd.xlane.f32.xlu1 %v2405_v49 }
0x17f8   :  { %v2408_v51 = vsel %vm526_vm2, %v4762_v50, 0.0 }
0x17f9   :  { %2409 = vadd.xlane.f32.xlu0 %v2408_v51 }
0x17fd   :  { %v4764_v52 = vpop.eup %4763 }
0x17fe   :  { %v2411_v53 = vsel %vm526_vm2, %v4764_v52, 0.0 }
0x17ff   :  { %v4766_v54 = vpop.eup %4765  ;;  %2412 = vadd.xlane.f32.xlu1 %v2411_v53 }
0x1800   :  { %v2414_v55 = vsel %vm526_vm2, %v4766_v54, 0.0 }
0x1801   :  { %2415 = vadd.xlane.f32.xlu0 %v2414_v55 }
0x1810   :  { %2590 = vrot.lane.b32.xlu1 %v5424_v14, %s4852_s4 }
0x1814   :  { %2641 = vrot.lane.b32.xlu1 %v5430_v19, %s4852_s4 }
0x1817   :  { %2588 = vrot.lane.b32.xlu0 %v5424_v14, %s4851_s23 }
0x1818   :  { %2639 = vrot.lane.b32.xlu1 %v5430_v19, %s4851_s23 }
0x1884   :  { %v2407_v56 = vpop.xlane.xlu1 %2406 }
0x1885   :  { %4767 = vrcp.f32 %v2407_v56 }
0x1886   :  { %v2410_v57 = vpop.xlane.xlu0 %2409 }
0x1887   :  { %4769 = vrcp.f32 %v2410_v57 }
0x188c   :  { %v2413_v58 = vpop.xlane.xlu1 %2412 }
0x188d   :  { %4771 = vrcp.f32 %v2413_v58 }
0x188e   :  { %v2416_v61 = vpop.xlane.xlu0 %2415 }
0x188f   :  { %v4768_v62 = vpop.eup %4767  ;;  %4773 = vrcp.f32 %v2416_v61 }
0x1890   :  { %v2421_v4 = vmul.f32 %v4768_v62, %v4760_v48  ;;  %v2591_v15 = vpop.permute.xlu1 %2590 }
0x1891   :  { %v4770_v2 = vpop.eup %4769  ;;  %v2596_v39 = vsel %vm526_vm2, %v2591_v15, 0 }
0x1892   :  { %v2422_v5 = vmul.f32 %v4770_v2, %v4762_v50  ;;  %v2589_v1 = vpop.permute.xlu0 %2588 }
0x1894   :  { %v2425_v10 = vpack.c.bf16 %v2422_v5, %v2421_v4  ;;  %v2642_v29 = vpop.permute.xlu1 %2641 }
0x1895   :  { %v2647_v22 = vsel %vm526_vm2, %v2642_v29, 0 }
0x1896   :  { %4408 = vmatmul.mubr.msk.bf16.vlgmr.msra.gmra.mrb[56].mxu0 %vm526_vm2, %v2425_v10 }
0x1897   :  { %v4772_v11 = vpop.eup %4771  ;;  %4418 = vmatpush3.bf16.msra.mxu0 %v4631_v17 }
0x1898   :  { %v2423_v8 = vmul.f32 %v4772_v11, %v4764_v52  ;;  %4429 = vmatprep.subr.bf16.mxu0 %v4848_v12  ;;  %v2640_v38 = vpop.permute.xlu1 %2639 }
0x1899   :  { %v4774_v7 = vpop.eup %4773 }
0x189a   :  { %v2424_v13 = vmul.f32 %v4774_v7, %v4766_v54 }
0x189c   :  { %v2426_v59 = vpack.c.bf16 %v2424_v13, %v2423_v8 }
0x189e   :  { %4414 = vmatmul.mubr.msk.bf16.vlgmr.msra.gmra.mrb[48].mxu1 %vm526_vm2, %v2426_v59 }
0x189f   :  { %4424 = vmatpush3.bf16.xpose.msra.mxu1 %v2596_v39  ;;  %4425 = vmatprep.mubr.msk.bf16.mxu1 %vm4849_vm1, %v4848_v12 }
0x18a0   :  { %4435 = vmatprep.subr.bf16.mxu1 %v4848_v12 }
0x18a6   :  { %4426 = vmatmul.mubr.msk.bf16.vlgmr.msra.gmra.mrb[52].mxu1 %vm526_vm2, %v2589_v1 }
0x18a7   :  { %4437 = vmatprep.mubr.msk.bf16.mxu1 %vm4849_vm1, %v4848_v12 }
0x1969   :  { %v2464_v20 = vpop.f32.mrb[56].mxu0 }
0x196a   :  { %v4409_v9 = vpop.f32.mrb[57].mxu0 }
0x196b   :  { %v2467_v23 = vpop.f32.mrb[58].mxu0 }
0x196c   :  { %v2515_v25 = vpack.c.bf16 %v2467_v23, %v2464_v20  ;;  %v4410_v26 = vpop.f32.mrb[59].mxu0 }
0x196e   :  { %4419 = vmatprep.mubr.msk.bf16.mxu0 %vm526_vm2, %v2515_v25 }
0x1971   :  { %v2508_v27 = vpop.f32.mrb[48].mxu1 }
0x1972   :  { %v4415_v28 = vpop.f32.mrb[49].mxu1 }
0x1973   :  { %v2511_v16 = vpop.f32.mrb[50].mxu1 }
0x1974   :  { %v2516_v30 = vpack.c.bf16 %v2511_v16, %v2508_v27  ;;  %v4416_v31 = vpop.f32.mrb[51].mxu1 }
0x1976   :  { %4420 = vmatmul.mubr.msk.bf16.vlgmr.msra.gmra.mrb[60].mxu0 %vm526_vm2, %v2516_v30 }
0x1977   :  { %4430 = vmatpush3.bf16.xpose.msra.mxu0 %v2647_v22  ;;  %4431 = vmatprep.mubr.msk.bf16.mxu0 %vm4849_vm1, %v4848_v12 }
0x1978   :  { %4441 = vmatprep.subr.bf16.mxu0 %v4848_v12 }
0x1979   :  { %v2632_v32 = vpop.f32.mrb[52].mxu1 }
0x197a   :  { %v4427_v33 = vpop.f32.mrb[53].mxu1  ;;  %v2690_v34 = vsel %vm526_vm2, %v2632_v32, -inf }
0x197b   :  { %2691 = vmax.xlane.f32.xlu0 %v2690_v34  ;;  %v2635_v35 = vpop.f32.mrb[54].mxu1 }
0x197c   :  { %v4428_v36 = vpop.f32.mrb[55].mxu1  ;;  %v2693_v37 = vsel %vm526_vm2, %v2635_v35, -inf }
0x197d   :  { %2694 = vmax.xlane.f32.xlu1 %v2693_v37 }
0x197e   :  { %4432 = vmatmul.mubr.msk.bf16.vlgmr.msra.gmra.mrb[64].mxu0 %vm526_vm2, %v2640_v38 }
0x197f   :  { %4443 = vmatprep.mubr.msk.bf16.mxu0 %vm4849_vm1, %v4848_v12 }
0x198e   :  { %2737 = vrot.lane.b32.xlu1 %v5426_v6, %s4851_s23 }
0x1992   :  { %2899 = vrot.lane.b32.xlu1 %v5424_v14, %s4854_s26 }
0x1996   :  { %2952 = vrot.lane.b32.xlu1 %v5430_v19, %s4853_s25 }
0x1a08   :  { %v2692_v40 = vpop.xlane.xlu0 %2691 }
0x1a09   :  { %v2702_v41 = vsub.f32 %v2632_v32, %v2692_v40 }
0x1a0a   :  { %v2695_v42 = vpop.xlane.xlu1 %2694 }
0x1a0b   :  { %v2706_v43 = vmul.f32 1.442695, %v2702_v41  ;;  %v2703_v44 = vsub.f32 %v2635_v35, %v2695_v42 }
0x1a0d   :  { %4775 = vpow2.f32 %v2706_v43  ;;  %v2708_v45 = vmul.f32 1.442695, %v2703_v44 }
0x1a0e   :  { %v2738_v18 = vpop.permute.xlu1 %2737 }
0x1a0f   :  { %4777 = vpow2.f32 %v2708_v45  ;;  %4436 = vmatpush3.bf16.msra.mxu1 %v2738_v18 }
0x1a10   :  { %4453 = vmatprep.subr.bf16.mxu1 %v4848_v12 }
0x1a12   :  { %v2900_v5 = vpop.permute.xlu1 %2899 }
0x1a16   :  { %v2953_v11 = vpop.permute.xlu1 %2952 }
0x1a17   :  { %v4776_v24 = vpop.eup %4775  ;;  %v2958_v7 = vsel %vm526_vm2, %v2953_v11, 0 }
0x1a18   :  { %v2714_v46 = vsel %vm526_vm2, %v4776_v24, 0.0 }
0x1a19   :  { %v4778_v47 = vpop.eup %4777  ;;  %2715 = vadd.xlane.f32.xlu0 %v2714_v46 }
0x1a1a   :  { %v2717_v48 = vsel %vm526_vm2, %v4778_v47, 0.0 }
0x1a1d   :  { %2718 = vadd.xlane.f32.xlu0 %v2717_v48  ;;  %v4632_v48 = vld [vmem:[%s5720_s11 + $0x28] sm:$0xff]  }
0x1a33   :  { %2901 = vrot.lane.b32.xlu0 %v5424_v14, %s4853_s25 }
0x1a37   :  { %2950 = vrot.lane.b32.xlu0 %v5430_v19, %s4854_s26 }
0x1a51   :  { %v2683_v49 = vpop.f32.mrb[64].mxu0 }
0x1a52   :  { %v4433_v50 = vpop.f32.mrb[65].mxu0  ;;  %v2696_v51 = vsel %vm526_vm2, %v2683_v49, -inf }
0x1a53   :  { %2697 = vmax.xlane.f32.xlu1 %v2696_v51  ;;  %v2686_v52 = vpop.f32.mrb[66].mxu0 }
0x1a54   :  { %v4434_v53 = vpop.f32.mrb[67].mxu0  ;;  %v2699_v54 = vsel %vm526_vm2, %v2686_v52, -inf }
0x1a56   :  { %2700 = vmax.xlane.f32.xlu0 %v2699_v54 }
0x1aa6   :  { %v2716_v55 = vpop.xlane.xlu0 %2715 }
0x1aa7   :  { %4779 = vrcp.f32 %v2716_v55 }
0x1aaa   :  { %v2719_v56 = vpop.xlane.xlu0 %2718 }
0x1aab   :  { %4781 = vrcp.f32 %v2719_v56 }
0x1aae   :  { %v2902_v2 = vpop.permute.xlu0 %2901 }
0x1aaf   :  { %v2907_v10 = vsel %vm526_vm2, %v2902_v2, 0 }
0x1ab1   :  { %v4780_v57 = vpop.eup %4779 }
0x1ab2   :  { %v2730_v61 = vmul.f32 %v4780_v57, %v4776_v24  ;;  %v2951_v8 = vpop.permute.xlu0 %2950 }
0x1ab5   :  { %v4782_v58 = vpop.eup %4781 }
0x1ab6   :  { %v2731_v62 = vmul.f32 %v4782_v58, %v4778_v47 }
0x1ab8   :  { %v2734_v4 = vpack.c.bf16 %v2731_v62, %v2730_v61 }
0x1aba   :  { %4438 = vmatmul.mubr.msk.bf16.vlgmr.msra.gmra.mrb[56].mxu1 %vm526_vm2, %v2734_v4 }
0x1abb   :  { %4454 = vmatpush3.bf16.xpose.msra.mxu1 %v2907_v10  ;;  %4455 = vmatprep.mubr.msk.bf16.mxu1 %vm4849_vm1, %v4848_v12 }
0x1abc   :  { %4459 = vmatprep.subr.bf16.mxu1 %v4848_v12 }
0x1ac2   :  { %4456 = vmatmul.mubr.msk.bf16.vlgmr.msra.gmra.mrb[60].mxu1 %vm526_vm2, %v2900_v5 }
0x1ac3   :  { %4460 = vmatpush3.bf16.xpose.msra.mxu1 %v2958_v7  ;;  %4461 = vmatprep.mubr.msk.bf16.mxu1 %vm4849_vm1, %v4848_v12 }
0x1ac4   :  { %4471 = vmatprep.subr.bf16.mxu1 %v4848_v12 }
0x1aca   :  { %4462 = vmatmul.mubr.msk.bf16.vlgmr.msra.gmra.mrb[64].mxu1 %vm526_vm2, %v2951_v8 }
0x1acb   :  { %4473 = vmatprep.mubr.msk.bf16.mxu1 %vm4849_vm1, %v4848_v12 }
0x1ae0   :  { %v2698_v13 = vpop.xlane.xlu1 %2697 }
0x1ae1   :  { %v2704_v15 = vsub.f32 %v2683_v49, %v2698_v13 }
0x1ae3   :  { %v2710_v59 = vmul.f32 1.442695, %v2704_v15  ;;  %v2701_v39 = vpop.xlane.xlu0 %2700 }
0x1ae4   :  { %v2705_v1 = vsub.f32 %v2686_v52, %v2701_v39 }
0x1ae5   :  { %4783 = vpow2.f32 %v2710_v59 }
0x1ae6   :  { %v2712_v17 = vmul.f32 1.442695, %v2705_v1 }
0x1ae8   :  { %4785 = vpow2.f32 %v2712_v17 }
0x1aef   :  { %v4784_v20 = vpop.eup %4783 }
0x1af0   :  { %v2720_v9 = vsel %vm526_vm2, %v4784_v20, 0.0 }
0x1af1   :  { %2721 = vadd.xlane.f32.xlu0 %v2720_v9 }
0x1af2   :  { %v4786_v23 = vpop.eup %4785 }
0x1af3   :  { %v2723_v25 = vsel %vm526_vm2, %v4786_v23, 0.0 }
0x1af4   :  { %2724 = vadd.xlane.f32.xlu1 %v2723_v25 }
0x1b07   :  { %2785 = vrot.lane.b32.xlu0 %v5432_v21, %s4851_s23 }
0x1b7e   :  { %v2722_v26 = vpop.xlane.xlu0 %2721 }
0x1b7f   :  { %4787 = vrcp.f32 %v2722_v26 }
0x1b81   :  { %v2725_v27 = vpop.xlane.xlu1 %2724 }
0x1b82   :  { %4789 = vrcp.f32 %v2725_v27  ;;  %v2786_v28 = vpop.permute.xlu0 %2785 }
0x1b83   :  { %4442 = vmatpush3.bf16.msra.mxu0 %v2786_v28 }
0x1b84   :  { %4447 = vmatprep.subr.bf16.mxu0 %v4632_v48 }
0x1b89   :  { %v4788_v29 = vpop.eup %4787 }
0x1b8a   :  { %v2732_v30 = vmul.f32 %v4788_v29, %v4784_v20 }
0x1b8c   :  { %v4790_v16 = vpop.eup %4789 }
0x1b8d   :  { %v2733_v31 = vmul.f32 %v4790_v16, %v4786_v23  ;;  %v2777_v22 = vpop.f32.mrb[56].mxu1 }
0x1b8e   :  { %v4439_v32 = vpop.f32.mrb[57].mxu1 }
0x1b8f   :  { %v2780_v33 = vpop.f32.mrb[58].mxu1  ;;  %v2735_v34 = vpack.c.bf16 %v2733_v31, %v2732_v30 }
0x1b90   :  { %v2832_v35 = vpack.c.bf16 %v2780_v33, %v2777_v22  ;;  %v4440_v36 = vpop.f32.mrb[59].mxu1 }
0x1b91   :  { %4444 = vmatmul.mubr.msk.bf16.vlgmr.msra.gmra.mrb[68].mxu0 %vm526_vm2, %v2735_v34 }
0x1b92   :  { %4449 = vmatprep.mubr.msk.bf16.mxu0 %vm526_vm2, %v2832_v35  ;;  %4448 = vmatpush3.bf16.msra.mxu0 %v4632_v48 }
0x1b93   :  { %4465 = vmatprep.subr.bf16.mxu0 %v4848_v12 }
0x1b95   :  { %v2943_v37 = vpop.f32.mrb[60].mxu1 }
0x1b96   :  { %v4457_v38 = vpop.f32.mrb[61].mxu1  ;;  %v3001_v40 = vsel %vm526_vm2, %v2943_v37, -inf }
0x1b97   :  { %v2946_v41 = vpop.f32.mrb[62].mxu1  ;;  %3002 = vmax.xlane.f32.xlu1 %v3001_v40 }
0x1b98   :  { %v4458_v42 = vpop.f32.mrb[63].mxu1  ;;  %v3004_v43 = vsel %vm526_vm2, %v2946_v41, -inf }
0x1b9b   :  { %3005 = vmax.xlane.f32.xlu1 %v3004_v43 }
0x1b9d   :  { %v2994_v44 = vpop.f32.mrb[64].mxu1 }
0x1b9e   :  { %v4463_v45 = vpop.f32.mrb[65].mxu1  ;;  %v3007_v18 = vsel %vm526_vm2, %v2994_v44, -inf }
0x1b9f   :  { %v2997_v24 = vpop.f32.mrb[66].mxu1  ;;  %3008 = vmax.xlane.f32.xlu1 %v3007_v18 }
0x1ba0   :  { %v4464_v46 = vpop.f32.mrb[67].mxu1  ;;  %v3010_v47 = vsel %vm526_vm2, %v2997_v24, -inf }
0x1ba3   :  { %3011 = vmax.xlane.f32.xlu1 %v3010_v47 }
0x1c24   :  { %v3003_v49 = vpop.xlane.xlu1 %3002 }
0x1c25   :  { %v3013_v50 = vsub.f32 %v2943_v37, %v3003_v49  ;;  %v4633_v37 = vld [vmem:[%s5720_s11 + $0x30] sm:$0xff]  }
0x1c27   :  { %v3017_v51 = vmul.f32 1.442695, %v3013_v50 }
0x1c28   :  { %v3006_v52 = vpop.xlane.xlu1 %3005 }
0x1c29   :  { %4791 = vpow2.f32 %v3017_v51  ;;  %v3014_v53 = vsub.f32 %v2946_v41, %v3006_v52 }
0x1c2b   :  { %v3019_v54 = vmul.f32 1.442695, %v3014_v53 }
0x1c2c   :  { %v3009_v55 = vpop.xlane.xlu1 %3008 }
0x1c2d   :  { %4793 = vpow2.f32 %v3019_v54  ;;  %v3015_v56 = vsub.f32 %v2994_v44, %v3009_v55 }
0x1c2f   :  { %v3021_v57 = vmul.f32 1.442695, %v3015_v56 }
0x1c30   :  { %v3012_v10 = vpop.xlane.xlu1 %3011 }
0x1c31   :  { %4795 = vpow2.f32 %v3021_v57  ;;  %v3016_v11 = vsub.f32 %v2997_v24, %v3012_v10 }
0x1c33   :  { %v4792_v58 = vpop.eup %4791  ;;  %v3023_v7 = vmul.f32 1.442695, %v3016_v11 }
0x1c34   :  { %v3025_v61 = vsel %vm526_vm2, %v4792_v58, 0.0 }
0x1c35   :  { %3026 = vadd.xlane.f32.xlu1 %v3025_v61  ;;  %4797 = vpow2.f32 %v3023_v7 }
0x1c37   :  { %v4794_v62 = vpop.eup %4793 }
0x1c38   :  { %v3028_v2 = vsel %vm526_vm2, %v4794_v62, 0.0 }
0x1c39   :  { %3029 = vadd.xlane.f32.xlu1 %v3028_v2 }
0x1c3b   :  { %v4796_v4 = vpop.eup %4795 }
0x1c3c   :  { %v3031_v5 = vsel %vm526_vm2, %v4796_v4, 0.0 }
0x1c3d   :  { %3032 = vadd.xlane.f32.xlu0 %v3031_v5 }
0x1c3f   :  { %v4798_v1 = vpop.eup %4797 }
0x1c40   :  { %v3034_v17 = vsel %vm526_vm2, %v4798_v1, 0.0 }
0x1c4a   :  { %3047 = vrot.lane.b32.xlu1 %v5426_v6, %s4854_s26 }
0x1c53   :  { %3261 = vrot.lane.b32.xlu0 %v5430_v19, %s4855_s28 }
0x1c64   :  { %v2825_v8 = vpop.f32.mrb[68].mxu0 }
0x1c65   :  { %v4445_v13 = vpop.f32.mrb[69].mxu0 }
0x1c66   :  { %v2828_v15 = vpop.f32.mrb[70].mxu0 }
0x1c67   :  { %v2833_v59 = vpack.c.bf16 %v2828_v15, %v2825_v8  ;;  %v4446_v39 = vpop.f32.mrb[71].mxu0 }
0x1c69   :  { %4450 = vmatmul.mubr.msk.bf16.vlgmr.msra.gmra.mrb[60].mxu0 %vm526_vm2, %v2833_v59 }
0x1c6a   :  { %4467 = vmatprep.mubr.msk.bf16.mxu0 %vm4849_vm1, %v4848_v12 }
0x1c6e   :  { %3035 = vadd.xlane.f32.xlu1 %v3034_v17 }
0x1c7f   :  { %3094 = vrot.lane.b32.xlu1 %v5432_v21, %s4854_s26 }
0x1c83   :  { %3210 = vrot.lane.b32.xlu1 %v5424_v14, %s4855_s28 }
0x1c87   :  { %3208 = vrot.lane.b32.xlu1 %v5424_v14, %s4856_s7 }
0x1c8b   :  { %3259 = vrot.lane.b32.xlu1 %v5430_v19, %s4856_s7 }
0x1cc2   :  { %v3027_v20 = vpop.xlane.xlu1 %3026 }
0x1cc3   :  { %4799 = vrcp.f32 %v3027_v20 }
0x1cc6   :  { %v3030_v9 = vpop.xlane.xlu1 %3029 }
0x1cc7   :  { %4801 = vrcp.f32 %v3030_v9 }
0x1cca   :  { %v3048_v23 = vpop.permute.xlu1 %3047  ;;  %v3033_v16 = vpop.xlane.xlu0 %3032 }
0x1ccb   :  { %4466 = vmatpush3.bf16.msra.mxu0 %v3048_v23  ;;  %4803 = vrcp.f32 %v3033_v16 }
0x1ccc   :  { %4477 = vmatprep.subr.bf16.mxu0 %v4633_v37 }
0x1ccd   :  { %v4800_v25 = vpop.eup %4799 }
0x1cce   :  { %v3041_v27 = vmul.f32 %v4800_v25, %v4792_v58  ;;  %v3262_v18 = vpop.permute.xlu0 %3261 }
0x1ccf   :  { %v3267_v48 = vsel %vm526_vm2, %v3262_v18, 0 }
0x1cd1   :  { %v4802_v26 = vpop.eup %4801 }
0x1cd2   :  { %v3042_v28 = vmul.f32 %v4802_v26, %v4794_v62 }
0x1cd4   :  { %v3045_v29 = vpack.c.bf16 %v3042_v28, %v3041_v27 }
0x1cd5   :  { %v4804_v19 = vpop.eup %4803 }
0x1cd6   :  { %4468 = vmatmul.mubr.msk.bf16.vlgmr.msra.gmra.mrb[72].mxu0 %vm526_vm2, %v3045_v29  ;;  %v3043_v22 = vmul.f32 %v4804_v19, %v4796_v4 }
0x1cd7   :  { %4478 = vmatpush3.bf16.msra.mxu0 %v4633_v37 }
0x1cd8   :  { %4489 = vmatprep.subr.bf16.mxu0 %v4848_v12 }
0x1cfb   :  { %v3036_v30 = vpop.xlane.xlu1 %3035 }
0x1cfc   :  { %4805 = vrcp.f32 %v3036_v30 }
0x1cff   :  { %v3095_v14 = vpop.permute.xlu1 %3094 }
0x1d00   :  { %4472 = vmatpush3.bf16.msra.mxu1 %v3095_v14 }
0x1d01   :  { %4483 = vmatprep.subr.bf16.mxu1 %v4848_v12 }
0x1d03   :  { %v3211_v33 = vpop.permute.xlu1 %3210 }
0x1d04   :  { %v3216_v35 = vsel %vm526_vm2, %v3211_v33, 0 }
0x1d06   :  { %v4806_v31 = vpop.eup %4805 }
0x1d07   :  { %v3044_v32 = vmul.f32 %v4806_v31, %v4798_v1  ;;  %v3209_v36 = vpop.permute.xlu1 %3208 }
0x1d09   :  { %v3046_v34 = vpack.c.bf16 %v3044_v32, %v3043_v22 }
0x1d0b   :  { %4474 = vmatmul.mubr.msk.bf16.vlgmr.msra.gmra.mrb[68].mxu1 %vm526_vm2, %v3046_v34  ;;  %v3260_v55 = vpop.permute.xlu1 %3259 }
0x1d0c   :  { %4484 = vmatpush3.bf16.xpose.msra.mxu1 %v3216_v35  ;;  %4485 = vmatprep.mubr.msk.bf16.mxu1 %vm4849_vm1, %v4848_v12 }
0x1d0d   :  { %4495 = vmatprep.subr.bf16.mxu1 %v4848_v12 }
0x1d13   :  { %4486 = vmatmul.mubr.msk.bf16.vlgmr.msra.gmra.mrb[72].mxu1 %vm526_vm2, %v3209_v36 }
0x1d14   :  { %4497 = vmatprep.mubr.msk.bf16.mxu1 %vm4849_vm1, %v4848_v12 }
0x1da9   :  { %v3087_v38 = vpop.f32.mrb[72].mxu0 }
0x1daa   :  { %v4469_v40 = vpop.f32.mrb[73].mxu0 }
0x1dab   :  { %v3090_v41 = vpop.f32.mrb[74].mxu0  ;;  %v4634_v40 = vld [vmem:[%s5720_s11 + $0x38] sm:$0xff]  }
0x1dac   :  { %v3141_v42 = vpack.c.bf16 %v3090_v41, %v3087_v38  ;;  %v4470_v43 = vpop.f32.mrb[75].mxu0 }
0x1dae   :  { %4479 = vmatprep.mubr.msk.bf16.mxu0 %vm526_vm2, %v3141_v42 }
0x1dde   :  { %v3134_v44 = vpop.f32.mrb[68].mxu1 }
0x1ddf   :  { %v4475_v45 = vpop.f32.mrb[69].mxu1 }
0x1de0   :  { %v3137_v24 = vpop.f32.mrb[70].mxu1 }
0x1de1   :  { %v3142_v46 = vpack.c.bf16 %v3137_v24, %v3134_v44  ;;  %v4476_v47 = vpop.f32.mrb[71].mxu1 }
0x1de3   :  { %4480 = vmatmul.mubr.msk.bf16.vlgmr.msra.gmra.mrb[60].mxu0 %vm526_vm2, %v3142_v46 }
0x1de4   :  { %4490 = vmatpush3.bf16.xpose.msra.mxu0 %v3267_v48  ;;  %4491 = vmatprep.mubr.msk.bf16.mxu0 %vm4849_vm1, %v4848_v12 }
0x1de5   :  { %4501 = vmatprep.subr.bf16.mxu0 %v4848_v12 }
0x1de6   :  { %v3252_v49 = vpop.f32.mrb[72].mxu1 }
0x1de7   :  { %v4487_v50 = vpop.f32.mrb[73].mxu1  ;;  %v3310_v51 = vsel %vm526_vm2, %v3252_v49, -inf }
0x1de8   :  { %3311 = vmax.xlane.f32.xlu1 %v3310_v51  ;;  %v3255_v52 = vpop.f32.mrb[74].mxu1 }
0x1de9   :  { %v4488_v53 = vpop.f32.mrb[75].mxu1  ;;  %v3313_v54 = vsel %vm526_vm2, %v3255_v52, -inf }
0x1dea   :  { %3314 = vmax.xlane.f32.xlu0 %v3313_v54 }
0x1deb   :  { %4492 = vmatmul.mubr.msk.bf16.vlgmr.msra.gmra.mrb[76].mxu0 %vm526_vm2, %v3260_v55 }
0x1dec   :  { %4503 = vmatprep.mubr.msk.bf16.mxu0 %vm4849_vm1, %v4848_v12 }
0x1e75   :  { %v3312_v56 = vpop.xlane.xlu1 %3311 }
0x1e76   :  { %v3322_v57 = vsub.f32 %v3252_v49, %v3312_v56  ;;  %v4033_v49 = vld [vmem:[%s5721_s12 + $0x1] ss:$0 sm:$0xff] }
0x1e77   :  { %v3315_v2 = vpop.xlane.xlu0 %3314 }
0x1e78   :  { %v3326_v58 = vmul.f32 1.442695, %v3322_v57  ;;  %v3323_v4 = vsub.f32 %v3255_v52, %v3315_v2 }
0x1e7a   :  { %4807 = vpow2.f32 %v3326_v58  ;;  %v3328_v5 = vmul.f32 1.442695, %v3323_v4 }
0x1e7c   :  { %4809 = vpow2.f32 %v3328_v5 }
0x1e84   :  { %v4808_v61 = vpop.eup %4807 }
0x1e85   :  { %v3334_v62 = vsel %vm526_vm2, %v4808_v61, 0.0 }
0x1e86   :  { %3335 = vadd.xlane.f32.xlu0 %v3334_v62  ;;  %v4810_v15 = vpop.eup %4809 }
0x1e87   :  { %v3337_v59 = vsel %vm526_vm2, %v4810_v15, 0.0 }
0x1ebe   :  { %v3303_v10 = vpop.f32.mrb[76].mxu0 }
0x1ebf   :  { %v4493_v11 = vpop.f32.mrb[77].mxu0  ;;  %v3316_v7 = vsel %vm526_vm2, %v3303_v10, -inf }
0x1ec0   :  { %3317 = vmax.xlane.f32.xlu1 %v3316_v7  ;;  %v3306_v8 = vpop.f32.mrb[78].mxu0 }
0x1ec1   :  { %v4494_v13 = vpop.f32.mrb[79].mxu0  ;;  %v3319_v12 = vsel %vm526_vm2, %v3306_v8, -inf }
0x1ec4   :  { %3320 = vmax.xlane.f32.xlu1 %v3319_v12 }
0x1ec8   :  { %3338 = vadd.xlane.f32.xlu1 %v3337_v59 }
0x1f13   :  { %v3336_v16 = vpop.xlane.xlu0 %3335 }
0x1f4d   :  { %v3318_v39 = vpop.xlane.xlu1 %3317 }
0x1f4e   :  { %v3324_v1 = vsub.f32 %v3303_v10, %v3318_v39 }
0x1f50   :  { %v3330_v17 = vmul.f32 1.442695, %v3324_v1 }
0x1f51   :  { %v3321_v20 = vpop.xlane.xlu1 %3320 }
0x1f52   :  { %4811 = vpow2.f32 %v3330_v17  ;;  %v3325_v9 = vsub.f32 %v3306_v8, %v3321_v20 }
0x1f54   :  { %v3332_v23 = vmul.f32 1.442695, %v3325_v9 }
0x1f55   :  { %v3339_v29 = vpop.xlane.xlu1 %3338 }
0x1f56   :  { %4813 = vpow2.f32 %v3332_v23 }
0x1f57   :  { %4815 = vrcp.f32 %v3339_v29  ;;  %v4635_v29 = vld [vmem:[%s5722_s15 + $0x20] sm:$0xff]  }
0x1f58   :  { %4817 = vrcp.f32 %v3336_v16  ;;  %v4636_v16 = vld [vmem:[%s5722_s15 + $0x28] sm:$0xff]  }
0x1f5c   :  { %v4812_v25 = vpop.eup %4811 }
0x1f5d   :  { %v3340_v26 = vsel %vm526_vm2, %v4812_v25, 0.0 }
0x1f5e   :  { %3341 = vadd.xlane.f32.xlu0 %v3340_v26 }
0x1f60   :  { %v4814_v27 = vpop.eup %4813 }
0x1f61   :  { %v3343_v28 = vsel %vm526_vm2, %v4814_v27, 0.0  ;;  %v4816_v30 = vpop.eup %4815 }
0x1f62   :  { %3344 = vadd.xlane.f32.xlu1 %v3343_v28  ;;  %v4818_v19 = vpop.eup %4817  ;;  %v3351_v31 = vmul.f32 %v4816_v30, %v4810_v15  ;;  %v4637_v30 = vld [vmem:[%s5722_s15 + $0x30] sm:$0xff]  }
0x1f63   :  { %v3350_v22 = vmul.f32 %v4818_v19, %v4808_v61  ;;  %v4639_v19 = vld [vmem:[%s5723_s17 + $0x40] sm:$0xff]  }
0x1f65   :  { %v3354_v34 = vpack.c.bf16 %v3351_v31, %v3350_v22  ;;  %v4640_v31 = vld [vmem:[%s5723_s17 + $0x48] sm:$0xff]  }
0x1f73   :  { %3403 = vrot.lane.b32.xlu1 %v5432_v21, %s4856_s7 }
0x1f74   :  { %3356 = vrot.lane.b32.xlu0 %v5426_v6, %s4856_s7 }
0x1feb   :  { %v3342_v14 = vpop.xlane.xlu0 %3341 }
0x1fec   :  { %4819 = vrcp.f32 %v3342_v14  ;;  %v4638_v14 = vld [vmem:[%s5722_s15 + $0x38] sm:$0xff]  }
0x1fef   :  { %v3357_v32 = vpop.permute.xlu0 %3356  ;;  %v3345_v33 = vpop.xlane.xlu1 %3344 }
0x1ff0   :  { %4821 = vrcp.f32 %v3345_v33  ;;  %4496 = vmatpush3.bf16.msra.mxu1 %v3357_v32 }
0x1ff1   :  { %4513 = vmatprep.subr.bf16.mxu1 %v4635_v29 }
0x1ff3   :  { %4498 = vmatmul.mubr.msk.bf16.vlgmr.msra.gmra.mrb[76].mxu1 %vm526_vm2, %v3354_v34  ;;  %v3404_v21 = vpop.permute.xlu1 %3403 }
0x1ff4   :  { %4502 = vmatpush3.bf16.msra.mxu0 %v3404_v21  ;;  %4514 = vmatpush3.bf16.msra.mxu1 %v4635_v29 }
0x1ff5   :  { %4507 = vmatprep.subr.bf16.mxu0 %v4634_v40  ;;  %4515 = vmatprep.subr.bf16.mxu1 %v4636_v16 }
0x1ff6   :  { %v4820_v6 = vpop.eup %4819 }
0x1ff7   :  { %v3352_v36 = vmul.f32 %v4820_v6, %v4812_v25 }
0x1ff8   :  { %4516 = vmatpush3.bf16.msra.mxu1 %v4636_v16 }
0x1ff9   :  { %4517 = vmatprep.subr.bf16.mxu1 %v4637_v30 }
0x1ffa   :  { %v4822_v35 = vpop.eup %4821 }
0x1ffb   :  { %v3353_v37 = vmul.f32 %v4822_v35, %v4814_v27 }
0x1ffc   :  { %4518 = vmatpush3.bf16.msra.mxu1 %v4637_v30 }
0x1ffd   :  { %v3355_v38 = vpack.c.bf16 %v3353_v37, %v3352_v36  ;;  %4519 = vmatprep.subr.bf16.mxu1 %v4638_v14 }
0x1fff   :  { %4504 = vmatmul.mubr.msk.bf16.vlgmr.msra.gmra.mrb[80].mxu0 %vm526_vm2, %v3355_v38 }
0x2000   :  { %4508 = vmatpush3.bf16.msra.mxu0 %v4634_v40  ;;  %4520 = vmatpush3.bf16.msra.mxu1 %v4638_v14 }
0x2001   :  { %4525 = vmatprep.subr.bf16.mxu0 %v4639_v19 }
0x20c6   :  { %v3396_v41 = vpop.f32.mrb[76].mxu1 }
0x20c7   :  { %v4499_v42 = vpop.f32.mrb[77].mxu1 }
0x20c8   :  { %v3399_v43 = vpop.f32.mrb[78].mxu1 }
0x20c9   :  { %v3450_v44 = vpack.c.bf16 %v3399_v43, %v3396_v41  ;;  %v4500_v45 = vpop.f32.mrb[79].mxu1  ;;  %v4057_v43 = vld [vmem:[%s5724_s13 + $0x1] ss:$0 sm:$0xff] }
0x20cb   :  { %4509 = vmatprep.mubr.msk.bf16.mxu0 %vm526_vm2, %v3450_v44 }
0x20d2   :  { %v3443_v18 = vpop.f32.mrb[80].mxu0 }
0x20d3   :  { %v4505_v24 = vpop.f32.mrb[81].mxu0 }
0x20d4   :  { %v3446_v46 = vpop.f32.mrb[82].mxu0 }
0x20d5   :  { %v3451_v47 = vpack.c.bf16 %v3446_v46, %v3443_v18  ;;  %v4506_v48 = vpop.f32.mrb[83].mxu0  ;;  %v4058_v46 = vld [vmem:[%s5725_s14 + $0x1] ss:$0 sm:$0xff] }
0x20d7   :  { %4510 = vmatmul.mubr.msk.bf16.vlgmr.msra.gmra.mrb[60].mxu0 %vm526_vm2, %v3451_v47 }
0x20d8   :  { %4526 = vmatpush3.bf16.msra.mxu0 %v4639_v19 }
0x20d9   :  { %4527 = vmatprep.subr.bf16.mxu0 %v4640_v31 }
0x20dc   :  { %4528 = vmatpush3.bf16.msra.mxu0 %v4640_v31 }
0x21aa   :  { %v4511_v50 = vpop.f32.mrb[60].mxu0 }
0x21ab   :  { %v3498_v51 = vpop.f32.mrb[61].mxu0  ;;  %v4549_v56 = vadd.f32 %v4511_v50, %v4033_v49 }
0x21ac   :  { %v4550_v52 = vadd.f32 %v4033_v49, %v3498_v51  ;;  %v4512_v53 = vpop.f32.mrb[62].mxu0 }
0x21ad   :  { %v4551_v54 = vadd.f32 %v4512_v53, %v4033_v49  ;;  %v3501_v55 = vpop.f32.mrb[63].mxu0  ;;  %v5609_v4 = vadd.f32 %v4549_v56, %v5364_v63 }
0x21ae   :  { %v5598_v57 = vadd.f32 %v4550_v52, %v5361_v60  ;;  %v4552_v58 = vadd.f32 %v4033_v49, %v3501_v55 }
0x21af   :  { %v5601_v61 = vadd.f32 %v4551_v54, %v5372_v3  ;;  %v3531_v3 = vsel %vm75_vm0, %v5609_v4, 0.0 }
0x21b0   :  { %v5604_v62 = vadd.f32 %v4552_v58, %v5367_v0  ;;  %v3525_v2 = vsel %vm75_vm0, %v5598_v57, 0.0 }
0x21b1   :  { %3526 = vadd.xlane.f32.xlu1 %v3525_v2  ;;  %v3534_v60 = vsel %vm75_vm0, %v5601_v61, 0.0 }
0x21b2   :  { %v3528_v5 = vsel %vm75_vm0, %v5604_v62, 0.0 }
0x21b3   :  { %3529 = vadd.xlane.f32.xlu0 %v3528_v5 }
0x21b5   :  { %3535 = vadd.xlane.f32.xlu1 %v3534_v60  ;;  %v4641_v60 = vld [vmem:[%s5723_s17 + $0x50] sm:$0xff]  }
0x21b6   :  { %4529 = vmatprep.subr.bf16.mxu0 %v4641_v60 }
0x21b7   :  { %3532 = vadd.xlane.f32.xlu0 %v3531_v3  ;;  %4530 = vmatpush3.bf16.msra.mxu0 %v4641_v60  ;;  %v4642_v3 = vld [vmem:[%s5723_s17 + $0x58] sm:$0xff]  }
0x21b8   :  { %4531 = vmatprep.subr.bf16.mxu0 %v4642_v3 }
0x21bb   :  { %4532 = vmatpush3.bf16.msra.mxu0 %v4642_v3 }
0x223e   :  { %v3527_v0 = vpop.xlane.xlu1 %3526 }
0x223f   :  { %v3537_v10 = vmul.f32 0.015625, %v3527_v0  ;;  %v4643_v0 = vld [vmem:[%s5723_s17 + $0x60] sm:$0xff]  }
0x2240   :  { %v3530_v11 = vpop.xlane.xlu0 %3529  ;;  %4533 = vmatprep.subr.bf16.mxu0 %v4643_v0 }
0x2241   :  { %v3541_v7 = vsub.f32 %v5598_v57, %v3537_v10  ;;  %v3538_v8 = vmul.f32 0.015625, %v3530_v11  ;;  %4534 = vmatpush3.bf16.msra.mxu0 %v4643_v0  ;;  %v4644_v10 = vld [vmem:[%s5723_s17 + $0x68] sm:$0xff]   ;;  %v4645_v11 = vld [vmem:[%s5723_s17 + $0x70] sm:$0xff]  }
0x2242   :  { %v3536_v63 = vpop.xlane.xlu1 %3535  ;;  %4535 = vmatprep.subr.bf16.mxu0 %v4644_v10 }
0x2243   :  { %v3542_v13 = vsub.f32 %v5604_v62, %v3538_v8  ;;  %v3540_v12 = vmul.f32 0.015625, %v3536_v63  ;;  %v3545_v15 = vmul.f32 %v3541_v7, %v3541_v7  ;;  %v4068_v8 = vld [vmem:[%s5726_s16 + $0x1] ss:$0 sm:$0xff] }
0x2244   :  { %v3533_v59 = vpop.xlane.xlu0 %3532 }
0x2245   :  { %v3544_v39 = vsub.f32 %v5601_v61, %v3540_v12  ;;  %v3539_v1 = vmul.f32 0.015625, %v3533_v59  ;;  %v3549_v17 = vsel %vm75_vm0, %v3545_v15, 0.0  ;;  %v3546_v20 = vmul.f32 %v3542_v13, %v3542_v13  ;;  %4536 = vmatpush3.bf16.msra.mxu0 %v4644_v10 }
0x2246   :  { %3550 = vadd.xlane.f32.xlu0 %v3549_v17  ;;  %4537 = vmatprep.subr.bf16.mxu0 %v4645_v11 }
0x2247   :  { %v3543_v9 = vsub.f32 %v5609_v4, %v3539_v1  ;;  %v3552_v23 = vsel %vm75_vm0, %v3546_v20, 0.0  ;;  %v3548_v25 = vmul.f32 %v3544_v39, %v3544_v39 }
0x2248   :  { %3553 = vadd.xlane.f32.xlu1 %v3552_v23 }
0x2249   :  { %v3547_v26 = vmul.f32 %v3543_v9, %v3543_v9  ;;  %v3558_v27 = vsel %vm75_vm0, %v3548_v25, 0.0  ;;  %4538 = vmatpush3.bf16.msra.mxu0 %v4645_v11 }
0x224b   :  { %v3555_v28 = vsel %vm75_vm0, %v3547_v26, 0.0 }
0x224c   :  { %3559 = vadd.xlane.f32.xlu1 %v3558_v27  ;;  %3556 = vadd.xlane.f32.xlu0 %v3555_v28 }
0x22d3   :  { %v3551_v22 = vpop.xlane.xlu0 %3550 }
0x22d4   :  { %v3561_v32 = vmul.f32 0.015625, %v3551_v22 }
0x22d5   :  { %v3554_v33 = vpop.xlane.xlu1 %3553 }
0x22d6   :  { %v3565_v34 = vadd.f32 1e-05, %v3561_v32  ;;  %v3562_v21 = vmul.f32 0.015625, %v3554_v33 }
0x22d8   :  { %4823 = vrsqrt.f32 %v3565_v34  ;;  %v3566_v6 = vadd.f32 1e-05, %v3562_v21 }
0x22d9   :  { %v3560_v35 = vpop.xlane.xlu1 %3559  ;;  %v3557_v36 = vpop.xlane.xlu0 %3556 }
0x22da   :  { %4825 = vrsqrt.f32 %v3566_v6  ;;  %v3564_v37 = vmul.f32 0.015625, %v3560_v35  ;;  %v3563_v38 = vmul.f32 0.015625, %v3557_v36 }
0x22dc   :  { %v3568_v40 = vadd.f32 1e-05, %v3564_v37  ;;  %v3567_v41 = vadd.f32 1e-05, %v3563_v38  ;;  %v4092_v38 = vld [vmem:[%s5727_s18 + $0x1] ss:$0 sm:$0xff] }
0x22de   :  { %4827 = vrsqrt.f32 %v3568_v40 }
0x22df   :  { %4829 = vrsqrt.f32 %v3567_v41 }
0x22e2   :  { %v4824_v42 = vpop.eup %4823 }
0x22e3   :  { %v3573_v44 = vmul.f32 %v4824_v42, %v3541_v7  ;;  %v4646_v7 = vld [vmem:[%s5723_s17 + $0x78] sm:$0xff]  }
0x22e4   :  { %v4826_v45 = vpop.eup %4825  ;;  %4539 = vmatprep.subr.bf16.mxu0 %v4646_v7 }
0x22e5   :  { %v3574_v18 = vmul.f32 %v4826_v45, %v3542_v13  ;;  %v3583_v24 = vmul.f32 %v4057_v43, %v3573_v44  ;;  %4540 = vmatpush3.bf16.msra.mxu0 %v4646_v7 }
0x22e7   :  { %v3584_v47 = vmul.f32 %v4057_v43, %v3574_v18  ;;  %v3593_v51 = vadd.f32 %v4058_v46, %v3583_v24 }
0x22e8   :  { %v4828_v48 = vpop.eup %4827 }
0x22e9   :  { %v4830_v49 = vpop.eup %4829  ;;  %v3576_v50 = vmul.f32 %v4828_v48, %v3544_v39  ;;  %v3594_v52 = vadd.f32 %v4058_v46, %v3584_v47 }
0x22ea   :  { %v3575_v53 = vmul.f32 %v4830_v49, %v3543_v9 }
0x22eb   :  { %v3586_v54 = vmul.f32 %v4057_v43, %v3576_v50  ;;  %v3597_v55 = vpack.c.bf16 %v3594_v52, %v3593_v51 }
0x22ec   :  { %v3585_v56 = vmul.f32 %v4057_v43, %v3575_v53 }
0x22ed   :  { %4521 = vmatprep.mubr.msk.bf16.mxu1 %vm75_vm0, %v3597_v55  ;;  %v3596_v58 = vadd.f32 %v4058_v46, %v3586_v54 }
0x22ee   :  { %v3595_v2 = vadd.f32 %v4058_v46, %v3585_v56 }
0x22f0   :  { %v3598_v5 = vpack.c.bf16 %v3596_v58, %v3595_v2 }
0x22f2   :  { %4522 = vmatmul.mubr.msk.bf16.vlgmr.msra.gmra.mrb[80].mxu1 %vm75_vm0, %v3598_v5 }
0x23c5   :  { %v4523_v63 = vpop.f32.mrb[80].mxu1 }
0x23c6   :  { %v3689_v13 = vadd.f32 %v4523_v63, %v4068_v8  ;;  %v3680_v12 = vpop.f32.mrb[81].mxu1 }
0x23c7   :  { %v3681_v15 = vadd.f32 %v4068_v8, %v3680_v12  ;;  %v4524_v59 = vpop.f32.mrb[82].mxu1 }
0x23c8   :  { %v3701_v39 = vmul.f32 0.70710677, %v3689_v13  ;;  %v3692_v1 = vadd.f32 %v4524_v59, %v4068_v8  ;;  %v3683_v17 = vpop.f32.mrb[83].mxu1  ;;  %v3697_v14 = vmul.f32 0.5, %v3689_v13 }
0x23c9   :  { %v3699_v20 = vmul.f32 0.70710677, %v3681_v15  ;;  %v3684_v9 = vadd.f32 %v4068_v8, %v3683_v17  ;;  %v3695_v22 = vmul.f32 0.5, %v3681_v15 }
0x23ca   :  { %4831 = verf.f32 %v3701_v39  ;;  %v3702_v23 = vmul.f32 0.70710677, %v3692_v1  ;;  %v3698_v19 = vmul.f32 0.5, %v3692_v1 }
0x23cb   :  { %4833 = verf.f32 %v3699_v20  ;;  %v3700_v25 = vmul.f32 0.70710677, %v3684_v9  ;;  %v3696_v32 = vmul.f32 0.5, %v3684_v9 }
0x23cc   :  { %4835 = verf.f32 %v3702_v23 }
0x23cd   :  { %4837 = verf.f32 %v3700_v25 }
0x23d4   :  { %v4832_v26 = vpop.eup %4831 }
0x23d5   :  { %v4834_v27 = vpop.eup %4833  ;;  %v3709_v28 = vadd.f32 1.0, %v4832_v26 }
0x23d6   :  { %v4836_v29 = vpop.eup %4835  ;;  %v3707_v16 = vadd.f32 1.0, %v4834_v27 }
0x23d7   :  { %v4838_v30 = vpop.eup %4837  ;;  %v3710_v31 = vadd.f32 1.0, %v4836_v29  ;;  %v3713_v34 = vmul.f32 %v3709_v28, %v3697_v14 }
0x23d8   :  { %v3708_v33 = vadd.f32 1.0, %v4838_v30  ;;  %v3711_v6 = vmul.f32 %v3707_v16, %v3695_v22  ;;  %v4101_v16 = vld [vmem:[%s5728_s19] ss:$0 sm:$0xff] }
0x23d9   :  { %v3714_v21 = vmul.f32 %v3710_v31, %v3698_v19  ;;  %v4102_v19 = vld [vmem:[%s5729_s20] ss:$0 sm:$0xff] }
0x23da   :  { %v3712_v35 = vmul.f32 %v3708_v33, %v3696_v32 }
0x23db   :  { %v3716_v36 = vpack.c.bf16 %v3714_v21, %v3713_v34 }
0x23dc   :  { %v3715_v37 = vpack.c.bf16 %v3712_v35, %v3711_v6 }
0x23de   :  { %4541 = vmatprep.mubr.bf16.mxu0 %v3715_v37 }
0x23df   :  { %4542 = vmatmul.mubr.bf16.vlgmr.msra.gmra.mrb[84].mxu0 %v3716_v36 }
0x24b2   :  { %v4543_v40 = vpop.f32.mrb[84].mxu0 }
0x24b3   :  { %v3824_v41 = vpop.f32.mrb[85].mxu0  ;;  %v3833_v42 = vadd.f32 %v4543_v40, %v4092_v38 }
0x24b4   :  { %v3825_v43 = vadd.f32 %v4092_v38, %v3824_v41  ;;  %v4544_v44 = vpop.f32.mrb[86].mxu0 }
0x24b5   :  { %v3827_v45 = vpop.f32.mrb[87].mxu0  ;;  %v3836_v24 = vadd.f32 %v4544_v44, %v4092_v38  ;;  %v3841_v47 = vadd.f32 %v3833_v42, %v5609_v4 }
0x24b6   :  { %v3839_v18 = vadd.f32 %v3825_v43, %v5598_v57  ;;  %v3828_v46 = vadd.f32 %v4092_v38, %v3827_v45 }
0x24b7   :  { %v3842_v50 = vadd.f32 %v3836_v24, %v5601_v61  ;;  %v3851_v52 = vsel %vm75_vm0, %v3841_v47, 0.0 }
0x24b8   :  { %v3840_v48 = vadd.f32 %v3828_v46, %v5604_v62  ;;  %v3845_v49 = vsel %vm75_vm0, %v3839_v18, 0.0 }
0x24b9   :  { %3846 = vadd.xlane.f32.xlu0 %v3845_v49  ;;  %v3854_v53 = vsel %vm75_vm0, %v3842_v50, 0.0 }
0x24ba   :  { %v3848_v51 = vsel %vm75_vm0, %v3840_v48, 0.0 }
0x24bb   :  { %3849 = vadd.xlane.f32.xlu1 %v3848_v51 }
0x24bd   :  { %3852 = vadd.xlane.f32.xlu0 %v3851_v52 }
0x24bf   :  { %3855 = vadd.xlane.f32.xlu1 %v3854_v53 }
0x2546   :  { %v3847_v57 = vpop.xlane.xlu0 %3846 }
0x2547   :  { %v3857_v54 = vmul.f32 0.015625, %v3847_v57 }
0x2548   :  { %v3850_v55 = vpop.xlane.xlu1 %3849 }
0x2549   :  { %v3861_v4 = vsub.f32 %v3839_v18, %v3857_v54  ;;  %v3858_v56 = vmul.f32 0.015625, %v3850_v55 }
0x254a   :  { %v3853_v62 = vpop.xlane.xlu0 %3852 }
0x254b   :  { %v3862_v58 = vsub.f32 %v3840_v48, %v3858_v56  ;;  %v3859_v2 = vmul.f32 0.015625, %v3853_v62  ;;  %v3865_v5 = vmul.f32 %v3861_v4, %v3861_v4 }
0x254c   :  { %v3856_v60 = vpop.xlane.xlu1 %3855 }
0x254d   :  { %v3863_v61 = vsub.f32 %v3841_v47, %v3859_v2  ;;  %v3860_v3 = vmul.f32 0.015625, %v3856_v60  ;;  %v3869_v0 = vsel %vm75_vm0, %v3865_v5, 0.0  ;;  %v3866_v10 = vmul.f32 %v3862_v58, %v3862_v58 }
0x254e   :  { %3870 = vadd.xlane.f32.xlu0 %v3869_v0 }
0x254f   :  { %v3864_v11 = vsub.f32 %v3842_v50, %v3860_v3  ;;  %v3872_v7 = vsel %vm75_vm0, %v3866_v10, 0.0  ;;  %v3867_v8 = vmul.f32 %v3863_v61, %v3863_v61 }
0x2550   :  { %3873 = vadd.xlane.f32.xlu1 %v3872_v7 }
0x2551   :  { %v3875_v63 = vsel %vm75_vm0, %v3867_v8, 0.0  ;;  %v3868_v13 = vmul.f32 %v3864_v11, %v3864_v11 }
0x2552   :  { %3876 = vadd.xlane.f32.xlu0 %v3875_v63 }
0x2553   :  { %v3878_v12 = vsel %vm75_vm0, %v3868_v13, 0.0 }
0x2554   :  { %3879 = vadd.xlane.f32.xlu1 %v3878_v12 }
0x25db   :  { %v3871_v15 = vpop.xlane.xlu0 %3870 }
0x25dc   :  { %v3881_v59 = vmul.f32 0.015625, %v3871_v15 }
0x25dd   :  { %v3874_v39 = vpop.xlane.xlu1 %3873 }
0x25de   :  { %v3885_v1 = vadd.f32 1e-05, %v3881_v59  ;;  %v3882_v17 = vmul.f32 0.015625, %v3874_v39 }
0x25df   :  { %v3877_v20 = vpop.xlane.xlu0 %3876 }
0x25e0   :  { %4839 = vrsqrt.f32 %v3885_v1  ;;  %v3886_v9 = vadd.f32 1e-05, %v3882_v17  ;;  %v3883_v23 = vmul.f32 0.015625, %v3877_v20 }
0x25e1   :  { %v3880_v25 = vpop.xlane.xlu1 %3879 }
0x25e2   :  { %4841 = vrsqrt.f32 %v3886_v9  ;;  %v3887_v26 = vadd.f32 1e-05, %v3883_v23  ;;  %v3884_v27 = vmul.f32 0.015625, %v3880_v25 }
0x25e4   :  { %4843 = vrsqrt.f32 %v3887_v26  ;;  %v3888_v28 = vadd.f32 1e-05, %v3884_v27 }
0x25e6   :  { %4845 = vrsqrt.f32 %v3888_v28 }
0x25ea   :  { %v4840_v29 = vpop.eup %4839 }
0x25eb   :  { %v3893_v30 = vmul.f32 %v4840_v29, %v3861_v4 }
0x25ec   :  { %v4842_v14 = vpop.eup %4841 }
0x25ed   :  { %v3903_v31 = vmul.f32 %v4101_v16, %v3893_v30  ;;  %v3894_v22 = vmul.f32 %v4842_v14, %v3862_v58 }
0x25ee   :  { %v4844_v32 = vpop.eup %4843 }
0x25ef   :  { %v3913_v33 = vadd.f32 %v4102_v19, %v3903_v31  ;;  %v3904_v34 = vmul.f32 %v4101_v16, %v3894_v22  ;;  %v3895_v21 = vmul.f32 %v4844_v32, %v3863_v61 }
0x25f0   :  { %v4846_v6 = vpop.eup %4845 }
0x25f1   :  { %3917 = vst.msk [vmem:[%s5730_s21] sm:$0xff] %vm75_vm0, %v3913_v33  ;;  %v3914_v35 = vadd.f32 %v4102_v19, %v3904_v34  ;;  %v3905_v36 = vmul.f32 %v4101_v16, %v3895_v21  ;;  %v3896_v37 = vmul.f32 %v4846_v6, %v3864_v11 }
0x25f3   :  { %3918 = vst.msk [vmem:[%s5730_s21 + $0x8] sm:$0xff] %vm75_vm0, %v3914_v35  ;;  %v3915_v38 = vadd.f32 %v4102_v19, %v3905_v36  ;;  %v3906_v40 = vmul.f32 %v4101_v16, %v3896_v37 }
0x25f5   :  { %3919 = vst.msk [vmem:[%s5730_s21 + $0x10] sm:$0xff] %vm75_vm0, %v3915_v38  ;;  %v3916_v41 = vadd.f32 %v4102_v19, %v3906_v40 }
0x25f7   :  { %3920 = vst.msk [vmem:[%s5730_s21 + $0x18] sm:$0xff] %vm75_vm0, %v3916_v41 }

</bundles_post_ra>
